<compile_context>
chip_gen: v7x
topology: tpu7x:2x2x1
jax: 0.10.0
libtpu: 0.0.40
codegen_flags: <defaults>
</compile_context>

<pallas_src>
import functools
import math

import jax
import jax.numpy as jnp
from jax import lax
from jax.experimental import pallas as pl
from jax.experimental.pallas import tpu as pltpu


# ----------------------------- helpers -------------------------------------- #

def _pick_tile(dim, pref, lo=128):
    """Largest power-of-two-ish tile <= pref that divides dim; full dim if small/ragged."""
    if dim <= pref:
        return dim
    t = pref
    while t >= lo:
        if dim % t == 0:
            return t
        t //= 2
    # TODO(synk): cdiv grid + masked tail for truly ragged dims instead of whole-dim block.
    return dim


def _ln_f32(x, g, b, eps):
    """Reference-style LayerNorm: unbiased std (D-1), eps added to std."""
    d = x.shape[-1]
    mean = jnp.mean(x, axis=-1, keepdims=True)
    c = x - mean
    std = jnp.sqrt(jnp.sum(c * c, axis=-1, keepdims=True) / (d - 1))
    return g * c / (std + eps) + b


# ----------------------------- Pallas kernels ------------------------------- #

def _ln_linear_kernel(x_ref, g_ref, bln_ref, w_ref, b_ref, o_ref, lnx_sc, *, eps):
    # out = LN(x) @ W + b ; LN hoisted: computed once per row tile (j == 0), reused
    # for every output-column tile j.
    j = pl.program_id(1)

    @pl.when(j == 0)
    def _():
        lnx_sc[...] = _ln_f32(x_ref[...], g_ref[...], bln_ref[...], eps).astype(jnp.bfloat16)

    o_ref[...] = (jnp.dot(lnx_sc[...], w_ref[...], preferred_element_type=jnp.float32)
                  + b_ref[...]).astype(o_ref.dtype)


def _linear_kernel(x_ref, w_ref, b_ref, o_ref):
    o_ref[...] = (jnp.dot(x_ref[...].astype(jnp.bfloat16), w_ref[...],
                          preferred_element_type=jnp.float32)
                  + b_ref[...]).astype(o_ref.dtype)


def _ln_ffn_kernel(x_ref, g_ref, bln_ref, w1_ref, b1_ref, w2_ref, b2_ref,
                   o_ref, lnx_sc, acc_sc, *, eps):
    # Fused: out = x + relu(LN(x) @ W1 + b1) @ W2 + b2, accumulated over d_ff tiles.
    j = pl.program_id(1)

    @pl.when(j == 0)
    def _():
        lnx_sc[...] = _ln_f32(x_ref[...], g_ref[...], bln_ref[...], eps).astype(jnp.bfloat16)
        acc_sc[...] = jnp.zeros_like(acc_sc)

    hid = jnp.dot(lnx_sc[...], w1_ref[...], preferred_element_type=jnp.float32) + b1_ref[...]
    hid = jnp.maximum(hid, 0.0)
    acc_sc[...] += jnp.dot(hid.astype(jnp.bfloat16), w2_ref[...],
                           preferred_element_type=jnp.float32)

    @pl.when(j == pl.num_programs(1) - 1)
    def _():
        o_ref[...] = x_ref[...] + acc_sc[...] + b2_ref[...]


def _attention_kernel(q_ref, k_ref, v_ref, m_ref, wo_ref, bo_ref, r_ref, o_ref, *, num_heads):
    # One batch element per grid step, all heads; output projection Wo + bias + residual
    # fused in the epilogue via a persistent [Tq, D] f32 accumulator (no concat / no
    # dk-wide masked stores / no ctx HBM round trip).
    # Scale 1/sqrt(dk) already folded into the query projection weights.
    q = q_ref[0]                                   # [Tq, D] bf16
    k = k_ref[0]                                   # [Tk, D] bf16
    v = v_ref[0]                                   # [Tk, D] bf16
    # additive mask bias computed once; broadcasts over heads and (if [1,Tk]) over Tq
    bias = jnp.where(m_ref[0] > 0.0, jnp.float32(0.0), jnp.float32(-1e9))   # [Tm, Tk]
    D = q.shape[-1]
    dk = D // num_heads

    acc = r_ref[0] + bo_ref[...]                   # [Tq, D] f32 (residual + out-proj bias)
    for hh in range(num_heads):                    # static unroll over heads
        c0 = hh * dk
        s = lax.dot_general(q[:, c0:c0 + dk], k[:, c0:c0 + dk],
                            (((1,), (1,)), ((), ())),
                            preferred_element_type=jnp.float32)             # [Tq, Tk]
        s = s + bias
        s = s - jnp.max(s, axis=-1, keepdims=True)
        p = jnp.exp(s)
        p = p * pl.reciprocal(jnp.sum(p, axis=-1, keepdims=True), approx=True)
        ctx = jnp.dot(p.astype(jnp.bfloat16), v[:, c0:c0 + dk],
                      preferred_element_type=jnp.float32)                    # [Tq, dk]
        acc = acc + jnp.dot(ctx.astype(jnp.bfloat16), wo_ref[c0:c0 + dk, :],
                            preferred_element_type=jnp.float32)              # [Tq, D]
    o_ref[0] = acc


def _layernorm_kernel(x_ref, g_ref, b_ref, o_ref, *, eps):
    o_ref[...] = _ln_f32(x_ref[...], g_ref[...], b_ref[...], eps)


# ----------------------------- Pallas wrappers ------------------------------ #

def ln_linear(x2d, ln_g, ln_b, w, b, eps=1e-6, out_dtype=jnp.bfloat16):
    """LN(x) @ W + b. K kept whole (needed for LN); LN computed once per row tile."""
    M, K = x2d.shape
    N = w.shape[1]
    tm = _pick_tile(M, 256, lo=8)
    tn = _pick_tile(N, 256)
    return pl.pallas_call(
        functools.partial(_ln_linear_kernel, eps=eps),
        out_shape=jax.ShapeDtypeStruct((M, N), out_dtype),
        grid=(M // tm, N // tn),
        in_specs=[pl.BlockSpec((tm, K), lambda i, j: (i, 0)),
                  pl.BlockSpec((1, K), lambda i, j: (0, 0)),
                  pl.BlockSpec((1, K), lambda i, j: (0, 0)),
                  pl.BlockSpec((K, tn), lambda i, j: (0, j)),
                  pl.BlockSpec((1, tn), lambda i, j: (0, j))],
        out_specs=pl.BlockSpec((tm, tn), lambda i, j: (i, j)),
        scratch_shapes=[pltpu.VMEM((tm, K), jnp.bfloat16)],
        compiler_params=pltpu.CompilerParams(
            dimension_semantics=("parallel", "arbitrary")),
    )(x2d, ln_g.reshape(1, K), ln_b.reshape(1, K), w, b.reshape(1, N))


def linear(x2d, w, b, out_dtype=jnp.bfloat16):
    M, K = x2d.shape
    N = w.shape[1]
    tm = _pick_tile(M, 256, lo=8)
    tn = _pick_tile(N, 256)
    return pl.pallas_call(
        _linear_kernel,
        out_shape=jax.ShapeDtypeStruct((M, N), out_dtype),
        grid=(M // tm, N // tn),
        in_specs=[pl.BlockSpec((tm, K), lambda i, j: (i, 0)),
                  pl.BlockSpec((K, tn), lambda i, j: (0, j)),
                  pl.BlockSpec((1, tn), lambda i, j: (0, j))],
        out_specs=pl.BlockSpec((tm, tn), lambda i, j: (i, j)),
        compiler_params=pltpu.CompilerParams(
            dimension_semantics=("parallel", "parallel")),
    )(x2d, w, b.reshape(1, N))


def ln_ffn_residual(x2d, ln_g, ln_b, w1, b1, w2, b2, eps=1e-6):
    """x + relu(LN(x)@W1+b1)@W2+b2 in one kernel; hidden stays in VMEM."""
    M, D = x2d.shape
    F = w1.shape[1]
    tm = _pick_tile(M, 256, lo=8)
    tf = _pick_tile(F, 256)          # smaller d_ff tile: v5e store pressure / v7x VMEM
    return pl.pallas_call(
        functools.partial(_ln_ffn_kernel, eps=eps),
        out_shape=jax.ShapeDtypeStruct((M, D), jnp.float32),
        grid=(M // tm, F // tf),
        in_specs=[pl.BlockSpec((tm, D), lambda i, j: (i, 0)),
                  pl.BlockSpec((1, D), lambda i, j: (0, 0)),
                  pl.BlockSpec((1, D), lambda i, j: (0, 0)),
                  pl.BlockSpec((D, tf), lambda i, j: (0, j)),
                  pl.BlockSpec((1, tf), lambda i, j: (0, j)),
                  pl.BlockSpec((tf, D), lambda i, j: (j, 0)),
                  pl.BlockSpec((1, D), lambda i, j: (0, 0))],
        out_specs=pl.BlockSpec((tm, D), lambda i, j: (i, 0)),
        scratch_shapes=[pltpu.VMEM((tm, D), jnp.bfloat16),
                        pltpu.VMEM((tm, D), jnp.float32)],
        compiler_params=pltpu.CompilerParams(
            dimension_semantics=("parallel", "arbitrary")),
    )(x2d, ln_g.reshape(1, D), ln_b.reshape(1, D), w1, b1.reshape(1, F),
      w2, b2.reshape(1, D))


def _maybe_slice(src, col, D):
    """Fast path: pick column-block `col` straight from the fused projection slab via the
    BlockSpec index map (needs D % 128 == 0). Fallback: materialize the slice with XLA."""
    if src.shape[-1] == D:
        return src, 0
    if D % 128 == 0:
        return src, col
    return src[:, :, col * D:(col + 1) * D], 0


def mha_attention(q_src, q_col, k_src, k_col, v_src, v_col, mask, wo, bo, resid,
                  num_heads, D):
    """All heads of one batch element per grid step; q/k/v sliced out of fused bf16 slabs;
    output projection + bias + residual fused in the kernel epilogue."""
    # TODO(synk): for very long sequences add flash-style KV tiling (online softmax), and
    # split Tq/heads across a second parallel axis so B==1 still uses both v7x TensorCores.
    q_src, q_col = _maybe_slice(q_src, q_col, D)
    k_src, k_col = _maybe_slice(k_src, k_col, D)
    v_src, v_col = _maybe_slice(v_src, v_col, D)
    B, Tq = resid.shape[0], resid.shape[1]
    Tk = k_src.shape[1]
    Bm, Tm, _ = mask.shape                       # mask kept at natural shape, no HBM broadcast
    mask_idx = (lambda b: (b, 0, 0)) if Bm == B else (lambda b: (0, 0, 0))
    return pl.pallas_call(
        functools.partial(_attention_kernel, num_heads=num_heads),
        out_shape=jax.ShapeDtypeStruct((B, Tq, D), jnp.float32),
        grid=(B,),
        in_specs=[pl.BlockSpec((1, Tq, D), lambda b, c=q_col: (b, 0, c)),
                  pl.BlockSpec((1, Tk, D), lambda b, c=k_col: (b, 0, c)),
                  pl.BlockSpec((1, Tk, D), lambda b, c=v_col: (b, 0, c)),
                  pl.BlockSpec((1, Tm, Tk), mask_idx),
                  pl.BlockSpec((D, D), lambda b: (0, 0)),
                  pl.BlockSpec((1, D), lambda b: (0, 0)),
                  pl.BlockSpec((1, Tq, D), lambda b: (b, 0, 0))],
        out_specs=pl.BlockSpec((1, Tq, D), lambda b: (b, 0, 0)),
        compiler_params=pltpu.CompilerParams(dimension_semantics=("parallel",)),
    )(q_src, k_src, v_src, mask, wo, bo.reshape(1, D), resid)


def layernorm(x, g, b, eps=1e-6):
    B, T, D = x.shape
    M = B * T
    x2d = x.reshape(M, D)
    tm = _pick_tile(M, 512, lo=8)
    out = pl.pallas_call(
        functools.partial(_layernorm_kernel, eps=eps),
        out_shape=jax.ShapeDtypeStruct((M, D), jnp.float32),
        grid=(M // tm,),
        in_specs=[pl.BlockSpec((tm, D), lambda i: (i, 0)),
                  pl.BlockSpec((1, D), lambda i: (0, 0)),
                  pl.BlockSpec((1, D), lambda i: (0, 0))],
        out_specs=pl.BlockSpec((tm, D), lambda i: (i, 0)),
        compiler_params=pltpu.CompilerParams(dimension_semantics=("parallel",)),
    )(x2d, g.reshape(1, D), b.reshape(1, D))
    return out.reshape(B, T, D)


# ----------------------------- Model (glue) ---------------------------------- #

def decoder_layer(p, x, memory_bf16, src_mask, tgt_mask, h):
    B, T, D = x.shape
    S = memory_bf16.shape[1]
    x2d = x.reshape(B * T, D)

    # sublayer 0: masked self-attention  (LN + fused QKV proj; Wo + residual fused in attn)
    qkv = ln_linear(x2d, p["ln0_g"], p["ln0_b"],
                    p["self_attn"]["wqkv"], p["self_attn"]["bqkv"]).reshape(B, T, 3 * D)
    x = mha_attention(qkv, 0, qkv, 1, qkv, 2, tgt_mask,
                      p["self_attn"]["wo"], p["self_attn"]["bo"],
                      x2d.reshape(B, T, D), h, D)
    x2d = x.reshape(B * T, D)

    # sublayer 1: source (cross) attention  (LN + Q proj fused; fused KV on bf16 memory)
    q = ln_linear(x2d, p["ln1_g"], p["ln1_b"],
                  p["src_attn"]["wq"], p["src_attn"]["bq"]).reshape(B, T, D)
    kv = linear(memory_bf16.reshape(B * S, D),
                p["src_attn"]["wkv"], p["src_attn"]["bkv"]).reshape(B, S, 2 * D)
    x = mha_attention(q, 0, kv, 0, kv, 1, src_mask,
                      p["src_attn"]["wo"], p["src_attn"]["bo"],
                      x2d.reshape(B, T, D), h, D)
    x2d = x.reshape(B * T, D)

    # sublayer 2: position-wise FFN  (LN + W1 + ReLU + W2 + residual in one kernel)
    x2d = ln_ffn_residual(x2d, p["ln2_g"], p["ln2_b"],
                          p["ff_w1"], p["ff_b1"], p["ff_w2"], p["ff_b2"])
    return x2d.reshape(B, T, D)


def decoder_forward(params, x, memory, source_mask, target_mask, h):
    memory_bf16 = memory.astype(jnp.bfloat16)                # cast once, not per layer
    src_mask = source_mask.astype(jnp.float32)               # [B or 1, 1, S] — no broadcast
    tgt_mask = target_mask.astype(jnp.float32)               # [1 or B, T, T] — no broadcast
    for layer_p in params["layers"]:
        x = decoder_layer(layer_p, x, memory_bf16, src_mask, tgt_mask, h)
    return layernorm(x, params["norm_g"], params["norm_b"])


# ----------------------------- Param init ------------------------------------ #

def init_decoder_params(key, N, D, d_ff, h):
    dk = D // h
    scale = 1.0 / math.sqrt(dk)           # folded into the query projection

    def lin(k, fi, fo):
        w = jax.random.normal(k, (fi, fo), jnp.float32) * 0.02
        return w, jnp.zeros((fo,), jnp.float32)

    layers = []
    for _ in range(N):
        keys = jax.random.split(key, 11)
        key = keys[0]
        wq, bq = lin(keys[1], D, D); wk, bk = lin(keys[2], D, D)
        wv, bv = lin(keys[3], D, D); wo, bo = lin(keys[4], D, D)
        self_attn = dict(
            wqkv=jnp.concatenate([wq * scale, wk, wv], axis=1).astype(jnp.bfloat16),
            bqkv=jnp.concatenate([bq * scale, bk, bv]),
            wo=wo.astype(jnp.bfloat16), bo=bo)
        wq2, bq2 = lin(keys[5], D, D); wk2, bk2 = lin(keys[6], D, D)
        wv2, bv2 = lin(keys[7], D, D); wo2, bo2 = lin(keys[8], D, D)
        src_attn = dict(
            wq=(wq2 * scale).astype(jnp.bfloat16), bq=bq2 * scale,
            wkv=jnp.concatenate([wk2, wv2], axis=1).astype(jnp.bfloat16),
            bkv=jnp.concatenate([bk2, bv2]),
            wo=wo2.astype(jnp.bfloat16), bo=bo2)
        ff_w1, ff_b1 = lin(keys[9], D, d_ff)
        ff_w2, ff_b2 = lin(keys[10], d_ff, D)
        layers.append(dict(
            self_attn=self_attn, src_attn=src_attn,
            ff_w1=ff_w1.astype(jnp.bfloat16), ff_b1=ff_b1,
            ff_w2=ff_w2.astype(jnp.bfloat16), ff_b2=ff_b2,
            ln0_g=jnp.ones((D,), jnp.float32), ln0_b=jnp.zeros((D,), jnp.float32),
            ln1_g=jnp.ones((D,), jnp.float32), ln1_b=jnp.zeros((D,), jnp.float32),
            ln2_g=jnp.ones((D,), jnp.float32), ln2_b=jnp.zeros((D,), jnp.float32)))
    return dict(layers=layers,
                norm_g=jnp.ones((D,), jnp.float32),
                norm_b=jnp.zeros((D,), jnp.float32))


# ----------------------------- Pure-JAX reference ----------------------------- #

def _ref_mha(q, k, v, mask, h):
    B, Tq, D = q.shape
    Tk = k.shape[1]
    dk = D // h
    qh = q.reshape(B, Tq, h, dk).transpose(0, 2, 1, 3)
    kh = k.reshape(B, Tk, h, dk).transpose(0, 2, 1, 3)
    vh = v.reshape(B, Tk, h, dk).transpose(0, 2, 1, 3)
    s = jnp.einsum("bhqd,bhkd->bhqk", qh, kh)
    s = jnp.where(mask[:, None, :, :] > 0, s, -1e9)
    p = jax.nn.softmax(s, axis=-1)
    ctx = jnp.einsum("bhqk,bhkd->bhqd", p, vh)
    return ctx.transpose(0, 2, 1, 3).reshape(B, Tq, D)


def decoder_forward_ref(params, x, memory, source_mask, target_mask, h, eps=1e-6):
    f32 = lambda a: a.astype(jnp.float32)
    src = source_mask.astype(jnp.float32)
    tgt = target_mask.astype(jnp.float32)
    for p in params["layers"]:
        y = _ln_f32(x, p["ln0_g"], p["ln0_b"], eps)
        qkv = y @ f32(p["self_attn"]["wqkv"]) + p["self_attn"]["bqkv"]
        q, k, v = jnp.split(qkv, 3, axis=-1)
        x = x + _ref_mha(q, k, v, tgt, h) @ f32(p["self_attn"]["wo"]) + p["self_attn"]["bo"]
        y = _ln_f32(x, p["ln1_g"], p["ln1_b"], eps)
        q = y @ f32(p["src_attn"]["wq"]) + p["src_attn"]["bq"]
        kv = memory @ f32(p["src_attn"]["wkv"]) + p["src_attn"]["bkv"]
        k, v = jnp.split(kv, 2, axis=-1)
        x = x + _ref_mha(q, k, v, src, h) @ f32(p["src_attn"]["wo"]) + p["src_attn"]["bo"]
        y = _ln_f32(x, p["ln2_g"], p["ln2_b"], eps)
        hid = jnp.maximum(y @ f32(p["ff_w1"]) + p["ff_b1"], 0.0)
        x = x + hid @ f32(p["ff_w2"]) + p["ff_b2"]
    return _ln_f32(x, params["norm_g"], params["norm_b"], eps)


# ----------------------------- Main ------------------------------------------ #

if __name__ == "__main__":
    # D chosen as a 128 multiple so attention blocks are lane-dense; still small & fast.
    B, T, S, D, H, DFF, NLAYERS = 2, 8, 8, 128, 4, 256, 2

    root = jax.random.PRNGKey(0)
    k_par, k_x, k_mem = jax.random.split(root, 3)

    params = init_decoder_params(k_par, NLAYERS, D, DFF, H)
    x = jax.random.normal(k_x, (B, T, D), jnp.float32)
    memory = jax.random.normal(k_mem, (B, S, D), jnp.float32)

    # source_mask: [B, 1, S]  (batch 1 has last 2 source positions padded)
    src_lens = jnp.array([S, S - 2])
    source_mask = (jnp.arange(S)[None, None, :] < src_lens[:, None, None]).astype(jnp.float32)
    # target_mask: causal subsequent mask [1, T, T]
    target_mask = jnp.tril(jnp.ones((T, T), jnp.float32))[None, :, :]

    fwd = jax.jit(functools.partial(decoder_forward, h=H))
    out = jax.block_until_ready(fwd(params, x, memory, source_mask, target_mask))

    assert out.shape == (B, T, D)
    assert bool(jnp.all(jnp.isfinite(out)))

    # correctness vs pure-JAX reference (bf16 matmul inputs -> loose tolerance)
    ref = decoder_forward_ref(params, x, memory, source_mask, target_mask, H)
    max_err = float(jnp.max(jnp.abs(out - ref)))
    assert max_err < 0.1, f"max abs error vs reference too large: {max_err}"

    print("KERNEL_OK")
</pallas_src>

<mosaic_0001>
module attributes {stable_mosaic.version = 11 : i64} {
  func.func @_attention_kernel(%arg0: i32, %arg1: memref<1x8x128xbf16, #tpu.memory_space<vmem>>, %arg2: memref<1x8x128xbf16, #tpu.memory_space<vmem>>, %arg3: memref<1x8x128xbf16, #tpu.memory_space<vmem>>, %arg4: memref<1x8x8xf32, #tpu.memory_space<vmem>>, %arg5: memref<128x128xbf16, #tpu.memory_space<vmem>>, %arg6: memref<1x128xf32, #tpu.memory_space<vmem>>, %arg7: memref<1x8x128xf32, #tpu.memory_space<vmem>>, %arg8: memref<1x8x128xf32, #tpu.memory_space<vmem>>) attributes {dimension_semantics = [#tpu.dimension_semantics<parallel>], iteration_bounds = array<i64: 2>, scalar_prefetch = 0 : i64, scratch_operands = 0 : i64, tpu.core_type = #tpu.core_type<tc>, window_params = [{transform_indices = @transform_0, window_bounds = array<i64: 1, 8, 128>}, {transform_indices = @transform_1, window_bounds = array<i64: 1, 8, 128>}, {transform_indices = @transform_2, window_bounds = array<i64: 1, 8, 128>}, {pipeline_mode = #tpu.pipeline_mode<synchronous>, transform_indices = @transform_3, window_bounds = array<i64: 1, 8, 8>}, {pipeline_mode = #tpu.pipeline_mode<synchronous>, transform_indices = @transform_4, window_bounds = array<i64: 128, 128>}, {pipeline_mode = #tpu.pipeline_mode<synchronous>, transform_indices = @transform_5, window_bounds = array<i64: 1, 128>}, {transform_indices = @transform_6, window_bounds = array<i64: 1, 8, 128>}, {transform_indices = @transform_7, window_bounds = array<i64: 1, 8, 128>}]} {
    %c0 = arith.constant 0 : index
    %c0_0 = arith.constant 0 : index
    %c0_1 = arith.constant 0 : index
    %0 = vector.load %arg1[%c0, %c0_0, %c0_1] : memref<1x8x128xbf16, #tpu.memory_space<vmem>>, vector<1x8x128xbf16>
    %1 = vector.shape_cast %0 : vector<1x8x128xbf16> to vector<8x128xbf16>
    %c0_2 = arith.constant 0 : index
    %c0_3 = arith.constant 0 : index
    %c0_4 = arith.constant 0 : index
    %2 = vector.load %arg2[%c0_2, %c0_3, %c0_4] : memref<1x8x128xbf16, #tpu.memory_space<vmem>>, vector<1x8x128xbf16>
    %3 = vector.shape_cast %2 : vector<1x8x128xbf16> to vector<8x128xbf16>
    %c0_5 = arith.constant 0 : index
    %c0_6 = arith.constant 0 : index
    %c0_7 = arith.constant 0 : index
    %4 = vector.load %arg3[%c0_5, %c0_6, %c0_7] : memref<1x8x128xbf16, #tpu.memory_space<vmem>>, vector<1x8x128xbf16>
    %5 = vector.shape_cast %4 : vector<1x8x128xbf16> to vector<8x128xbf16>
    %c0_8 = arith.constant 0 : index
    %c0_9 = arith.constant 0 : index
    %c0_10 = arith.constant 0 : index
    %6 = vector.load %arg4[%c0_8, %c0_9, %c0_10] : memref<1x8x8xf32, #tpu.memory_space<vmem>>, vector<1x8x8xf32>
    %7 = vector.shape_cast %6 : vector<1x8x8xf32> to vector<8x8xf32>
    %cst = arith.constant 0.000000e+00 : f32
    %8 = vector.broadcast %cst : f32 to vector<8x8xf32>
    %9 = arith.cmpf ogt, %7, %8 : vector<8x8xf32>
    %cst_11 = arith.constant 0.000000e+00 : f32
    %cst_12 = arith.constant -1.000000e+09 : f32
    %10 = vector.broadcast %cst_11 : f32 to vector<8x8xf32>
    %11 = vector.broadcast %cst_12 : f32 to vector<8x8xf32>
    %12 = arith.select %9, %10, %11 : vector<8x8xi1>, vector<8x8xf32>
    %c0_13 = arith.constant 0 : index
    %c0_14 = arith.constant 0 : index
    %c0_15 = arith.constant 0 : index
    %13 = vector.load %arg7[%c0_13, %c0_14, %c0_15] : memref<1x8x128xf32, #tpu.memory_space<vmem>>, vector<1x8x128xf32>
    %14 = vector.shape_cast %13 : vector<1x8x128xf32> to vector<8x128xf32>
    %c0_16 = arith.constant 0 : index
    %c0_17 = arith.constant 0 : index
    %15 = vector.load %arg6[%c0_16, %c0_17] : memref<1x128xf32, #tpu.memory_space<vmem>>, vector<1x128xf32>
    %16 = vector.broadcast %15 : vector<1x128xf32> to vector<8x128xf32>
    %17 = arith.addf %14, %16 : vector<8x128xf32>
    %18 = vector.extract_strided_slice %1 {offsets = [0, 0], sizes = [8, 32], strides = [1, 1]} : vector<8x128xbf16> to vector<8x32xbf16>
    %19 = vector.extract_strided_slice %3 {offsets = [0, 0], sizes = [8, 32], strides = [1, 1]} : vector<8x128xbf16> to vector<8x32xbf16>
    %cst_18 = arith.constant dense<0.000000e+00> : vector<8x8xf32>
    %20 = tpu.matmul %18, %19, %cst_18 {dimension_numbers = #tpu.dot_dimension_numbers<[1], [1], [0], [0], [0, 0, 1, 0], [], []>} : vector<8x32xbf16>, vector<8x32xbf16>, vector<8x8xf32> -> vector<8x8xf32>
    %21 = arith.addf %20, %12 : vector<8x8xf32>
    %cst_19 = arith.constant dense<0xFF800000> : vector<8xf32>
    %22 = vector.multi_reduction <maximumf>, %21, %cst_19 [1] : vector<8x8xf32> to vector<8xf32>
    %23 = vector.shape_cast %22 : vector<8xf32> to vector<8x1xf32>
    %24 = vector.broadcast %23 : vector<8x1xf32> to vector<8x8xf32>
    %25 = arith.subf %21, %24 : vector<8x8xf32>
    %26 = math.exp %25 : vector<8x8xf32>
    %cst_20 = arith.constant dense<0.000000e+00> : vector<8xf32>
    %27 = vector.multi_reduction <add>, %26, %cst_20 [1] : vector<8x8xf32> to vector<8xf32>
    %28 = vector.shape_cast %27 : vector<8xf32> to vector<8x1xf32>
    %29 = tpu.reciprocal %28 {approx = true} : vector<8x1xf32> -> vector<8x1xf32>
    %30 = vector.broadcast %29 : vector<8x1xf32> to vector<8x8xf32>
    %31 = arith.mulf %26, %30 : vector<8x8xf32>
    %32 = arith.truncf %31 : vector<8x8xf32> to vector<8x8xbf16>
    %33 = vector.extract_strided_slice %5 {offsets = [0, 0], sizes = [8, 32], strides = [1, 1]} : vector<8x128xbf16> to vector<8x32xbf16>
    %cst_21 = arith.constant dense<0.000000e+00> : vector<8x32xf32>
    %34 = tpu.matmul %32, %33, %cst_21 {dimension_numbers = #tpu.dot_dimension_numbers<[1], [0], [0], [1], [0, 0, 1, 1], [], []>} : vector<8x8xbf16>, vector<8x32xbf16>, vector<8x32xf32> -> vector<8x32xf32>
    %35 = arith.truncf %34 : vector<8x32xf32> to vector<8x32xbf16>
    %c0_22 = arith.constant 0 : index
    %c0_23 = arith.constant 0 : index
    %36 = vector.load %arg5[%c0_22, %c0_23] : memref<128x128xbf16, #tpu.memory_space<vmem>>, vector<32x128xbf16>
    %cst_24 = arith.constant dense<0.000000e+00> : vector<8x128xf32>
    %37 = tpu.matmul %35, %36, %cst_24 {dimension_numbers = #tpu.dot_dimension_numbers<[1], [0], [0], [1], [0, 0, 1, 1], [], []>} : vector<8x32xbf16>, vector<32x128xbf16>, vector<8x128xf32> -> vector<8x128xf32>
    %38 = arith.addf %17, %37 : vector<8x128xf32>
    %39 = vector.extract_strided_slice %1 {offsets = [0, 32], sizes = [8, 32], strides = [1, 1]} : vector<8x128xbf16> to vector<8x32xbf16>
    %40 = vector.extract_strided_slice %3 {offsets = [0, 32], sizes = [8, 32], strides = [1, 1]} : vector<8x128xbf16> to vector<8x32xbf16>
    %cst_25 = arith.constant dense<0.000000e+00> : vector<8x8xf32>
    %41 = tpu.matmul %39, %40, %cst_25 {dimension_numbers = #tpu.dot_dimension_numbers<[1], [1], [0], [0], [0, 0, 1, 0], [], []>} : vector<8x32xbf16>, vector<8x32xbf16>, vector<8x8xf32> -> vector<8x8xf32>
    %42 = arith.addf %41, %12 : vector<8x8xf32>
    %cst_26 = arith.constant dense<0xFF800000> : vector<8xf32>
    %43 = vector.multi_reduction <maximumf>, %42, %cst_26 [1] : vector<8x8xf32> to vector<8xf32>
    %44 = vector.shape_cast %43 : vector<8xf32> to vector<8x1xf32>
    %45 = vector.broadcast %44 : vector<8x1xf32> to vector<8x8xf32>
    %46 = arith.subf %42, %45 : vector<8x8xf32>
    %47 = math.exp %46 : vector<8x8xf32>
    %cst_27 = arith.constant dense<0.000000e+00> : vector<8xf32>
    %48 = vector.multi_reduction <add>, %47, %cst_27 [1] : vector<8x8xf32> to vector<8xf32>
    %49 = vector.shape_cast %48 : vector<8xf32> to vector<8x1xf32>
    %50 = tpu.reciprocal %49 {approx = true} : vector<8x1xf32> -> vector<8x1xf32>
    %51 = vector.broadcast %50 : vector<8x1xf32> to vector<8x8xf32>
    %52 = arith.mulf %47, %51 : vector<8x8xf32>
    %53 = arith.truncf %52 : vector<8x8xf32> to vector<8x8xbf16>
    %54 = vector.extract_strided_slice %5 {offsets = [0, 32], sizes = [8, 32], strides = [1, 1]} : vector<8x128xbf16> to vector<8x32xbf16>
    %cst_28 = arith.constant dense<0.000000e+00> : vector<8x32xf32>
    %55 = tpu.matmul %53, %54, %cst_28 {dimension_numbers = #tpu.dot_dimension_numbers<[1], [0], [0], [1], [0, 0, 1, 1], [], []>} : vector<8x8xbf16>, vector<8x32xbf16>, vector<8x32xf32> -> vector<8x32xf32>
    %56 = arith.truncf %55 : vector<8x32xf32> to vector<8x32xbf16>
    %c32 = arith.constant 32 : index
    %c0_29 = arith.constant 0 : index
    %57 = vector.load %arg5[%c32, %c0_29] : memref<128x128xbf16, #tpu.memory_space<vmem>>, vector<32x128xbf16>
    %cst_30 = arith.constant dense<0.000000e+00> : vector<8x128xf32>
    %58 = tpu.matmul %56, %57, %cst_30 {dimension_numbers = #tpu.dot_dimension_numbers<[1], [0], [0], [1], [0, 0, 1, 1], [], []>} : vector<8x32xbf16>, vector<32x128xbf16>, vector<8x128xf32> -> vector<8x128xf32>
    %59 = arith.addf %38, %58 : vector<8x128xf32>
    %60 = vector.extract_strided_slice %1 {offsets = [0, 64], sizes = [8, 32], strides = [1, 1]} : vector<8x128xbf16> to vector<8x32xbf16>
    %61 = vector.extract_strided_slice %3 {offsets = [0, 64], sizes = [8, 32], strides = [1, 1]} : vector<8x128xbf16> to vector<8x32xbf16>
    %cst_31 = arith.constant dense<0.000000e+00> : vector<8x8xf32>
    %62 = tpu.matmul %60, %61, %cst_31 {dimension_numbers = #tpu.dot_dimension_numbers<[1], [1], [0], [0], [0, 0, 1, 0], [], []>} : vector<8x32xbf16>, vector<8x32xbf16>, vector<8x8xf32> -> vector<8x8xf32>
    %63 = arith.addf %62, %12 : vector<8x8xf32>
    %cst_32 = arith.constant dense<0xFF800000> : vector<8xf32>
    %64 = vector.multi_reduction <maximumf>, %63, %cst_32 [1] : vector<8x8xf32> to vector<8xf32>
    %65 = vector.shape_cast %64 : vector<8xf32> to vector<8x1xf32>
    %66 = vector.broadcast %65 : vector<8x1xf32> to vector<8x8xf32>
    %67 = arith.subf %63, %66 : vector<8x8xf32>
    %68 = math.exp %67 : vector<8x8xf32>
    %cst_33 = arith.constant dense<0.000000e+00> : vector<8xf32>
    %69 = vector.multi_reduction <add>, %68, %cst_33 [1] : vector<8x8xf32> to vector<8xf32>
    %70 = vector.shape_cast %69 : vector<8xf32> to vector<8x1xf32>
    %71 = tpu.reciprocal %70 {approx = true} : vector<8x1xf32> -> vector<8x1xf32>
    %72 = vector.broadcast %71 : vector<8x1xf32> to vector<8x8xf32>
    %73 = arith.mulf %68, %72 : vector<8x8xf32>
    %74 = arith.truncf %73 : vector<8x8xf32> to vector<8x8xbf16>
    %75 = vector.extract_strided_slice %5 {offsets = [0, 64], sizes = [8, 32], strides = [1, 1]} : vector<8x128xbf16> to vector<8x32xbf16>
    %cst_34 = arith.constant dense<0.000000e+00> : vector<8x32xf32>
    %76 = tpu.matmul %74, %75, %cst_34 {dimension_numbers = #tpu.dot_dimension_numbers<[1], [0], [0], [1], [0, 0, 1, 1], [], []>} : vector<8x8xbf16>, vector<8x32xbf16>, vector<8x32xf32> -> vector<8x32xf32>
    %77 = arith.truncf %76 : vector<8x32xf32> to vector<8x32xbf16>
    %c64 = arith.constant 64 : index
    %c0_35 = arith.constant 0 : index
    %78 = vector.load %arg5[%c64, %c0_35] : memref<128x128xbf16, #tpu.memory_space<vmem>>, vector<32x128xbf16>
    %cst_36 = arith.constant dense<0.000000e+00> : vector<8x128xf32>
    %79 = tpu.matmul %77, %78, %cst_36 {dimension_numbers = #tpu.dot_dimension_numbers<[1], [0], [0], [1], [0, 0, 1, 1], [], []>} : vector<8x32xbf16>, vector<32x128xbf16>, vector<8x128xf32> -> vector<8x128xf32>
    %80 = arith.addf %59, %79 : vector<8x128xf32>
    %81 = vector.extract_strided_slice %1 {offsets = [0, 96], sizes = [8, 32], strides = [1, 1]} : vector<8x128xbf16> to vector<8x32xbf16>
    %82 = vector.extract_strided_slice %3 {offsets = [0, 96], sizes = [8, 32], strides = [1, 1]} : vector<8x128xbf16> to vector<8x32xbf16>
    %cst_37 = arith.constant dense<0.000000e+00> : vector<8x8xf32>
    %83 = tpu.matmul %81, %82, %cst_37 {dimension_numbers = #tpu.dot_dimension_numbers<[1], [1], [0], [0], [0, 0, 1, 0], [], []>} : vector<8x32xbf16>, vector<8x32xbf16>, vector<8x8xf32> -> vector<8x8xf32>
    %84 = arith.addf %83, %12 : vector<8x8xf32>
    %cst_38 = arith.constant dense<0xFF800000> : vector<8xf32>
    %85 = vector.multi_reduction <maximumf>, %84, %cst_38 [1] : vector<8x8xf32> to vector<8xf32>
    %86 = vector.shape_cast %85 : vector<8xf32> to vector<8x1xf32>
    %87 = vector.broadcast %86 : vector<8x1xf32> to vector<8x8xf32>
    %88 = arith.subf %84, %87 : vector<8x8xf32>
    %89 = math.exp %88 : vector<8x8xf32>
    %cst_39 = arith.constant dense<0.000000e+00> : vector<8xf32>
    %90 = vector.multi_reduction <add>, %89, %cst_39 [1] : vector<8x8xf32> to vector<8xf32>
    %91 = vector.shape_cast %90 : vector<8xf32> to vector<8x1xf32>
    %92 = tpu.reciprocal %91 {approx = true} : vector<8x1xf32> -> vector<8x1xf32>
    %93 = vector.broadcast %92 : vector<8x1xf32> to vector<8x8xf32>
    %94 = arith.mulf %89, %93 : vector<8x8xf32>
    %95 = arith.truncf %94 : vector<8x8xf32> to vector<8x8xbf16>
    %96 = vector.extract_strided_slice %5 {offsets = [0, 96], sizes = [8, 32], strides = [1, 1]} : vector<8x128xbf16> to vector<8x32xbf16>
    %cst_40 = arith.constant dense<0.000000e+00> : vector<8x32xf32>
    %97 = tpu.matmul %95, %96, %cst_40 {dimension_numbers = #tpu.dot_dimension_numbers<[1], [0], [0], [1], [0, 0, 1, 1], [], []>} : vector<8x8xbf16>, vector<8x32xbf16>, vector<8x32xf32> -> vector<8x32xf32>
    %98 = arith.truncf %97 : vector<8x32xf32> to vector<8x32xbf16>
    %c96 = arith.constant 96 : index
    %c0_41 = arith.constant 0 : index
    %99 = vector.load %arg5[%c96, %c0_41] : memref<128x128xbf16, #tpu.memory_space<vmem>>, vector<32x128xbf16>
    %cst_42 = arith.constant dense<0.000000e+00> : vector<8x128xf32>
    %100 = tpu.matmul %98, %99, %cst_42 {dimension_numbers = #tpu.dot_dimension_numbers<[1], [0], [0], [1], [0, 0, 1, 1], [], []>} : vector<8x32xbf16>, vector<32x128xbf16>, vector<8x128xf32> -> vector<8x128xf32>
    %101 = arith.addf %80, %100 : vector<8x128xf32>
    %c0_43 = arith.constant 0 : index
    %c0_44 = arith.constant 0 : index
    %c0_45 = arith.constant 0 : index
    %102 = vector.load %arg8[%c0_43, %c0_44, %c0_45] : memref<1x8x128xf32, #tpu.memory_space<vmem>>, vector<1x8x128xf32>
    %103 = vector.shape_cast %102 : vector<1x8x128xf32> to vector<8x128xf32>
    %104 = vector.shape_cast %101 : vector<8x128xf32> to vector<1x8x128xf32>
    tpu.vector_store %arg8[%c0_43, %c0_44, %c0_45], %104 {strides = array<i32>} : memref<1x8x128xf32, #tpu.memory_space<vmem>>, vector<1x8x128xf32>,
    return
  }
  func.func @transform_0(%arg0: i32) -> (i32, i32, i32) {
    %c0_i32 = arith.constant 0 : i32
    %c0_i32_0 = arith.constant 0 : i32
    %c0_i32_1 = arith.constant 0 : i32
    return %arg0, %c0_i32, %c0_i32_0 : i32, i32, i32
  }
  func.func @transform_1(%arg0: i32) -> (i32, i32, i32) {
    %c0_i32 = arith.constant 0 : i32
    %c1_i32 = arith.constant 1 : i32
    %c0_i32_0 = arith.constant 0 : i32
    return %arg0, %c0_i32, %c1_i32 : i32, i32, i32
  }
  func.func @transform_2(%arg0: i32) -> (i32, i32, i32) {
    %c0_i32 = arith.constant 0 : i32
    %c2_i32 = arith.constant 2 : i32
    %c0_i32_0 = arith.constant 0 : i32
    return %arg0, %c0_i32, %c2_i32 : i32, i32, i32
  }
  func.func @transform_3(%arg0: i32) -> (i32, i32, i32) {
    %c0_i32 = arith.constant 0 : i32
    %c0_i32_0 = arith.constant 0 : i32
    %c0_i32_1 = arith.constant 0 : i32
    %c0_i32_2 = arith.constant 0 : i32
    return %c0_i32, %c0_i32_0, %c0_i32_1 : i32, i32, i32
  }
  func.func @transform_4(%arg0: i32) -> (i32, i32) {
    %c0_i32 = arith.constant 0 : i32
    %c0_i32_0 = arith.constant 0 : i32
    %c0_i32_1 = arith.constant 0 : i32
    return %c0_i32, %c0_i32_0 : i32, i32
  }
  func.func @transform_5(%arg0: i32) -> (i32, i32) {
    %c0_i32 = arith.constant 0 : i32
    %c0_i32_0 = arith.constant 0 : i32
    %c0_i32_1 = arith.constant 0 : i32
    return %c0_i32, %c0_i32_0 : i32, i32
  }
  func.func @transform_6(%arg0: i32) -> (i32, i32, i32) {
    %c0_i32 = arith.constant 0 : i32
    %c0_i32_0 = arith.constant 0 : i32
    %c0_i32_1 = arith.constant 0 : i32
    return %arg0, %c0_i32, %c0_i32_0 : i32, i32, i32
  }
  func.func @transform_7(%arg0: i32) -> (i32, i32, i32) {
    %c0_i32 = arith.constant 0 : i32
    %c0_i32_0 = arith.constant 0 : i32
    %c0_i32_1 = arith.constant 0 : i32
    return %arg0, %c0_i32, %c0_i32_0 : i32, i32, i32
  }
}

module attributes {stable_mosaic.version = 11 : i64} {
  func.func @_ln_linear_kernel(%arg0: i32, %arg1: i32, %arg2: memref<16x128xf32, #tpu.memory_space<vmem>>, %arg3: memref<1x128xf32, #tpu.memory_space<vmem>>, %arg4: memref<1x128xf32, #tpu.memory_space<vmem>>, %arg5: memref<128x128xbf16, #tpu.memory_space<vmem>>, %arg6: memref<1x128xf32, #tpu.memory_space<vmem>>, %arg7: memref<16x128xbf16, #tpu.memory_space<vmem>>, %arg8: memref<16x128xbf16, #tpu.memory_space<vmem>>) attributes {dimension_semantics = [#tpu.dimension_semantics<parallel>, #tpu.dimension_semantics<arbitrary>], iteration_bounds = array<i64: 1, 3>, scalar_prefetch = 0 : i64, scratch_operands = 1 : i64, tpu.core_type = #tpu.core_type<tc>, window_params = [{transform_indices = @transform_0, window_bounds = array<i64: 16, 128>}, {pipeline_mode = #tpu.pipeline_mode<synchronous>, transform_indices = @transform_1, window_bounds = array<i64: 1, 128>}, {pipeline_mode = #tpu.pipeline_mode<synchronous>, transform_indices = @transform_2, window_bounds = array<i64: 1, 128>}, {transform_indices = @transform_3, window_bounds = array<i64: 128, 128>}, {transform_indices = @transform_4, window_bounds = array<i64: 1, 128>}, {transform_indices = @transform_5, window_bounds = array<i64: 16, 128>}]} {
    %c0_i32 = arith.constant 0 : i32
    %0 = arith.cmpi eq, %arg1, %c0_i32 : i32
    %1 = arith.extui %0 : i1 to i32
    %c0_i32_0 = arith.constant 0 : i32
    %2 = arith.cmpi ne, %1, %c0_i32_0 : i32
    scf.if %2 {
      %c0_8 = arith.constant 0 : index
      %c0_9 = arith.constant 0 : index
      %11 = vector.load %arg2[%c0_8, %c0_9] : memref<16x128xf32, #tpu.memory_space<vmem>>, vector<16x128xf32>
      %c0_10 = arith.constant 0 : index
      %c0_11 = arith.constant 0 : index
      %12 = vector.load %arg3[%c0_10, %c0_11] : memref<1x128xf32, #tpu.memory_space<vmem>>, vector<1x128xf32>
      %c0_12 = arith.constant 0 : index
      %c0_13 = arith.constant 0 : index
      %13 = vector.load %arg4[%c0_12, %c0_13] : memref<1x128xf32, #tpu.memory_space<vmem>>, vector<1x128xf32>
      %cst_14 = arith.constant dense<0.000000e+00> : vector<16xf32>
      %14 = vector.multi_reduction <add>, %11, %cst_14 [1] : vector<16x128xf32> to vector<16xf32>
      %15 = vector.shape_cast %14 : vector<16xf32> to vector<16x1xf32>
      %cst_15 = arith.constant 1.280000e+02 : f32
      %16 = vector.broadcast %cst_15 : f32 to vector<16x1xf32>
      %17 = arith.divf %15, %16 : vector<16x1xf32>
      %18 = vector.broadcast %17 : vector<16x1xf32> to vector<16x128xf32>
      %19 = arith.subf %11, %18 : vector<16x128xf32>
      %20 = arith.mulf %19, %19 : vector<16x128xf32>
      %cst_16 = arith.constant dense<0.000000e+00> : vector<16xf32>
      %21 = vector.multi_reduction <add>, %20, %cst_16 [1] : vector<16x128xf32> to vector<16xf32>
      %22 = vector.shape_cast %21 : vector<16xf32> to vector<16x1xf32>
      %cst_17 = arith.constant 1.270000e+02 : f32
      %23 = vector.broadcast %cst_17 : f32 to vector<16x1xf32>
      %24 = arith.divf %22, %23 : vector<16x1xf32>
      %25 = math.sqrt %24 : vector<16x1xf32>
      %26 = vector.broadcast %12 : vector<1x128xf32> to vector<16x128xf32>
      %27 = arith.mulf %26, %19 : vector<16x128xf32>
      %cst_18 = arith.constant 9.99999997E-7 : f32
      %28 = vector.broadcast %cst_18 : f32 to vector<16x1xf32>
      %29 = arith.addf %25, %28 : vector<16x1xf32>
      %30 = vector.broadcast %29 : vector<16x1xf32> to vector<16x128xf32>
      %31 = arith.divf %27, %30 : vector<16x128xf32>
      %32 = vector.broadcast %13 : vector<1x128xf32> to vector<16x128xf32>
      %33 = arith.addf %31, %32 : vector<16x128xf32>
      %34 = arith.truncf %33 : vector<16x128xf32> to vector<16x128xbf16>
      %c0_19 = arith.constant 0 : index
      %c0_20 = arith.constant 0 : index
      %35 = vector.load %arg8[%c0_19, %c0_20] : memref<16x128xbf16, #tpu.memory_space<vmem>>, vector<16x128xbf16>
      tpu.vector_store %arg8[%c0_19, %c0_20], %34 {strides = array<i32>} : memref<16x128xbf16, #tpu.memory_space<vmem>>, vector<16x128xbf16>,
    } else {
    }
    %c0 = arith.constant 0 : index
    %c0_1 = arith.constant 0 : index
    %3 = vector.load %arg8[%c0, %c0_1] : memref<16x128xbf16, #tpu.memory_space<vmem>>, vector<16x128xbf16>
    %c0_2 = arith.constant 0 : index
    %c0_3 = arith.constant 0 : index
    %4 = vector.load %arg5[%c0_2, %c0_3] : memref<128x128xbf16, #tpu.memory_space<vmem>>, vector<128x128xbf16>
    %cst = arith.constant dense<0.000000e+00> : vector<16x128xf32>
    %5 = tpu.matmul %3, %4, %cst {dimension_numbers = #tpu.dot_dimension_numbers<[1], [0], [0], [1], [0, 0, 1, 1], [], []>} : vector<16x128xbf16>, vector<128x128xbf16>, vector<16x128xf32> -> vector<16x128xf32>
    %c0_4 = arith.constant 0 : index
    %c0_5 = arith.constant 0 : index
    %6 = vector.load %arg6[%c0_4, %c0_5] : memref<1x128xf32, #tpu.memory_space<vmem>>, vector<1x128xf32>
    %7 = vector.broadcast %6 : vector<1x128xf32> to vector<16x128xf32>
    %8 = arith.addf %5, %7 : vector<16x128xf32>
    %9 = arith.truncf %8 : vector<16x128xf32> to vector<16x128xbf16>
    %c0_6 = arith.constant 0 : index
    %c0_7 = arith.constant 0 : index
    %10 = vector.load %arg7[%c0_6, %c0_7] : memref<16x128xbf16, #tpu.memory_space<vmem>>, vector<16x128xbf16>
    tpu.vector_store %arg7[%c0_6, %c0_7], %9 {strides = array<i32>} : memref<16x128xbf16, #tpu.memory_space<vmem>>, vector<16x128xbf16>,
    return
  }
  func.func @transform_0(%arg0: i32, %arg1: i32) -> (i32, i32) {
    %c0_i32 = arith.constant 0 : i32
    %c0_i32_0 = arith.constant 0 : i32
    return %arg0, %c0_i32 : i32, i32
  }
  func.func @transform_1(%arg0: i32, %arg1: i32) -> (i32, i32) {
    %c0_i32 = arith.constant 0 : i32
    %c0_i32_0 = arith.constant 0 : i32
    %c0_i32_1 = arith.constant 0 : i32
    return %c0_i32, %c0_i32_0 : i32, i32
  }
  func.func @transform_2(%arg0: i32, %arg1: i32) -> (i32, i32) {
    %c0_i32 = arith.constant 0 : i32
    %c0_i32_0 = arith.constant 0 : i32
    %c0_i32_1 = arith.constant 0 : i32
    return %c0_i32, %c0_i32_0 : i32, i32
  }
  func.func @transform_3(%arg0: i32, %arg1: i32) -> (i32, i32) {
    %c0_i32 = arith.constant 0 : i32
    %c0_i32_0 = arith.constant 0 : i32
    return %c0_i32, %arg1 : i32, i32
  }
  func.func @transform_4(%arg0: i32, %arg1: i32) -> (i32, i32) {
    %c0_i32 = arith.constant 0 : i32
    %c0_i32_0 = arith.constant 0 : i32
    return %c0_i32, %arg1 : i32, i32
  }
  func.func @transform_5(%arg0: i32, %arg1: i32) -> (i32, i32) {
    %c0_i32 = arith.constant 0 : i32
    return %arg0, %arg1 : i32, i32
  }
}

module attributes {stable_mosaic.version = 11 : i64} {
  func.func @_ln_linear_kernel(%arg0: i32, %arg1: i32, %arg2: memref<16x128xf32, #tpu.memory_space<vmem>>, %arg3: memref<1x128xf32, #tpu.memory_space<vmem>>, %arg4: memref<1x128xf32, #tpu.memory_space<vmem>>, %arg5: memref<128x128xbf16, #tpu.memory_space<vmem>>, %arg6: memref<1x128xf32, #tpu.memory_space<vmem>>, %arg7: memref<16x128xbf16, #tpu.memory_space<vmem>>, %arg8: memref<16x128xbf16, #tpu.memory_space<vmem>>) attributes {dimension_semantics = [#tpu.dimension_semantics<parallel>, #tpu.dimension_semantics<arbitrary>], iteration_bounds = array<i64: 1, 1>, scalar_prefetch = 0 : i64, scratch_operands = 1 : i64, tpu.core_type = #tpu.core_type<tc>, window_params = [{transform_indices = @transform_0, window_bounds = array<i64: 16, 128>}, {pipeline_mode = #tpu.pipeline_mode<synchronous>, transform_indices = @transform_1, window_bounds = array<i64: 1, 128>}, {pipeline_mode = #tpu.pipeline_mode<synchronous>, transform_indices = @transform_2, window_bounds = array<i64: 1, 128>}, {transform_indices = @transform_3, window_bounds = array<i64: 128, 128>}, {transform_indices = @transform_4, window_bounds = array<i64: 1, 128>}, {transform_indices = @transform_5, window_bounds = array<i64: 16, 128>}]} {
    %c0_i32 = arith.constant 0 : i32
    %0 = arith.cmpi eq, %arg1, %c0_i32 : i32
    %1 = arith.extui %0 : i1 to i32
    %c0_i32_0 = arith.constant 0 : i32
    %2 = arith.cmpi ne, %1, %c0_i32_0 : i32
    scf.if %2 {
      %c0_8 = arith.constant 0 : index
      %c0_9 = arith.constant 0 : index
      %11 = vector.load %arg2[%c0_8, %c0_9] : memref<16x128xf32, #tpu.memory_space<vmem>>, vector<16x128xf32>
      %c0_10 = arith.constant 0 : index
      %c0_11 = arith.constant 0 : index
      %12 = vector.load %arg3[%c0_10, %c0_11] : memref<1x128xf32, #tpu.memory_space<vmem>>, vector<1x128xf32>
      %c0_12 = arith.constant 0 : index
      %c0_13 = arith.constant 0 : index
      %13 = vector.load %arg4[%c0_12, %c0_13] : memref<1x128xf32, #tpu.memory_space<vmem>>, vector<1x128xf32>
      %cst_14 = arith.constant dense<0.000000e+00> : vector<16xf32>
      %14 = vector.multi_reduction <add>, %11, %cst_14 [1] : vector<16x128xf32> to vector<16xf32>
      %15 = vector.shape_cast %14 : vector<16xf32> to vector<16x1xf32>
      %cst_15 = arith.constant 1.280000e+02 : f32
      %16 = vector.broadcast %cst_15 : f32 to vector<16x1xf32>
      %17 = arith.divf %15, %16 : vector<16x1xf32>
      %18 = vector.broadcast %17 : vector<16x1xf32> to vector<16x128xf32>
      %19 = arith.subf %11, %18 : vector<16x128xf32>
      %20 = arith.mulf %19, %19 : vector<16x128xf32>
      %cst_16 = arith.constant dense<0.000000e+00> : vector<16xf32>
      %21 = vector.multi_reduction <add>, %20, %cst_16 [1] : vector<16x128xf32> to vector<16xf32>
      %22 = vector.shape_cast %21 : vector<16xf32> to vector<16x1xf32>
      %cst_17 = arith.constant 1.270000e+02 : f32
      %23 = vector.broadcast %cst_17 : f32 to vector<16x1xf32>
      %24 = arith.divf %22, %23 : vector<16x1xf32>
      %25 = math.sqrt %24 : vector<16x1xf32>
      %26 = vector.broadcast %12 : vector<1x128xf32> to vector<16x128xf32>
      %27 = arith.mulf %26, %19 : vector<16x128xf32>
      %cst_18 = arith.constant 9.99999997E-7 : f32
      %28 = vector.broadcast %cst_18 : f32 to vector<16x1xf32>
      %29 = arith.addf %25, %28 : vector<16x1xf32>
      %30 = vector.broadcast %29 : vector<16x1xf32> to vector<16x128xf32>
      %31 = arith.divf %27, %30 : vector<16x128xf32>
      %32 = vector.broadcast %13 : vector<1x128xf32> to vector<16x128xf32>
      %33 = arith.addf %31, %32 : vector<16x128xf32>
      %34 = arith.truncf %33 : vector<16x128xf32> to vector<16x128xbf16>
      %c0_19 = arith.constant 0 : index
      %c0_20 = arith.constant 0 : index
      %35 = vector.load %arg8[%c0_19, %c0_20] : memref<16x128xbf16, #tpu.memory_space<vmem>>, vector<16x128xbf16>
      tpu.vector_store %arg8[%c0_19, %c0_20], %34 {strides = array<i32>} : memref<16x128xbf16, #tpu.memory_space<vmem>>, vector<16x128xbf16>,
    } else {
    }
    %c0 = arith.constant 0 : index
    %c0_1 = arith.constant 0 : index
    %3 = vector.load %arg8[%c0, %c0_1] : memref<16x128xbf16, #tpu.memory_space<vmem>>, vector<16x128xbf16>
    %c0_2 = arith.constant 0 : index
    %c0_3 = arith.constant 0 : index
    %4 = vector.load %arg5[%c0_2, %c0_3] : memref<128x128xbf16, #tpu.memory_space<vmem>>, vector<128x128xbf16>
    %cst = arith.constant dense<0.000000e+00> : vector<16x128xf32>
    %5 = tpu.matmul %3, %4, %cst {dimension_numbers = #tpu.dot_dimension_numbers<[1], [0], [0], [1], [0, 0, 1, 1], [], []>} : vector<16x128xbf16>, vector<128x128xbf16>, vector<16x128xf32> -> vector<16x128xf32>
    %c0_4 = arith.constant 0 : index
    %c0_5 = arith.constant 0 : index
    %6 = vector.load %arg6[%c0_4, %c0_5] : memref<1x128xf32, #tpu.memory_space<vmem>>, vector<1x128xf32>
    %7 = vector.broadcast %6 : vector<1x128xf32> to vector<16x128xf32>
    %8 = arith.addf %5, %7 : vector<16x128xf32>
    %9 = arith.truncf %8 : vector<16x128xf32> to vector<16x128xbf16>
    %c0_6 = arith.constant 0 : index
    %c0_7 = arith.constant 0 : index
    %10 = vector.load %arg7[%c0_6, %c0_7] : memref<16x128xbf16, #tpu.memory_space<vmem>>, vector<16x128xbf16>
    tpu.vector_store %arg7[%c0_6, %c0_7], %9 {strides = array<i32>} : memref<16x128xbf16, #tpu.memory_space<vmem>>, vector<16x128xbf16>,
    return
  }
  func.func @transform_0(%arg0: i32, %arg1: i32) -> (i32, i32) {
    %c0_i32 = arith.constant 0 : i32
    %c0_i32_0 = arith.constant 0 : i32
    return %arg0, %c0_i32 : i32, i32
  }
  func.func @transform_1(%arg0: i32, %arg1: i32) -> (i32, i32) {
    %c0_i32 = arith.constant 0 : i32
    %c0_i32_0 = arith.constant 0 : i32
    %c0_i32_1 = arith.constant 0 : i32
    return %c0_i32, %c0_i32_0 : i32, i32
  }
  func.func @transform_2(%arg0: i32, %arg1: i32) -> (i32, i32) {
    %c0_i32 = arith.constant 0 : i32
    %c0_i32_0 = arith.constant 0 : i32
    %c0_i32_1 = arith.constant 0 : i32
    return %c0_i32, %c0_i32_0 : i32, i32
  }
  func.func @transform_3(%arg0: i32, %arg1: i32) -> (i32, i32) {
    %c0_i32 = arith.constant 0 : i32
    %c0_i32_0 = arith.constant 0 : i32
    return %c0_i32, %arg1 : i32, i32
  }
  func.func @transform_4(%arg0: i32, %arg1: i32) -> (i32, i32) {
    %c0_i32 = arith.constant 0 : i32
    %c0_i32_0 = arith.constant 0 : i32
    return %c0_i32, %arg1 : i32, i32
  }
  func.func @transform_5(%arg0: i32, %arg1: i32) -> (i32, i32) {
    %c0_i32 = arith.constant 0 : i32
    return %arg0, %arg1 : i32, i32
  }
}

module attributes {stable_mosaic.version = 11 : i64} {
  func.func @_linear_kernel(%arg0: i32, %arg1: i32, %arg2: memref<16x128xbf16, #tpu.memory_space<vmem>>, %arg3: memref<128x256xbf16, #tpu.memory_space<vmem>>, %arg4: memref<1x256xf32, #tpu.memory_space<vmem>>, %arg5: memref<16x256xbf16, #tpu.memory_space<vmem>>) attributes {dimension_semantics = [#tpu.dimension_semantics<parallel>, #tpu.dimension_semantics<parallel>], iteration_bounds = array<i64: 1, 1>, scalar_prefetch = 0 : i64, scratch_operands = 0 : i64, tpu.core_type = #tpu.core_type<tc>, window_params = [{transform_indices = @transform_0, window_bounds = array<i64: 16, 128>}, {transform_indices = @transform_1, window_bounds = array<i64: 128, 256>}, {transform_indices = @transform_2, window_bounds = array<i64: 1, 256>}, {transform_indices = @transform_3, window_bounds = array<i64: 16, 256>}]} {
    %c0 = arith.constant 0 : index
    %c0_0 = arith.constant 0 : index
    %0 = vector.load %arg2[%c0, %c0_0] : memref<16x128xbf16, #tpu.memory_space<vmem>>, vector<16x128xbf16>
    %c0_1 = arith.constant 0 : index
    %c0_2 = arith.constant 0 : index
    %1 = vector.load %arg3[%c0_1, %c0_2] : memref<128x256xbf16, #tpu.memory_space<vmem>>, vector<128x256xbf16>
    %cst = arith.constant dense<0.000000e+00> : vector<16x256xf32>
    %2 = tpu.matmul %0, %1, %cst {dimension_numbers = #tpu.dot_dimension_numbers<[1], [0], [0], [1], [0, 0, 1, 1], [], []>} : vector<16x128xbf16>, vector<128x256xbf16>, vector<16x256xf32> -> vector<16x256xf32>
    %c0_3 = arith.constant 0 : index
    %c0_4 = arith.constant 0 : index
    %3 = vector.load %arg4[%c0_3, %c0_4] : memref<1x256xf32, #tpu.memory_space<vmem>>, vector<1x256xf32>
    %4 = vector.broadcast %3 : vector<1x256xf32> to vector<16x256xf32>
    %5 = arith.addf %2, %4 : vector<16x256xf32>
    %6 = arith.truncf %5 : vector<16x256xf32> to vector<16x256xbf16>
    %c0_5 = arith.constant 0 : index
    %c0_6 = arith.constant 0 : index
    %7 = vector.load %arg5[%c0_5, %c0_6] : memref<16x256xbf16, #tpu.memory_space<vmem>>, vector<16x256xbf16>
    tpu.vector_store %arg5[%c0_5, %c0_6], %6 {strides = array<i32>} : memref<16x256xbf16, #tpu.memory_space<vmem>>, vector<16x256xbf16>,
    return
  }
  func.func @transform_0(%arg0: i32, %arg1: i32) -> (i32, i32) {
    %c0_i32 = arith.constant 0 : i32
    %c0_i32_0 = arith.constant 0 : i32
    return %arg0, %c0_i32 : i32, i32
  }
  func.func @transform_1(%arg0: i32, %arg1: i32) -> (i32, i32) {
    %c0_i32 = arith.constant 0 : i32
    %c0_i32_0 = arith.constant 0 : i32
    return %c0_i32, %arg1 : i32, i32
  }
  func.func @transform_2(%arg0: i32, %arg1: i32) -> (i32, i32) {
    %c0_i32 = arith.constant 0 : i32
    %c0_i32_0 = arith.constant 0 : i32
    return %c0_i32, %arg1 : i32, i32
  }
  func.func @transform_3(%arg0: i32, %arg1: i32) -> (i32, i32) {
    %c0_i32 = arith.constant 0 : i32
    return %arg0, %arg1 : i32, i32
  }
}

module attributes {stable_mosaic.version = 11 : i64} {
  func.func @_ln_ffn_kernel(%arg0: i32, %arg1: i32, %arg2: memref<16x128xf32, #tpu.memory_space<vmem>>, %arg3: memref<1x128xf32, #tpu.memory_space<vmem>>, %arg4: memref<1x128xf32, #tpu.memory_space<vmem>>, %arg5: memref<128x256xbf16, #tpu.memory_space<vmem>>, %arg6: memref<1x256xf32, #tpu.memory_space<vmem>>, %arg7: memref<256x128xbf16, #tpu.memory_space<vmem>>, %arg8: memref<1x128xf32, #tpu.memory_space<vmem>>, %arg9: memref<16x128xf32, #tpu.memory_space<vmem>>, %arg10: memref<16x128xbf16, #tpu.memory_space<vmem>>, %arg11: memref<16x128xf32, #tpu.memory_space<vmem>>) attributes {dimension_semantics = [#tpu.dimension_semantics<parallel>, #tpu.dimension_semantics<arbitrary>], iteration_bounds = array<i64: 1, 1>, scalar_prefetch = 0 : i64, scratch_operands = 2 : i64, tpu.core_type = #tpu.core_type<tc>, window_params = [{transform_indices = @transform_0, window_bounds = array<i64: 16, 128>}, {pipeline_mode = #tpu.pipeline_mode<synchronous>, transform_indices = @transform_1, window_bounds = array<i64: 1, 128>}, {pipeline_mode = #tpu.pipeline_mode<synchronous>, transform_indices = @transform_2, window_bounds = array<i64: 1, 128>}, {transform_indices = @transform_3, window_bounds = array<i64: 128, 256>}, {transform_indices = @transform_4, window_bounds = array<i64: 1, 256>}, {transform_indices = @transform_5, window_bounds = array<i64: 256, 128>}, {pipeline_mode = #tpu.pipeline_mode<synchronous>, transform_indices = @transform_6, window_bounds = array<i64: 1, 128>}, {transform_indices = @transform_7, window_bounds = array<i64: 16, 128>}]} {
    %c0_i32 = arith.constant 0 : i32
    %0 = arith.cmpi eq, %arg1, %c0_i32 : i32
    %1 = arith.extui %0 : i1 to i32
    %c0_i32_0 = arith.constant 0 : i32
    %2 = arith.cmpi ne, %1, %c0_i32_0 : i32
    scf.if %2 {
      %c0_16 = arith.constant 0 : index
      %c0_17 = arith.constant 0 : index
      %20 = vector.load %arg2[%c0_16, %c0_17] : memref<16x128xf32, #tpu.memory_space<vmem>>, vector<16x128xf32>
      %c0_18 = arith.constant 0 : index
      %c0_19 = arith.constant 0 : index
      %21 = vector.load %arg3[%c0_18, %c0_19] : memref<1x128xf32, #tpu.memory_space<vmem>>, vector<1x128xf32>
      %c0_20 = arith.constant 0 : index
      %c0_21 = arith.constant 0 : index
      %22 = vector.load %arg4[%c0_20, %c0_21] : memref<1x128xf32, #tpu.memory_space<vmem>>, vector<1x128xf32>
      %cst_22 = arith.constant dense<0.000000e+00> : vector<16xf32>
      %23 = vector.multi_reduction <add>, %20, %cst_22 [1] : vector<16x128xf32> to vector<16xf32>
      %24 = vector.shape_cast %23 : vector<16xf32> to vector<16x1xf32>
      %cst_23 = arith.constant 1.280000e+02 : f32
      %25 = vector.broadcast %cst_23 : f32 to vector<16x1xf32>
      %26 = arith.divf %24, %25 : vector<16x1xf32>
      %27 = vector.broadcast %26 : vector<16x1xf32> to vector<16x128xf32>
      %28 = arith.subf %20, %27 : vector<16x128xf32>
      %29 = arith.mulf %28, %28 : vector<16x128xf32>
      %cst_24 = arith.constant dense<0.000000e+00> : vector<16xf32>
      %30 = vector.multi_reduction <add>, %29, %cst_24 [1] : vector<16x128xf32> to vector<16xf32>
      %31 = vector.shape_cast %30 : vector<16xf32> to vector<16x1xf32>
      %cst_25 = arith.constant 1.270000e+02 : f32
      %32 = vector.broadcast %cst_25 : f32 to vector<16x1xf32>
      %33 = arith.divf %31, %32 : vector<16x1xf32>
      %34 = math.sqrt %33 : vector<16x1xf32>
      %35 = vector.broadcast %21 : vector<1x128xf32> to vector<16x128xf32>
      %36 = arith.mulf %35, %28 : vector<16x128xf32>
      %cst_26 = arith.constant 9.99999997E-7 : f32
      %37 = vector.broadcast %cst_26 : f32 to vector<16x1xf32>
      %38 = arith.addf %34, %37 : vector<16x1xf32>
      %39 = vector.broadcast %38 : vector<16x1xf32> to vector<16x128xf32>
      %40 = arith.divf %36, %39 : vector<16x128xf32>
      %41 = vector.broadcast %22 : vector<1x128xf32> to vector<16x128xf32>
      %42 = arith.addf %40, %41 : vector<16x128xf32>
      %43 = arith.truncf %42 : vector<16x128xf32> to vector<16x128xbf16>
      %c0_27 = arith.constant 0 : index
      %c0_28 = arith.constant 0 : index
      %44 = vector.load %arg10[%c0_27, %c0_28] : memref<16x128xbf16, #tpu.memory_space<vmem>>, vector<16x128xbf16>
      tpu.vector_store %arg10[%c0_27, %c0_28], %43 {strides = array<i32>} : memref<16x128xbf16, #tpu.memory_space<vmem>>, vector<16x128xbf16>,
      %cst_29 = arith.constant 0.000000e+00 : f32
      %45 = vector.broadcast %cst_29 : f32 to vector<16x128xf32>
      %c0_30 = arith.constant 0 : index
      %c0_31 = arith.constant 0 : index
      %46 = vector.load %arg11[%c0_30, %c0_31] : memref<16x128xf32, #tpu.memory_space<vmem>>, vector<16x128xf32>
      tpu.vector_store %arg11[%c0_30, %c0_31], %45 {strides = array<i32>} : memref<16x128xf32, #tpu.memory_space<vmem>>, vector<16x128xf32>,
    } else {
    }
    %c0 = arith.constant 0 : index
    %c0_1 = arith.constant 0 : index
    %3 = vector.load %arg10[%c0, %c0_1] : memref<16x128xbf16, #tpu.memory_space<vmem>>, vector<16x128xbf16>
    %c0_2 = arith.constant 0 : index
    %c0_3 = arith.constant 0 : index
    %4 = vector.load %arg5[%c0_2, %c0_3] : memref<128x256xbf16, #tpu.memory_space<vmem>>, vector<128x256xbf16>
    %cst = arith.constant dense<0.000000e+00> : vector<16x256xf32>
    %5 = tpu.matmul %3, %4, %cst {dimension_numbers = #tpu.dot_dimension_numbers<[1], [0], [0], [1], [0, 0, 1, 1], [], []>} : vector<16x128xbf16>, vector<128x256xbf16>, vector<16x256xf32> -> vector<16x256xf32>
    %c0_4 = arith.constant 0 : index
    %c0_5 = arith.constant 0 : index
    %6 = vector.load %arg6[%c0_4, %c0_5] : memref<1x256xf32, #tpu.memory_space<vmem>>, vector<1x256xf32>
    %7 = vector.broadcast %6 : vector<1x256xf32> to vector<16x256xf32>
    %8 = arith.addf %5, %7 : vector<16x256xf32>
    %cst_6 = arith.constant 0.000000e+00 : f32
    %9 = vector.broadcast %cst_6 : f32 to vector<16x256xf32>
    %10 = arith.maximumf %8, %9 : vector<16x256xf32>
    %c0_7 = arith.constant 0 : index
    %c0_8 = arith.constant 0 : index
    %11 = vector.load %arg11[%c0_7, %c0_8] : memref<16x128xf32, #tpu.memory_space<vmem>>, vector<16x128xf32>
    %12 = arith.truncf %10 : vector<16x256xf32> to vector<16x256xbf16>
    %c0_9 = arith.constant 0 : index
    %c0_10 = arith.constant 0 : index
    %13 = vector.load %arg7[%c0_9, %c0_10] : memref<256x128xbf16, #tpu.memory_space<vmem>>, vector<256x128xbf16>
    %cst_11 = arith.constant dense<0.000000e+00> : vector<16x128xf32>
    %14 = tpu.matmul %12, %13, %cst_11 {dimension_numbers = #tpu.dot_dimension_numbers<[1], [0], [0], [1], [0, 0, 1, 1], [], []>} : vector<16x256xbf16>, vector<256x128xbf16>, vector<16x128xf32> -> vector<16x128xf32>
    %15 = arith.addf %11, %14 : vector<16x128xf32>
    %c0_12 = arith.constant 0 : index
    %c0_13 = arith.constant 0 : index
    %16 = vector.load %arg11[%c0_12, %c0_13] : memref<16x128xf32, #tpu.memory_space<vmem>>, vector<16x128xf32>
    tpu.vector_store %arg11[%c0_12, %c0_13], %15 {strides = array<i32>} : memref<16x128xf32, #tpu.memory_space<vmem>>, vector<16x128xf32>,
    %c0_i32_14 = arith.constant 0 : i32
    %17 = arith.cmpi eq, %arg1, %c0_i32_14 : i32
    %18 = arith.extui %17 : i1 to i32
    %c0_i32_15 = arith.constant 0 : i32
    %19 = arith.cmpi ne, %18, %c0_i32_15 : i32
    scf.if %19 {
      %c0_16 = arith.constant 0 : index
      %c0_17 = arith.constant 0 : index
      %20 = vector.load %arg2[%c0_16, %c0_17] : memref<16x128xf32, #tpu.memory_space<vmem>>, vector<16x128xf32>
      %c0_18 = arith.constant 0 : index
      %c0_19 = arith.constant 0 : index
      %21 = vector.load %arg11[%c0_18, %c0_19] : memref<16x128xf32, #tpu.memory_space<vmem>>, vector<16x128xf32>
      %22 = arith.addf %20, %21 : vector<16x128xf32>
      %c0_20 = arith.constant 0 : index
      %c0_21 = arith.constant 0 : index
      %23 = vector.load %arg8[%c0_20, %c0_21] : memref<1x128xf32, #tpu.memory_space<vmem>>, vector<1x128xf32>
      %24 = vector.broadcast %23 : vector<1x128xf32> to vector<16x128xf32>
      %25 = arith.addf %22, %24 : vector<16x128xf32>
      %c0_22 = arith.constant 0 : index
      %c0_23 = arith.constant 0 : index
      %26 = vector.load %arg9[%c0_22, %c0_23] : memref<16x128xf32, #tpu.memory_space<vmem>>, vector<16x128xf32>
      tpu.vector_store %arg9[%c0_22, %c0_23], %25 {strides = array<i32>} : memref<16x128xf32, #tpu.memory_space<vmem>>, vector<16x128xf32>,
    } else {
    }
    return
  }
  func.func @transform_0(%arg0: i32, %arg1: i32) -> (i32, i32) {
    %c0_i32 = arith.constant 0 : i32
    %c0_i32_0 = arith.constant 0 : i32
    return %arg0, %c0_i32 : i32, i32
  }
  func.func @transform_1(%arg0: i32, %arg1: i32) -> (i32, i32) {
    %c0_i32 = arith.constant 0 : i32
    %c0_i32_0 = arith.constant 0 : i32
    %c0_i32_1 = arith.constant 0 : i32
    return %c0_i32, %c0_i32_0 : i32, i32
  }
  func.func @transform_2(%arg0: i32, %arg1: i32) -> (i32, i32) {
    %c0_i32 = arith.constant 0 : i32
    %c0_i32_0 = arith.constant 0 : i32
    %c0_i32_1 = arith.constant 0 : i32
    return %c0_i32, %c0_i32_0 : i32, i32
  }
  func.func @transform_3(%arg0: i32, %arg1: i32) -> (i32, i32) {
    %c0_i32 = arith.constant 0 : i32
    %c0_i32_0 = arith.constant 0 : i32
    return %c0_i32, %arg1 : i32, i32
  }
  func.func @transform_4(%arg0: i32, %arg1: i32) -> (i32, i32) {
    %c0_i32 = arith.constant 0 : i32
    %c0_i32_0 = arith.constant 0 : i32
    return %c0_i32, %arg1 : i32, i32
  }
  func.func @transform_5(%arg0: i32, %arg1: i32) -> (i32, i32) {
    %c0_i32 = arith.constant 0 : i32
    %c0_i32_0 = arith.constant 0 : i32
    return %arg1, %c0_i32 : i32, i32
  }
  func.func @transform_6(%arg0: i32, %arg1: i32) -> (i32, i32) {
    %c0_i32 = arith.constant 0 : i32
    %c0_i32_0 = arith.constant 0 : i32
    %c0_i32_1 = arith.constant 0 : i32
    return %c0_i32, %c0_i32_0 : i32, i32
  }
  func.func @transform_7(%arg0: i32, %arg1: i32) -> (i32, i32) {
    %c0_i32 = arith.constant 0 : i32
    %c0_i32_0 = arith.constant 0 : i32
    return %arg0, %c0_i32 : i32, i32
  }
}

module attributes {stable_mosaic.version = 11 : i64} {
  func.func @_ln_linear_kernel(%arg0: i32, %arg1: i32, %arg2: memref<16x128xf32, #tpu.memory_space<vmem>>, %arg3: memref<1x128xf32, #tpu.memory_space<vmem>>, %arg4: memref<1x128xf32, #tpu.memory_space<vmem>>, %arg5: memref<128x128xbf16, #tpu.memory_space<vmem>>, %arg6: memref<1x128xf32, #tpu.memory_space<vmem>>, %arg7: memref<16x128xbf16, #tpu.memory_space<vmem>>, %arg8: memref<16x128xbf16, #tpu.memory_space<vmem>>) attributes {dimension_semantics = [#tpu.dimension_semantics<parallel>, #tpu.dimension_semantics<arbitrary>], iteration_bounds = array<i64: 1, 3>, scalar_prefetch = 0 : i64, scratch_operands = 1 : i64, tpu.core_type = #tpu.core_type<tc>, window_params = [{transform_indices = @transform_0, window_bounds = array<i64: 16, 128>}, {pipeline_mode = #tpu.pipeline_mode<synchronous>, transform_indices = @transform_1, window_bounds = array<i64: 1, 128>}, {pipeline_mode = #tpu.pipeline_mode<synchronous>, transform_indices = @transform_2, window_bounds = array<i64: 1, 128>}, {transform_indices = @transform_3, window_bounds = array<i64: 128, 128>}, {transform_indices = @transform_4, window_bounds = array<i64: 1, 128>}, {transform_indices = @transform_5, window_bounds = array<i64: 16, 128>}]} {
    %c0_i32 = arith.constant 0 : i32
    %0 = arith.cmpi eq, %arg1, %c0_i32 : i32
    %1 = arith.extui %0 : i1 to i32
    %c0_i32_0 = arith.constant 0 : i32
    %2 = arith.cmpi ne, %1, %c0_i32_0 : i32
    scf.if %2 {
      %c0_8 = arith.constant 0 : index
      %c0_9 = arith.constant 0 : index
      %11 = vector.load %arg2[%c0_8, %c0_9] : memref<16x128xf32, #tpu.memory_space<vmem>>, vector<16x128xf32>
      %c0_10 = arith.constant 0 : index
      %c0_11 = arith.constant 0 : index
      %12 = vector.load %arg3[%c0_10, %c0_11] : memref<1x128xf32, #tpu.memory_space<vmem>>, vector<1x128xf32>
      %c0_12 = arith.constant 0 : index
      %c0_13 = arith.constant 0 : index
      %13 = vector.load %arg4[%c0_12, %c0_13] : memref<1x128xf32, #tpu.memory_space<vmem>>, vector<1x128xf32>
      %cst_14 = arith.constant dense<0.000000e+00> : vector<16xf32>
      %14 = vector.multi_reduction <add>, %11, %cst_14 [1] : vector<16x128xf32> to vector<16xf32>
      %15 = vector.shape_cast %14 : vector<16xf32> to vector<16x1xf32>
      %cst_15 = arith.constant 1.280000e+02 : f32
      %16 = vector.broadcast %cst_15 : f32 to vector<16x1xf32>
      %17 = arith.divf %15, %16 : vector<16x1xf32>
      %18 = vector.broadcast %17 : vector<16x1xf32> to vector<16x128xf32>
      %19 = arith.subf %11, %18 : vector<16x128xf32>
      %20 = arith.mulf %19, %19 : vector<16x128xf32>
      %cst_16 = arith.constant dense<0.000000e+00> : vector<16xf32>
      %21 = vector.multi_reduction <add>, %20, %cst_16 [1] : vector<16x128xf32> to vector<16xf32>
      %22 = vector.shape_cast %21 : vector<16xf32> to vector<16x1xf32>
      %cst_17 = arith.constant 1.270000e+02 : f32
      %23 = vector.broadcast %cst_17 : f32 to vector<16x1xf32>
      %24 = arith.divf %22, %23 : vector<16x1xf32>
      %25 = math.sqrt %24 : vector<16x1xf32>
      %26 = vector.broadcast %12 : vector<1x128xf32> to vector<16x128xf32>
      %27 = arith.mulf %26, %19 : vector<16x128xf32>
      %cst_18 = arith.constant 9.99999997E-7 : f32
      %28 = vector.broadcast %cst_18 : f32 to vector<16x1xf32>
      %29 = arith.addf %25, %28 : vector<16x1xf32>
      %30 = vector.broadcast %29 : vector<16x1xf32> to vector<16x128xf32>
      %31 = arith.divf %27, %30 : vector<16x128xf32>
      %32 = vector.broadcast %13 : vector<1x128xf32> to vector<16x128xf32>
      %33 = arith.addf %31, %32 : vector<16x128xf32>
      %34 = arith.truncf %33 : vector<16x128xf32> to vector<16x128xbf16>
      %c0_19 = arith.constant 0 : index
      %c0_20 = arith.constant 0 : index
      %35 = vector.load %arg8[%c0_19, %c0_20] : memref<16x128xbf16, #tpu.memory_space<vmem>>, vector<16x128xbf16>
      tpu.vector_store %arg8[%c0_19, %c0_20], %34 {strides = array<i32>} : memref<16x128xbf16, #tpu.memory_space<vmem>>, vector<16x128xbf16>,
    } else {
    }
    %c0 = arith.constant 0 : index
    %c0_1 = arith.constant 0 : index
    %3 = vector.load %arg8[%c0, %c0_1] : memref<16x128xbf16, #tpu.memory_space<vmem>>, vector<16x128xbf16>
    %c0_2 = arith.constant 0 : index
    %c0_3 = arith.constant 0 : index
    %4 = vector.load %arg5[%c0_2, %c0_3] : memref<128x128xbf16, #tpu.memory_space<vmem>>, vector<128x128xbf16>
    %cst = arith.constant dense<0.000000e+00> : vector<16x128xf32>
    %5 = tpu.matmul %3, %4, %cst {dimension_numbers = #tpu.dot_dimension_numbers<[1], [0], [0], [1], [0, 0, 1, 1], [], []>} : vector<16x128xbf16>, vector<128x128xbf16>, vector<16x128xf32> -> vector<16x128xf32>
    %c0_4 = arith.constant 0 : index
    %c0_5 = arith.constant 0 : index
    %6 = vector.load %arg6[%c0_4, %c0_5] : memref<1x128xf32, #tpu.memory_space<vmem>>, vector<1x128xf32>
    %7 = vector.broadcast %6 : vector<1x128xf32> to vector<16x128xf32>
    %8 = arith.addf %5, %7 : vector<16x128xf32>
    %9 = arith.truncf %8 : vector<16x128xf32> to vector<16x128xbf16>
    %c0_6 = arith.constant 0 : index
    %c0_7 = arith.constant 0 : index
    %10 = vector.load %arg7[%c0_6, %c0_7] : memref<16x128xbf16, #tpu.memory_space<vmem>>, vector<16x128xbf16>
    tpu.vector_store %arg7[%c0_6, %c0_7], %9 {strides = array<i32>} : memref<16x128xbf16, #tpu.memory_space<vmem>>, vector<16x128xbf16>,
    return
  }
  func.func @transform_0(%arg0: i32, %arg1: i32) -> (i32, i32) {
    %c0_i32 = arith.constant 0 : i32
    %c0_i32_0 = arith.constant 0 : i32
    return %arg0, %c0_i32 : i32, i32
  }
  func.func @transform_1(%arg0: i32, %arg1: i32) -> (i32, i32) {
    %c0_i32 = arith.constant 0 : i32
    %c0_i32_0 = arith.constant 0 : i32
    %c0_i32_1 = arith.constant 0 : i32
    return %c0_i32, %c0_i32_0 : i32, i32
  }
  func.func @transform_2(%arg0: i32, %arg1: i32) -> (i32, i32) {
    %c0_i32 = arith.constant 0 : i32
    %c0_i32_0 = arith.constant 0 : i32
    %c0_i32_1 = arith.constant 0 : i32
    return %c0_i32, %c0_i32_0 : i32, i32
  }
  func.func @transform_3(%arg0: i32, %arg1: i32) -> (i32, i32) {
    %c0_i32 = arith.constant 0 : i32
    %c0_i32_0 = arith.constant 0 : i32
    return %c0_i32, %arg1 : i32, i32
  }
  func.func @transform_4(%arg0: i32, %arg1: i32) -> (i32, i32) {
    %c0_i32 = arith.constant 0 : i32
    %c0_i32_0 = arith.constant 0 : i32
    return %c0_i32, %arg1 : i32, i32
  }
  func.func @transform_5(%arg0: i32, %arg1: i32) -> (i32, i32) {
    %c0_i32 = arith.constant 0 : i32
    return %arg0, %arg1 : i32, i32
  }
}

module attributes {stable_mosaic.version = 11 : i64} {
  func.func @_layernorm_kernel(%arg0: i32, %arg1: memref<16x128xf32, #tpu.memory_space<vmem>>, %arg2: memref<1x128xf32, #tpu.memory_space<vmem>>, %arg3: memref<1x128xf32, #tpu.memory_space<vmem>>, %arg4: memref<16x128xf32, #tpu.memory_space<vmem>>) attributes {dimension_semantics = [#tpu.dimension_semantics<parallel>], iteration_bounds = array<i64: 1>, scalar_prefetch = 0 : i64, scratch_operands = 0 : i64, tpu.core_type = #tpu.core_type<tc>, window_params = [{transform_indices = @transform_0, window_bounds = array<i64: 16, 128>}, {pipeline_mode = #tpu.pipeline_mode<synchronous>, transform_indices = @transform_1, window_bounds = array<i64: 1, 128>}, {pipeline_mode = #tpu.pipeline_mode<synchronous>, transform_indices = @transform_2, window_bounds = array<i64: 1, 128>}, {transform_indices = @transform_3, window_bounds = array<i64: 16, 128>}]} {
    %c0 = arith.constant 0 : index
    %c0_0 = arith.constant 0 : index
    %0 = vector.load %arg1[%c0, %c0_0] : memref<16x128xf32, #tpu.memory_space<vmem>>, vector<16x128xf32>
    %c0_1 = arith.constant 0 : index
    %c0_2 = arith.constant 0 : index
    %1 = vector.load %arg2[%c0_1, %c0_2] : memref<1x128xf32, #tpu.memory_space<vmem>>, vector<1x128xf32>
    %c0_3 = arith.constant 0 : index
    %c0_4 = arith.constant 0 : index
    %2 = vector.load %arg3[%c0_3, %c0_4] : memref<1x128xf32, #tpu.memory_space<vmem>>, vector<1x128xf32>
    %cst = arith.constant dense<0.000000e+00> : vector<16xf32>
    %3 = vector.multi_reduction <add>, %0, %cst [1] : vector<16x128xf32> to vector<16xf32>
    %4 = vector.shape_cast %3 : vector<16xf32> to vector<16x1xf32>
    %cst_5 = arith.constant 1.280000e+02 : f32
    %5 = vector.broadcast %cst_5 : f32 to vector<16x1xf32>
    %6 = arith.divf %4, %5 : vector<16x1xf32>
    %7 = vector.broadcast %6 : vector<16x1xf32> to vector<16x128xf32>
    %8 = arith.subf %0, %7 : vector<16x128xf32>
    %9 = arith.mulf %8, %8 : vector<16x128xf32>
    %cst_6 = arith.constant dense<0.000000e+00> : vector<16xf32>
    %10 = vector.multi_reduction <add>, %9, %cst_6 [1] : vector<16x128xf32> to vector<16xf32>
    %11 = vector.shape_cast %10 : vector<16xf32> to vector<16x1xf32>
    %cst_7 = arith.constant 1.270000e+02 : f32
    %12 = vector.broadcast %cst_7 : f32 to vector<16x1xf32>
    %13 = arith.divf %11, %12 : vector<16x1xf32>
    %14 = math.sqrt %13 : vector<16x1xf32>
    %15 = vector.broadcast %1 : vector<1x128xf32> to vector<16x128xf32>
    %16 = arith.mulf %15, %8 : vector<16x128xf32>
    %cst_8 = arith.constant 9.99999997E-7 : f32
    %17 = vector.broadcast %cst_8 : f32 to vector<16x1xf32>
    %18 = arith.addf %14, %17 : vector<16x1xf32>
    %19 = vector.broadcast %18 : vector<16x1xf32> to vector<16x128xf32>
    %20 = arith.divf %16, %19 : vector<16x128xf32>
    %21 = vector.broadcast %2 : vector<1x128xf32> to vector<16x128xf32>
    %22 = arith.addf %20, %21 : vector<16x128xf32>
    %c0_9 = arith.constant 0 : index
    %c0_10 = arith.constant 0 : index
    %23 = vector.load %arg4[%c0_9, %c0_10] : memref<16x128xf32, #tpu.memory_space<vmem>>, vector<16x128xf32>
    tpu.vector_store %arg4[%c0_9, %c0_10], %22 {strides = array<i32>} : memref<16x128xf32, #tpu.memory_space<vmem>>, vector<16x128xf32>,
    return
  }
  func.func @transform_0(%arg0: i32) -> (i32, i32) {
    %c0_i32 = arith.constant 0 : i32
    %c0_i32_0 = arith.constant 0 : i32
    return %arg0, %c0_i32 : i32, i32
  }
  func.func @transform_1(%arg0: i32) -> (i32, i32) {
    %c0_i32 = arith.constant 0 : i32
    %c0_i32_0 = arith.constant 0 : i32
    %c0_i32_1 = arith.constant 0 : i32
    return %c0_i32, %c0_i32_0 : i32, i32
  }
  func.func @transform_2(%arg0: i32) -> (i32, i32) {
    %c0_i32 = arith.constant 0 : i32
    %c0_i32_0 = arith.constant 0 : i32
    %c0_i32_1 = arith.constant 0 : i32
    return %c0_i32, %c0_i32_0 : i32, i32
  }
  func.func @transform_3(%arg0: i32) -> (i32, i32) {
    %c0_i32 = arith.constant 0 : i32
    %c0_i32_0 = arith.constant 0 : i32
    return %arg0, %c0_i32 : i32, i32
  }
}

module attributes {stable_mosaic.version = 11 : i64} {
  func.func @_attention_kernel(%arg0: i32, %arg1: memref<1x8x128xbf16, #tpu.memory_space<vmem>>, %arg2: memref<1x8x128xbf16, #tpu.memory_space<vmem>>, %arg3: memref<1x8x128xbf16, #tpu.memory_space<vmem>>, %arg4: memref<1x1x8xf32, #tpu.memory_space<vmem>>, %arg5: memref<128x128xbf16, #tpu.memory_space<vmem>>, %arg6: memref<1x128xf32, #tpu.memory_space<vmem>>, %arg7: memref<1x8x128xf32, #tpu.memory_space<vmem>>, %arg8: memref<1x8x128xf32, #tpu.memory_space<vmem>>) attributes {dimension_semantics = [#tpu.dimension_semantics<parallel>], iteration_bounds = array<i64: 2>, scalar_prefetch = 0 : i64, scratch_operands = 0 : i64, tpu.core_type = #tpu.core_type<tc>, window_params = [{transform_indices = @transform_0, window_bounds = array<i64: 1, 8, 128>}, {transform_indices = @transform_1, window_bounds = array<i64: 1, 8, 128>}, {transform_indices = @transform_2, window_bounds = array<i64: 1, 8, 128>}, {transform_indices = @transform_3, window_bounds = array<i64: 1, 1, 8>}, {pipeline_mode = #tpu.pipeline_mode<synchronous>, transform_indices = @transform_4, window_bounds = array<i64: 128, 128>}, {pipeline_mode = #tpu.pipeline_mode<synchronous>, transform_indices = @transform_5, window_bounds = array<i64: 1, 128>}, {transform_indices = @transform_6, window_bounds = array<i64: 1, 8, 128>}, {transform_indices = @transform_7, window_bounds = array<i64: 1, 8, 128>}]} {
    %c0 = arith.constant 0 : index
    %c0_0 = arith.constant 0 : index
    %c0_1 = arith.constant 0 : index
    %0 = vector.load %arg1[%c0, %c0_0, %c0_1] : memref<1x8x128xbf16, #tpu.memory_space<vmem>>, vector<1x8x128xbf16>
    %1 = vector.shape_cast %0 : vector<1x8x128xbf16> to vector<8x128xbf16>
    %c0_2 = arith.constant 0 : index
    %c0_3 = arith.constant 0 : index
    %c0_4 = arith.constant 0 : index
    %2 = vector.load %arg2[%c0_2, %c0_3, %c0_4] : memref<1x8x128xbf16, #tpu.memory_space<vmem>>, vector<1x8x128xbf16>
    %3 = vector.shape_cast %2 : vector<1x8x128xbf16> to vector<8x128xbf16>
    %c0_5 = arith.constant 0 : index
    %c0_6 = arith.constant 0 : index
    %c0_7 = arith.constant 0 : index
    %4 = vector.load %arg3[%c0_5, %c0_6, %c0_7] : memref<1x8x128xbf16, #tpu.memory_space<vmem>>, vector<1x8x128xbf16>
    %5 = vector.shape_cast %4 : vector<1x8x128xbf16> to vector<8x128xbf16>
    %c0_8 = arith.constant 0 : index
    %c0_9 = arith.constant 0 : index
    %c0_10 = arith.constant 0 : index
    %6 = vector.load %arg4[%c0_8, %c0_9, %c0_10] : memref<1x1x8xf32, #tpu.memory_space<vmem>>, vector<1x1x8xf32>
    %7 = vector.shape_cast %6 : vector<1x1x8xf32> to vector<1x8xf32>
    %cst = arith.constant 0.000000e+00 : f32
    %8 = vector.broadcast %cst : f32 to vector<1x8xf32>
    %9 = arith.cmpf ogt, %7, %8 : vector<1x8xf32>
    %cst_11 = arith.constant 0.000000e+00 : f32
    %cst_12 = arith.constant -1.000000e+09 : f32
    %10 = vector.broadcast %cst_11 : f32 to vector<1x8xf32>
    %11 = vector.broadcast %cst_12 : f32 to vector<1x8xf32>
    %12 = arith.select %9, %10, %11 : vector<1x8xi1>, vector<1x8xf32>
    %c0_13 = arith.constant 0 : index
    %c0_14 = arith.constant 0 : index
    %c0_15 = arith.constant 0 : index
    %13 = vector.load %arg7[%c0_13, %c0_14, %c0_15] : memref<1x8x128xf32, #tpu.memory_space<vmem>>, vector<1x8x128xf32>
    %14 = vector.shape_cast %13 : vector<1x8x128xf32> to vector<8x128xf32>
    %c0_16 = arith.constant 0 : index
    %c0_17 = arith.constant 0 : index
    %15 = vector.load %arg6[%c0_16, %c0_17] : memref<1x128xf32, #tpu.memory_space<vmem>>, vector<1x128xf32>
    %16 = vector.broadcast %15 : vector<1x128xf32> to vector<8x128xf32>
    %17 = arith.addf %14, %16 : vector<8x128xf32>
    %18 = vector.extract_strided_slice %1 {offsets = [0, 0], sizes = [8, 32], strides = [1, 1]} : vector<8x128xbf16> to vector<8x32xbf16>
    %19 = vector.extract_strided_slice %3 {offsets = [0, 0], sizes = [8, 32], strides = [1, 1]} : vector<8x128xbf16> to vector<8x32xbf16>
    %cst_18 = arith.constant dense<0.000000e+00> : vector<8x8xf32>
    %20 = tpu.matmul %18, %19, %cst_18 {dimension_numbers = #tpu.dot_dimension_numbers<[1], [1], [0], [0], [0, 0, 1, 0], [], []>} : vector<8x32xbf16>, vector<8x32xbf16>, vector<8x8xf32> -> vector<8x8xf32>
    %21 = vector.broadcast %12 : vector<1x8xf32> to vector<8x8xf32>
    %22 = arith.addf %20, %21 : vector<8x8xf32>
    %cst_19 = arith.constant dense<0xFF800000> : vector<8xf32>
    %23 = vector.multi_reduction <maximumf>, %22, %cst_19 [1] : vector<8x8xf32> to vector<8xf32>
    %24 = vector.shape_cast %23 : vector<8xf32> to vector<8x1xf32>
    %25 = vector.broadcast %24 : vector<8x1xf32> to vector<8x8xf32>
    %26 = arith.subf %22, %25 : vector<8x8xf32>
    %27 = math.exp %26 : vector<8x8xf32>
    %cst_20 = arith.constant dense<0.000000e+00> : vector<8xf32>
    %28 = vector.multi_reduction <add>, %27, %cst_20 [1] : vector<8x8xf32> to vector<8xf32>
    %29 = vector.shape_cast %28 : vector<8xf32> to vector<8x1xf32>
    %30 = tpu.reciprocal %29 {approx = true} : vector<8x1xf32> -> vector<8x1xf32>
    %31 = vector.broadcast %30 : vector<8x1xf32> to vector<8x8xf32>
    %32 = arith.mulf %27, %31 : vector<8x8xf32>
    %33 = arith.truncf %32 : vector<8x8xf32> to vector<8x8xbf16>
    %34 = vector.extract_strided_slice %5 {offsets = [0, 0], sizes = [8, 32], strides = [1, 1]} : vector<8x128xbf16> to vector<8x32xbf16>
    %cst_21 = arith.constant dense<0.000000e+00> : vector<8x32xf32>
    %35 = tpu.matmul %33, %34, %cst_21 {dimension_numbers = #tpu.dot_dimension_numbers<[1], [0], [0], [1], [0, 0, 1, 1], [], []>} : vector<8x8xbf16>, vector<8x32xbf16>, vector<8x32xf32> -> vector<8x32xf32>
    %36 = arith.truncf %35 : vector<8x32xf32> to vector<8x32xbf16>
    %c0_22 = arith.constant 0 : index
    %c0_23 = arith.constant 0 : index
    %37 = vector.load %arg5[%c0_22, %c0_23] : memref<128x128xbf16, #tpu.memory_space<vmem>>, vector<32x128xbf16>
    %cst_24 = arith.constant dense<0.000000e+00> : vector<8x128xf32>
    %38 = tpu.matmul %36, %37, %cst_24 {dimension_numbers = #tpu.dot_dimension_numbers<[1], [0], [0], [1], [0, 0, 1, 1], [], []>} : vector<8x32xbf16>, vector<32x128xbf16>, vector<8x128xf32> -> vector<8x128xf32>
    %39 = arith.addf %17, %38 : vector<8x128xf32>
    %40 = vector.extract_strided_slice %1 {offsets = [0, 32], sizes = [8, 32], strides = [1, 1]} : vector<8x128xbf16> to vector<8x32xbf16>
    %41 = vector.extract_strided_slice %3 {offsets = [0, 32], sizes = [8, 32], strides = [1, 1]} : vector<8x128xbf16> to vector<8x32xbf16>
    %cst_25 = arith.constant dense<0.000000e+00> : vector<8x8xf32>
    %42 = tpu.matmul %40, %41, %cst_25 {dimension_numbers = #tpu.dot_dimension_numbers<[1], [1], [0], [0], [0, 0, 1, 0], [], []>} : vector<8x32xbf16>, vector<8x32xbf16>, vector<8x8xf32> -> vector<8x8xf32>
    %43 = vector.broadcast %12 : vector<1x8xf32> to vector<8x8xf32>
    %44 = arith.addf %42, %43 : vector<8x8xf32>
    %cst_26 = arith.constant dense<0xFF800000> : vector<8xf32>
    %45 = vector.multi_reduction <maximumf>, %44, %cst_26 [1] : vector<8x8xf32> to vector<8xf32>
    %46 = vector.shape_cast %45 : vector<8xf32> to vector<8x1xf32>
    %47 = vector.broadcast %46 : vector<8x1xf32> to vector<8x8xf32>
    %48 = arith.subf %44, %47 : vector<8x8xf32>
    %49 = math.exp %48 : vector<8x8xf32>
    %cst_27 = arith.constant dense<0.000000e+00> : vector<8xf32>
    %50 = vector.multi_reduction <add>, %49, %cst_27 [1] : vector<8x8xf32> to vector<8xf32>
    %51 = vector.shape_cast %50 : vector<8xf32> to vector<8x1xf32>
    %52 = tpu.reciprocal %51 {approx = true} : vector<8x1xf32> -> vector<8x1xf32>
    %53 = vector.broadcast %52 : vector<8x1xf32> to vector<8x8xf32>
    %54 = arith.mulf %49, %53 : vector<8x8xf32>
    %55 = arith.truncf %54 : vector<8x8xf32> to vector<8x8xbf16>
    %56 = vector.extract_strided_slice %5 {offsets = [0, 32], sizes = [8, 32], strides = [1, 1]} : vector<8x128xbf16> to vector<8x32xbf16>
    %cst_28 = arith.constant dense<0.000000e+00> : vector<8x32xf32>
    %57 = tpu.matmul %55, %56, %cst_28 {dimension_numbers = #tpu.dot_dimension_numbers<[1], [0], [0], [1], [0, 0, 1, 1], [], []>} : vector<8x8xbf16>, vector<8x32xbf16>, vector<8x32xf32> -> vector<8x32xf32>
    %58 = arith.truncf %57 : vector<8x32xf32> to vector<8x32xbf16>
    %c32 = arith.constant 32 : index
    %c0_29 = arith.constant 0 : index
    %59 = vector.load %arg5[%c32, %c0_29] : memref<128x128xbf16, #tpu.memory_space<vmem>>, vector<32x128xbf16>
    %cst_30 = arith.constant dense<0.000000e+00> : vector<8x128xf32>
    %60 = tpu.matmul %58, %59, %cst_30 {dimension_numbers = #tpu.dot_dimension_numbers<[1], [0], [0], [1], [0, 0, 1, 1], [], []>} : vector<8x32xbf16>, vector<32x128xbf16>, vector<8x128xf32> -> vector<8x128xf32>
    %61 = arith.addf %39, %60 : vector<8x128xf32>
    %62 = vector.extract_strided_slice %1 {offsets = [0, 64], sizes = [8, 32], strides = [1, 1]} : vector<8x128xbf16> to vector<8x32xbf16>
    %63 = vector.extract_strided_slice %3 {offsets = [0, 64], sizes = [8, 32], strides = [1, 1]} : vector<8x128xbf16> to vector<8x32xbf16>
    %cst_31 = arith.constant dense<0.000000e+00> : vector<8x8xf32>
    %64 = tpu.matmul %62, %63, %cst_31 {dimension_numbers = #tpu.dot_dimension_numbers<[1], [1], [0], [0], [0, 0, 1, 0], [], []>} : vector<8x32xbf16>, vector<8x32xbf16>, vector<8x8xf32> -> vector<8x8xf32>
    %65 = vector.broadcast %12 : vector<1x8xf32> to vector<8x8xf32>
    %66 = arith.addf %64, %65 : vector<8x8xf32>
    %cst_32 = arith.constant dense<0xFF800000> : vector<8xf32>
    %67 = vector.multi_reduction <maximumf>, %66, %cst_32 [1] : vector<8x8xf32> to vector<8xf32>
    %68 = vector.shape_cast %67 : vector<8xf32> to vector<8x1xf32>
    %69 = vector.broadcast %68 : vector<8x1xf32> to vector<8x8xf32>
    %70 = arith.subf %66, %69 : vector<8x8xf32>
    %71 = math.exp %70 : vector<8x8xf32>
    %cst_33 = arith.constant dense<0.000000e+00> : vector<8xf32>
    %72 = vector.multi_reduction <add>, %71, %cst_33 [1] : vector<8x8xf32> to vector<8xf32>
    %73 = vector.shape_cast %72 : vector<8xf32> to vector<8x1xf32>
    %74 = tpu.reciprocal %73 {approx = true} : vector<8x1xf32> -> vector<8x1xf32>
    %75 = vector.broadcast %74 : vector<8x1xf32> to vector<8x8xf32>
    %76 = arith.mulf %71, %75 : vector<8x8xf32>
    %77 = arith.truncf %76 : vector<8x8xf32> to vector<8x8xbf16>
    %78 = vector.extract_strided_slice %5 {offsets = [0, 64], sizes = [8, 32], strides = [1, 1]} : vector<8x128xbf16> to vector<8x32xbf16>
    %cst_34 = arith.constant dense<0.000000e+00> : vector<8x32xf32>
    %79 = tpu.matmul %77, %78, %cst_34 {dimension_numbers = #tpu.dot_dimension_numbers<[1], [0], [0], [1], [0, 0, 1, 1], [], []>} : vector<8x8xbf16>, vector<8x32xbf16>, vector<8x32xf32> -> vector<8x32xf32>
    %80 = arith.truncf %79 : vector<8x32xf32> to vector<8x32xbf16>
    %c64 = arith.constant 64 : index
    %c0_35 = arith.constant 0 : index
    %81 = vector.load %arg5[%c64, %c0_35] : memref<128x128xbf16, #tpu.memory_space<vmem>>, vector<32x128xbf16>
    %cst_36 = arith.constant dense<0.000000e+00> : vector<8x128xf32>
    %82 = tpu.matmul %80, %81, %cst_36 {dimension_numbers = #tpu.dot_dimension_numbers<[1], [0], [0], [1], [0, 0, 1, 1], [], []>} : vector<8x32xbf16>, vector<32x128xbf16>, vector<8x128xf32> -> vector<8x128xf32>
    %83 = arith.addf %61, %82 : vector<8x128xf32>
    %84 = vector.extract_strided_slice %1 {offsets = [0, 96], sizes = [8, 32], strides = [1, 1]} : vector<8x128xbf16> to vector<8x32xbf16>
    %85 = vector.extract_strided_slice %3 {offsets = [0, 96], sizes = [8, 32], strides = [1, 1]} : vector<8x128xbf16> to vector<8x32xbf16>
    %cst_37 = arith.constant dense<0.000000e+00> : vector<8x8xf32>
    %86 = tpu.matmul %84, %85, %cst_37 {dimension_numbers = #tpu.dot_dimension_numbers<[1], [1], [0], [0], [0, 0, 1, 0], [], []>} : vector<8x32xbf16>, vector<8x32xbf16>, vector<8x8xf32> -> vector<8x8xf32>
    %87 = vector.broadcast %12 : vector<1x8xf32> to vector<8x8xf32>
    %88 = arith.addf %86, %87 : vector<8x8xf32>
    %cst_38 = arith.constant dense<0xFF800000> : vector<8xf32>
    %89 = vector.multi_reduction <maximumf>, %88, %cst_38 [1] : vector<8x8xf32> to vector<8xf32>
    %90 = vector.shape_cast %89 : vector<8xf32> to vector<8x1xf32>
    %91 = vector.broadcast %90 : vector<8x1xf32> to vector<8x8xf32>
    %92 = arith.subf %88, %91 : vector<8x8xf32>
    %93 = math.exp %92 : vector<8x8xf32>
    %cst_39 = arith.constant dense<0.000000e+00> : vector<8xf32>
    %94 = vector.multi_reduction <add>, %93, %cst_39 [1] : vector<8x8xf32> to vector<8xf32>
    %95 = vector.shape_cast %94 : vector<8xf32> to vector<8x1xf32>
    %96 = tpu.reciprocal %95 {approx = true} : vector<8x1xf32> -> vector<8x1xf32>
    %97 = vector.broadcast %96 : vector<8x1xf32> to vector<8x8xf32>
    %98 = arith.mulf %93, %97 : vector<8x8xf32>
    %99 = arith.truncf %98 : vector<8x8xf32> to vector<8x8xbf16>
    %100 = vector.extract_strided_slice %5 {offsets = [0, 96], sizes = [8, 32], strides = [1, 1]} : vector<8x128xbf16> to vector<8x32xbf16>
    %cst_40 = arith.constant dense<0.000000e+00> : vector<8x32xf32>
    %101 = tpu.matmul %99, %100, %cst_40 {dimension_numbers = #tpu.dot_dimension_numbers<[1], [0], [0], [1], [0, 0, 1, 1], [], []>} : vector<8x8xbf16>, vector<8x32xbf16>, vector<8x32xf32> -> vector<8x32xf32>
    %102 = arith.truncf %101 : vector<8x32xf32> to vector<8x32xbf16>
    %c96 = arith.constant 96 : index
    %c0_41 = arith.constant 0 : index
    %103 = vector.load %arg5[%c96, %c0_41] : memref<128x128xbf16, #tpu.memory_space<vmem>>, vector<32x128xbf16>
    %cst_42 = arith.constant dense<0.000000e+00> : vector<8x128xf32>
    %104 = tpu.matmul %102, %103, %cst_42 {dimension_numbers = #tpu.dot_dimension_numbers<[1], [0], [0], [1], [0, 0, 1, 1], [], []>} : vector<8x32xbf16>, vector<32x128xbf16>, vector<8x128xf32> -> vector<8x128xf32>
    %105 = arith.addf %83, %104 : vector<8x128xf32>
    %c0_43 = arith.constant 0 : index
    %c0_44 = arith.constant 0 : index
    %c0_45 = arith.constant 0 : index
    %106 = vector.load %arg8[%c0_43, %c0_44, %c0_45] : memref<1x8x128xf32, #tpu.memory_space<vmem>>, vector<1x8x128xf32>
    %107 = vector.shape_cast %106 : vector<1x8x128xf32> to vector<8x128xf32>
    %108 = vector.shape_cast %105 : vector<8x128xf32> to vector<1x8x128xf32>
    tpu.vector_store %arg8[%c0_43, %c0_44, %c0_45], %108 {strides = array<i32>} : memref<1x8x128xf32, #tpu.memory_space<vmem>>, vector<1x8x128xf32>,
    return
  }
  func.func @transform_0(%arg0: i32) -> (i32, i32, i32) {
    %c0_i32 = arith.constant 0 : i32
    %c0_i32_0 = arith.constant 0 : i32
    %c0_i32_1 = arith.constant 0 : i32
    return %arg0, %c0_i32, %c0_i32_0 : i32, i32, i32
  }
  func.func @transform_1(%arg0: i32) -> (i32, i32, i32) {
    %c0_i32 = arith.constant 0 : i32
    %c0_i32_0 = arith.constant 0 : i32
    %c0_i32_1 = arith.constant 0 : i32
    return %arg0, %c0_i32, %c0_i32_0 : i32, i32, i32
  }
  func.func @transform_2(%arg0: i32) -> (i32, i32, i32) {
    %c0_i32 = arith.constant 0 : i32
    %c1_i32 = arith.constant 1 : i32
    %c0_i32_0 = arith.constant 0 : i32
    return %arg0, %c0_i32, %c1_i32 : i32, i32, i32
  }
  func.func @transform_3(%arg0: i32) -> (i32, i32, i32) {
    %c0_i32 = arith.constant 0 : i32
    %c0_i32_0 = arith.constant 0 : i32
    %c0_i32_1 = arith.constant 0 : i32
    return %arg0, %c0_i32, %c0_i32_0 : i32, i32, i32
  }
  func.func @transform_4(%arg0: i32) -> (i32, i32) {
    %c0_i32 = arith.constant 0 : i32
    %c0_i32_0 = arith.constant 0 : i32
    %c0_i32_1 = arith.constant 0 : i32
    return %c0_i32, %c0_i32_0 : i32, i32
  }
  func.func @transform_5(%arg0: i32) -> (i32, i32) {
    %c0_i32 = arith.constant 0 : i32
    %c0_i32_0 = arith.constant 0 : i32
    %c0_i32_1 = arith.constant 0 : i32
    return %c0_i32, %c0_i32_0 : i32, i32
  }
  func.func @transform_6(%arg0: i32) -> (i32, i32, i32) {
    %c0_i32 = arith.constant 0 : i32
    %c0_i32_0 = arith.constant 0 : i32
    %c0_i32_1 = arith.constant 0 : i32
    return %arg0, %c0_i32, %c0_i32_0 : i32, i32, i32
  }
  func.func @transform_7(%arg0: i32) -> (i32, i32, i32) {
    %c0_i32 = arith.constant 0 : i32
    %c0_i32_0 = arith.constant 0 : i32
    %c0_i32_1 = arith.constant 0 : i32
    return %arg0, %c0_i32, %c0_i32_0 : i32, i32, i32
  }
}

</mosaic_0001>

<bundles_post_ra>
// kernel: decoder_forward.13
= control target key start
LH: loop header
LB: loop body
LE: loop exit
PB: predicated region body
PF: predicated region fallthrough
CT: control target
= control target key end

     0   :  { %10 = vsyncpa [#allocation4], 0  ;;  %s1058_s0 = inlined_call_operand.vmem [shape: f32[16,128], index: 0, kind: input, shape index: {}]   ;;  %s1059_s1 = inlined_call_operand.vmem [shape: f32[1,128], index: 1, kind: input, shape index: {}]   ;;  %s1060_s2 = inlined_call_operand.vmem [shape: f32[1,128], index: 2, kind: input, shape index: {}]   ;;  %s1061_s3 = inlined_call_operand.hbm [shape: bf16[128,384], index: 3, kind: input, shape index: {}]   ;;  %s1062_s4 = inlined_call_operand.vmem [shape: f32[1,384], index: 4, kind: input, shape index: {}]   ;;  %s1063_s5 = inlined_call_operand.vmem [shape: bf16[16,384], index: 5, kind: output, shape index: {}]  }
   0x1   :  { %12 = vsyncpa [#allocation4 + $0x1], 0  ;;  %s886_s18 = smov 0   ;;  %s888_s19 = smov 0  }
   0x2   :  { %s890_s20 = smov 0   ;;  %s892_s21 = smov 0  }
   0x3   :  { %s894_s22 = smov 0   ;;  %s896_s23 = smov 0  }
   0x4 LB: > { %s628_s24 = sadd.s32 4294967295, %s848_s23   ;;  %s27_s25 = sadd.s32 1, %s844_s22  ;;  %s848_s23 = sphi %s896_s23, %s18_s23   ;;  %s844_s22 = sphi %s894_s22, %s1074_s22   ;;  %s840_s21 = sphi %s892_s21, %s1073_s21   ;;  %s836_s20 = sphi %s890_s20, %s1072_s20   ;;  %s832_s19 = sphi %s888_s19, %s1071_s19   ;;  %s828_s18 = sphi %s886_s18, %s1070_s18  }
   0x5   : > { %p28_p0 = scmp.ge.s32.totalorder %s27_s25, 3  ;;  %s105_s26 = sadd.s32 1, %s836_s20 }
   0x6   : > { %p112_p1 = scmp.ne.s32.totalorder %s836_s20, %s832_s19  ;;  %p113_p2 = scmp.eq.s32.totalorder %s848_s23, 0 }
   0x7   : > { %s1076_s25 = smov (%p28_p0, %s27_s25), 0  ;;  %p118_p4 = scmp.ne.s32.totalorder %s832_s19, %s828_s18 }
   0x8   : > { %p922_p3 = por %p113_p2, %p112_p1  ;;  %s102_s28 = ssub.s32 %s844_s22, %s1076_s25 }
   0x9   : > { %p119_p5 = scmp.eq.s32.totalorder %s628_s24, 0  ;;  %p103_p6 = scmp.eq.s32.totalorder %s102_s28, 0 }
   0xa   : > { %p170_p7 = scmp.eq.s32.totalorder %s628_s24, 2  ;;  %p698_p10 = scmp.lt.s32.totalorder %s848_s23, 3 }
   0xb   : > { %p929_p8 = por %p119_p5, %p118_p4  ;;  %s211_s7 = sand.u32 1, %s836_s20  }
   0xc   : > { %s934_s30 = scalar_select %p103_p6, %s836_s20, %s105_s26  }
   0xd   : > { %p936_p9 = por %p170_p7, %p112_p1  ;;  %s634_s8 = sshll.u32 %s844_s22, 6 }
   0xe   : > { %s633_s9 = sshll.u32 %s211_s7, 6  ;;  %s946_s12 = scalar_lea.hbm %s1061_s3, %s634_s8 }
   0xf   : > { %s1066_s6 = scalar_select %p936_p9, 1, 0 }
  0x10   : > { %s215_s13 = scalar_lea.vmem [#allocation3], %s633_s9  ;;  %p950_p11 = pnand %p698_p10, %p922_p3 }
  0x11   : > { %s221_s14 = sshll.u32 %s215_s13, 4  ;;  %s957_s16 = scalar_lea.sflag [#allocation4], %s211_s7  ;;  %s954_s14 = int_to_ptr.vmem [resolvable:$true] %s221_s14 }
  0x12   : > { %s768_s17 = scalar_lea.hbm %s946_s12, 1024  ;;  %p770_p0 = pneg %p950_p11 }
  0x13   : > { %p769_p13 = scmp.ne.s32.totalorder %s946_s12, %s768_s17  ;;  %s773_s26 = scalar_lea.hbm %s1061_s3, 3072 }
  0x14   : > { %p774_p3 = scmp.lt.u32.totalorder %s946_s12, %s1061_s3  ;;  %p775_p4 = scmp.lt.u32.totalorder %s773_s26, %s768_s17 }
  0x15   : > { %p771_p1 = pnand %p770_p0, %p769_p13  ;;  %p777_p6 = scmp.lt.u32.totalorder %s768_s17, %s946_s12 }
  0x16   : > { %p776_p5 = por %p775_p4, %p774_p3 }
  0x17   : > { %p772_p2 = pneg %p771_p1 }
  0x18   : > { %p778_p7 = por %p777_p6, %p776_p5 }
  0x1a   : > { %p779_p10 = pnand %p778_p7, %p772_p2 }
  0x1c   : > { %782 = shalt.err (!%p779_p10)
}
  0x1d   : > { %s783_s7 = scalar_lea.vmem %s954_s14, 1024  ;;  %s850_s8 = smov [#allocation3]  }
  0x1e   : > { %p784_p13 = scmp.ne.s32.totalorder %s954_s14, %s783_s7  ;;  %s788_s9 = sshll.u32 %s850_s8, 4  ;;  %s789_s9 = int_to_ptr.vmem [resolvable:$false] %s788_s9 }
  0x1f   : > { %s790_s10 = scalar_lea.vmem %s789_s9, 2048  ;;  %p791_p9 = scmp.lt.s32.totalorder %s954_s14, %s789_s9 }
  0x20   : > { %p786_p1 = pnand %p784_p13, %p770_p0  ;;  %p792_p3 = scmp.lt.s32.totalorder %s790_s10, %s783_s7 }
  0x22   : > { %p787_p12 = pneg %p786_p1  ;;  %p793_p4 = por %p792_p3, %p791_p9 }
  0x24   : > { %p794_p5 = pnand %p793_p4, %p787_p12 }
  0x26   : > { %797 = shalt.err (!%p794_p5)
}
  0x27   : > { %s851_s11 = smov 192   ;;  %s852_s13 = smov 64  }
  0x28   : > { %s853_s17 = smov 4   ;;  %p235_p0 = scmp.lt.s32.totalorder %s848_s23, 4 }
  0x29   : > { %697 = dma.hbm_to_vmem [thread:$0]  (!%p950_p11), %s946_s12, 1024, %s954_s14, %s957_s16, %s851_s11, %s852_s13, %s853_s17  }
  0x2a   : > { %p1068_p2 = scmp.ge.s32.totalorder %s848_s23, 1 }
  0x2c   : > { %p236_p6 = pnand %p1068_p2, %p235_p0 }
  0x2d   : > { %s241_s18 = sand.u32 (!%p236_p6), 1, %s832_s19  }
  0x2e   : > { %239 = sbr.rel (%p236_p6) target bundleno = 649 (0x289), region = 40  ;;  %s636_s24 = sshll.u32 (!%p236_p6), %s241_s18, 6 }
  0x2f   : > { %s242_s26 = scalar_lea.sflag (!%p236_p6), [#allocation4], %s241_s18  ;;  %s989_s27 = scalar_lea.vmem (!%p236_p6), [#allocation3], %s636_s24 }
  0x35   : > { %823 = dma.done.wait (%p929_p8), %s242_s26, 1024  }
  0x36   : > { %825 = vsyncadd (%p929_p8), %s242_s26, 4294966272  ;;  %s637_s15 = sshll.u32 %s241_s18, 3  ;;  %p285_p9 = scmp.lt.s32.totalorder %s840_s21, 2 }
  0x37   : > { %s1003_s7 = scalar_lea.vmem [#allocation5], %s637_s15  ;;  %p638_p11 = scmp.ne.s32.totalorder %s840_s21, 0 }
  0x38   : > { %s997_s12 = scalar_select %p285_p9, %s840_s21, 2 }
  0x39   : > { %293 = sbr.rel (%p638_p11) target bundleno = 389 (0x185), region = 48  ;;  %v294_v0 = vld [vmem:[%s1058_s0] sm:$0xff] (!%p638_p11)  ;;  %v295_v1 = vld [vmem:[%s1058_s0 + $0x8] sm:$0xff] (!%p638_p11) }
  0x3a   : > { %s287_s28 = scalar_lea.vmem %s1062_s4, %s997_s12  ;;  %298 = vadd.xlane.f32.xlu0 (!%p638_p11), %v294_v0  ;;  %v639_v26 = vld [vmem:[%s1059_s1] ss:$0 sm:$0xff] (!%p638_p11) }
  0x3b   : > { %v640_v32 = vld [vmem:[%s1060_s2] ss:$0 sm:$0xff] (!%p638_p11) }
  0x3e   : > { %300 = vadd.xlane.f32.xlu0 (!%p638_p11), %v295_v1 }
  0xc7   : > { %v299_v2 = vpop.xlane.xlu0 %298 }
  0xc8   : > { %v303_v3 = vmul.f32 0.0078125, %v299_v2 }
  0xca   : > { %v305_v4 = vsub.f32 %v294_v0, %v303_v3 }
  0xcb   : > { %v301_v5 = vpop.xlane.xlu0 %300 }
  0xcc   : > { %v304_v6 = vmul.f32 0.0078125, %v301_v5  ;;  %v307_v7 = vmul.f32 %v305_v4, %v305_v4  ;;  %v336_v28 = vmul.f32 %v639_v26, %v305_v4 }
  0xce   : > { %v306_v8 = vsub.f32 %v295_v1, %v304_v6  ;;  %309 = vadd.xlane.f32.xlu1 %v307_v7 }
  0xd0   : > { %v308_v9 = vmul.f32 %v306_v8, %v306_v8  ;;  %v337_v29 = vmul.f32 %v639_v26, %v306_v8 }
  0xd2   : > { %311 = vadd.xlane.f32.xlu1 %v308_v9 }
 0x15b   : > { %v310_v10 = vpop.xlane.xlu1 %309 }
 0x15c   : > { %v314_v11 = vmul.f32 0.007874016, %v310_v10 }
 0x15e   : > { %752 = vrsqrt.f32 %v314_v11  ;;  %vm318_vm0 = vcmp.eq.f32.partialorder %v314_v11, inf  ;;  %v321_v16 = vand.u32 2147483648, %v314_v11  ;;  %vm320_vm1 = vcmp.eq.f32.partialorder %v314_v11, 0.0 }
 0x15f   : > { %v312_v12 = vpop.xlane.xlu1 %311 }
 0x160   : > { %v315_v13 = vmul.f32 0.007874016, %v312_v12 }
 0x162   : > { %754 = vrsqrt.f32 %v315_v13  ;;  %vm325_vm2 = vcmp.eq.f32.partialorder %v315_v13, inf  ;;  %v328_v22 = vand.u32 2147483648, %v315_v13  ;;  %vm327_vm3 = vcmp.eq.f32.partialorder %v315_v13, 0.0 }
 0x168   : > { %v753_v14 = vpop.eup %752 }
 0x169   : > { %v317_v15 = vmul.f32 %v753_v14, %v314_v11 }
 0x16b   : > { %v319_v17 = vsel %vm318_vm0, %v314_v11, %v317_v15 }
 0x16c   : > { %v755_v18 = vpop.eup %754  ;;  %v322_v19 = vsel %vm320_vm1, %v321_v16, %v319_v17 }
 0x16d   : > { %v338_v20 = vadd.f32 1e-06, %v322_v19  ;;  %v324_v21 = vmul.f32 %v755_v18, %v315_v13 }
 0x16f   : > { %756 = vrcp.f32 %v338_v20  ;;  %v326_v23 = vsel %vm325_vm2, %v315_v13, %v324_v21 }
 0x170   : > { %v329_v24 = vsel %vm327_vm3, %v328_v22, %v326_v23 }
 0x171   : > { %v339_v25 = vadd.f32 1e-06, %v329_v24 }
 0x173   : > { %758 = vrcp.f32 %v339_v25 }
 0x179   : > { %v757_v27 = vpop.eup %756 }
 0x17a   : > { %v341_v30 = vmul.f32 %v757_v27, %v336_v28 }
 0x17c   : > { %v350_v34 = vadd.f32 %v640_v32, %v341_v30 }
 0x17d   : > { %v759_v31 = vpop.eup %758 }
 0x17e   : > { %v343_v33 = vmul.f32 %v759_v31, %v337_v29 }
 0x180   : > { %v351_v35 = vadd.f32 %v640_v32, %v343_v33 }
 0x182   : > { %v352_v36 = vpack.c.bf16 %v351_v35, %v350_v34 }
 0x184   : > { %353 = vst [vmem:[#allocation2] sm:$0xff] %v352_v36 }
 0x185 PF: > { %v760_v37 = vld [vmem:[%s989_s27] sm:$0xff]   ;;  %v854_v38 = vmov 0.0   ;;  %v761_v39 = vld [vmem:[%s989_s27 + $0x8] sm:$0xff]   ;;  %vm855_vm4 = vmmov 0   ;;  %v762_v40 = vld [vmem:[%s989_s27 + $0x10] sm:$0xff]   ;;  %p1069_p8 = scmp.ne.s32.totalorder %s1066_s6, 0 }
 0x186   : > { %672 = vmatprep.subr.bf16.mxu0 %v854_v38  ;;  %688 = vmatprep.mubr.msk.bf16.mxu0 %vm855_vm4, %v854_v38  ;;  %v763_v41 = vld [vmem:[%s989_s27 + $0x18] sm:$0xff]   ;;  %v764_v42 = vld [vmem:[%s989_s27 + $0x20] sm:$0xff]   ;;  %v765_v43 = vld [vmem:[%s989_s27 + $0x28] sm:$0xff]  }
 0x187   : > { %673 = vmatpush3.bf16.msra.mxu0 %v760_v37  ;;  %v766_v44 = vld [vmem:[%s989_s27 + $0x30] sm:$0xff]   ;;  %v767_v45 = vld [vmem:[%s989_s27 + $0x38] sm:$0xff]   ;;  %s653_s27 = sshll.u32 (%p1069_p8), %s840_s21, 2 }
 0x188   : > { %674 = vmatprep.subr.bf16.mxu0 %v854_v38  ;;  %v641_v47 = vld [vmem:[%s287_s28] ss:$0 sm:$0xff]  ;;  %s488_s14 = scalar_lea.vmem (%p1069_p8), %s1063_s5, %s653_s27 }
 0x18b   : > { %675 = vmatpush3.bf16.msra.mxu0 %v761_v39  ;;  %v354_v46 = vld [vmem:[#allocation2] sm:$0xff] }
 0x18c   : > { %676 = vmatprep.subr.bf16.mxu0 %v854_v38 }
 0x18f   : > { %677 = vmatpush3.bf16.msra.mxu0 %v762_v40 }
 0x190   : > { %678 = vmatprep.subr.bf16.mxu0 %v854_v38 }
 0x193   : > { %679 = vmatpush3.bf16.msra.mxu0 %v763_v41 }
 0x194   : > { %680 = vmatprep.subr.bf16.mxu0 %v854_v38 }
 0x197   : > { %681 = vmatpush3.bf16.msra.mxu0 %v764_v42 }
 0x198   : > { %682 = vmatprep.subr.bf16.mxu0 %v854_v38 }
 0x19b   : > { %683 = vmatpush3.bf16.msra.mxu0 %v765_v43 }
 0x19c   : > { %684 = vmatprep.subr.bf16.mxu0 %v854_v38 }
 0x19f   : > { %685 = vmatpush3.bf16.msra.mxu0 %v766_v44 }
 0x1a0   : > { %686 = vmatprep.subr.bf16.mxu0 %v854_v38 }
 0x1a3   : > { %687 = vmatpush3.bf16.msra.mxu0 %v767_v45 }
 0x1a6   : > { %689 = vmatmul.mubr.bf16.vlgmr.msra.gmra.mrb[0].mxu0 %v354_v46 }
 0x279   : > { %v460_v48 = vpop.f32.mrb[0].mxu0 }
 0x27a   : > { %v690_v49 = vpop.f32.mrb[1].mxu0  ;;  %v461_v51 = vadd.f32 %v641_v47, %v460_v48  ;;  %483 = sbr.rel (!%p1069_p8) target bundleno = 649 (0x289), region = 52 }
 0x27b   : > { %v463_v50 = vpop.f32.mrb[2].mxu0 }
 0x27c   : > { %v464_v52 = vadd.f32 %v641_v47, %v463_v50  ;;  %v691_v53 = vpop.f32.mrb[3].mxu0 }
 0x27e   : > { %v661_v54 = vpack.c.bf16 %v464_v52, %v461_v51 }
 0x280   : > { %662 = vst [vmem:[%s1003_s7] sm:$0xff] %v661_v54  }
 0x287   : > { %v504_v55 = vld [vmem:[%s1003_s7] sm:$0xf]  ;;  %v506_v56 = vld [vmem:[%s1003_s7 + $0x4] sm:$0xf] }
 0x288   : > { %505 = vst [vmem:[%s488_s14] sm:$0xf] %v504_v55  ;;  %507 = vst [vmem:[%s488_s14 + $0xc] sm:$0xf] %v506_v56 }
 0x289 PF: > { %s18_s23 = sadd.s32 1, %s848_s23   ;;  %s1070_s18 = smov %s832_s19 }
 0x28a   : > { %p15_p12 = scmp.ge.s32.totalorder %s18_s23, 5   ;;  %s1071_s19 = smov %s836_s20 }
 0x28b   : > { %s1072_s20 = smov %s934_s30  ;;  %s1073_s21 = smov %s844_s22 }
 0x28c   : > { %s1074_s22 = smov %s1076_s25  ;;  %17 = sbr.rel (!%p15_p12) target bundleno = 4 (0x4), region = 131 }
 0x293   :  { %544 = vsyncpa [#allocation4], 1 }
 0x294   :  { %546 = vsyncpa [#allocation4 + $0x1], 1 }

// kernel: decoder_forward.15
= control target key start
LH: loop header
LB: loop body
LE: loop exit
PB: predicated region body
PF: predicated region fallthrough
CT: control target
= control target key end

     0   :  { %v279_v11 = vmov 0.0   ;;  %vm280_vm0 = vmmov 0   ;;  %s358_s0 = inlined_call_operand.vmem [shape: f32[16,128], index: 0, kind: input, shape index: {}]   ;;  %s359_s3 = inlined_call_operand.vmem [shape: bf16[128,128], index: 3, kind: input, shape index: {}]   ;;  %s360_s1 = inlined_call_operand.vmem [shape: f32[1,128], index: 1, kind: input, shape index: {}]   ;;  %s361_s2 = inlined_call_operand.vmem [shape: f32[1,128], index: 2, kind: input, shape index: {}]   ;;  %s362_s4 = inlined_call_operand.vmem [shape: f32[1,128], index: 4, kind: input, shape index: {}]   ;;  %s363_s5 = inlined_call_operand.vmem [shape: bf16[16,128], index: 5, kind: output, shape index: {}]  }
   0x1   :  { %v25_v0 = vld [vmem:[%s358_s0] sm:$0xff]  ;;  %v26_v1 = vld [vmem:[%s358_s0 + $0x8] sm:$0xff]  ;;  %241 = vmatprep.subr.bf16.mxu0 %v279_v11  ;;  %v265_v13 = vld [vmem:[%s359_s3 + $0x10] sm:$0xff]   ;;  %257 = vmatprep.mubr.msk.bf16.mxu0 %vm280_vm0, %v279_v11 }
   0x2   :  { %29 = vadd.xlane.f32.xlu0 %v25_v0  ;;  %v263_v10 = vld [vmem:[%s359_s3] sm:$0xff]   ;;  %v264_v12 = vld [vmem:[%s359_s3 + $0x8] sm:$0xff]   ;;  %v266_v14 = vld [vmem:[%s359_s3 + $0x18] sm:$0xff]  }
   0x3   :  { %242 = vmatpush3.bf16.msra.mxu0 %v263_v10  ;;  %v267_v15 = vld [vmem:[%s359_s3 + $0x20] sm:$0xff]   ;;  %v268_v16 = vld [vmem:[%s359_s3 + $0x28] sm:$0xff]   ;;  %v269_v17 = vld [vmem:[%s359_s3 + $0x30] sm:$0xff]  }
   0x4   :  { %243 = vmatprep.subr.bf16.mxu0 %v279_v11  ;;  %v270_v18 = vld [vmem:[%s359_s3 + $0x38] sm:$0xff]   ;;  %v212_v35 = vld [vmem:[%s360_s1] ss:$0 sm:$0xff] }
   0x5   :  { %v213_v41 = vld [vmem:[%s361_s2] ss:$0 sm:$0xff] }
   0x6   :  { %31 = vadd.xlane.f32.xlu0 %v26_v1  ;;  %v214_v46 = vld [vmem:[%s362_s4] ss:$0 sm:$0xff] }
   0x7   :  { %244 = vmatpush3.bf16.msra.mxu0 %v264_v12 }
   0x8   :  { %245 = vmatprep.subr.bf16.mxu0 %v279_v11 }
   0xb   :  { %246 = vmatpush3.bf16.msra.mxu0 %v265_v13 }
   0xc   :  { %247 = vmatprep.subr.bf16.mxu0 %v279_v11 }
   0xf   :  { %248 = vmatpush3.bf16.msra.mxu0 %v266_v14 }
  0x10   :  { %249 = vmatprep.subr.bf16.mxu0 %v279_v11 }
  0x13   :  { %250 = vmatpush3.bf16.msra.mxu0 %v267_v15 }
  0x14   :  { %251 = vmatprep.subr.bf16.mxu0 %v279_v11 }
  0x17   :  { %252 = vmatpush3.bf16.msra.mxu0 %v268_v16 }
  0x18   :  { %253 = vmatprep.subr.bf16.mxu0 %v279_v11 }
  0x1b   :  { %254 = vmatpush3.bf16.msra.mxu0 %v269_v17 }
  0x1c   :  { %255 = vmatprep.subr.bf16.mxu0 %v279_v11 }
  0x1f   :  { %256 = vmatpush3.bf16.msra.mxu0 %v270_v18 }
  0x8f   :  { %v30_v2 = vpop.xlane.xlu0 %29 }
  0x90   :  { %v34_v3 = vmul.f32 0.0078125, %v30_v2 }
  0x92   :  { %v317_v4 = vsub.f32 %v25_v0, %v34_v3 }
  0x93   :  { %v32_v5 = vpop.xlane.xlu0 %31 }
  0x94   :  { %v35_v6 = vmul.f32 0.0078125, %v32_v5  ;;  %v38_v7 = vmul.f32 %v317_v4, %v317_v4  ;;  %v67_v37 = vmul.f32 %v212_v35, %v317_v4 }
  0x96   :  { %v37_v8 = vsub.f32 %v26_v1, %v35_v6  ;;  %40 = vadd.xlane.f32.xlu1 %v38_v7 }
  0x98   :  { %v39_v9 = vmul.f32 %v37_v8, %v37_v8  ;;  %v68_v38 = vmul.f32 %v212_v35, %v37_v8 }
  0x9a   :  { %42 = vadd.xlane.f32.xlu1 %v39_v9 }
 0x123   :  { %v41_v19 = vpop.xlane.xlu1 %40 }
 0x124   :  { %v45_v20 = vmul.f32 0.007874016, %v41_v19 }
 0x126   :  { %271 = vrsqrt.f32 %v45_v20  ;;  %vm49_vm1 = vcmp.eq.f32.partialorder %v45_v20, inf  ;;  %v52_v25 = vand.u32 2147483648, %v45_v20  ;;  %vm51_vm2 = vcmp.eq.f32.partialorder %v45_v20, 0.0 }
 0x127   :  { %v43_v21 = vpop.xlane.xlu1 %42 }
 0x128   :  { %v46_v22 = vmul.f32 0.007874016, %v43_v21 }
 0x12a   :  { %273 = vrsqrt.f32 %v46_v22  ;;  %vm56_vm3 = vcmp.eq.f32.partialorder %v46_v22, inf  ;;  %v59_v31 = vand.u32 2147483648, %v46_v22  ;;  %vm58_vm4 = vcmp.eq.f32.partialorder %v46_v22, 0.0 }
 0x130   :  { %v272_v23 = vpop.eup %271 }
 0x131   :  { %v48_v24 = vmul.f32 %v272_v23, %v45_v20 }
 0x133   :  { %v50_v26 = vsel %vm49_vm1, %v45_v20, %v48_v24 }
 0x134   :  { %v274_v27 = vpop.eup %273  ;;  %v53_v28 = vsel %vm51_vm2, %v52_v25, %v50_v26 }
 0x135   :  { %v55_v29 = vmul.f32 %v274_v27, %v46_v22  ;;  %v69_v30 = vadd.f32 1e-06, %v53_v28 }
 0x137   :  { %v57_v32 = vsel %vm56_vm3, %v46_v22, %v55_v29  ;;  %275 = vrcp.f32 %v69_v30 }
 0x138   :  { %v60_v33 = vsel %vm58_vm4, %v59_v31, %v57_v32 }
 0x139   :  { %v70_v34 = vadd.f32 1e-06, %v60_v33 }
 0x13b   :  { %277 = vrcp.f32 %v70_v34 }
 0x141   :  { %v276_v36 = vpop.eup %275 }
 0x142   :  { %v72_v39 = vmul.f32 %v276_v36, %v67_v37 }
 0x144   :  { %v81_v43 = vadd.f32 %v213_v41, %v72_v39 }
 0x145   :  { %v278_v40 = vpop.eup %277 }
 0x146   :  { %v74_v42 = vmul.f32 %v278_v40, %v68_v38 }
 0x148   :  { %v82_v44 = vadd.f32 %v213_v41, %v74_v42 }
 0x14a   :  { %v83_v45 = vpack.c.bf16 %v82_v44, %v81_v43 }
 0x14c   :  { %258 = vmatmul.mubr.bf16.vlgmr.msra.gmra.mrb[0].mxu0 %v83_v45 }
 0x21f   :  { %v191_v47 = vpop.f32.mrb[0].mxu0 }
 0x220   :  { %v259_v48 = vpop.f32.mrb[1].mxu0  ;;  %v192_v50 = vadd.f32 %v214_v46, %v191_v47 }
 0x221   :  { %v194_v49 = vpop.f32.mrb[2].mxu0 }
 0x222   :  { %v195_v51 = vadd.f32 %v214_v46, %v194_v49  ;;  %v260_v52 = vpop.f32.mrb[3].mxu0 }
 0x224   :  { %v230_v53 = vpack.c.bf16 %v195_v51, %v192_v50 }
 0x226   :  { %231 = vst [vmem:[%s363_s5] sm:$0xff] %v230_v53  }

// kernel: decoder_forward.14
= control target key start
LH: loop header
LB: loop body
LE: loop exit
PB: predicated region body
PF: predicated region fallthrough
CT: control target
= control target key end

     0   :  { %s1403_s24 = smov 0   ;;  %s1566_s0 = inlined_call_operand.vmem [shape: bf16[2,8,384], index: 0, kind: input, shape index: {}, may-alias: {0,1,2}]   ;;  %s1567_s1 = inlined_call_operand.vmem [shape: bf16[2,8,384], index: 1, kind: input, shape index: {}, may-alias: {0,1,2}]   ;;  %s1568_s2 = inlined_call_operand.vmem [shape: bf16[2,8,384], index: 2, kind: input, shape index: {}, may-alias: {0,1,2}]   ;;  %s1569_s3 = inlined_call_operand.vmem [shape: f32[1,8,8], index: 3, kind: input, shape index: {}]   ;;  %s1570_s4 = inlined_call_operand.vmem [shape: bf16[128,128], index: 4, kind: input, shape index: {}]   ;;  %s1571_s5 = inlined_call_operand.vmem [shape: f32[1,128], index: 5, kind: input, shape index: {}]   ;;  %s1572_s6 = inlined_call_operand.vmem [shape: f32[2,8,128], index: 6, kind: input, shape index: {}]   ;;  %s1573_s7 = inlined_call_operand.vmem [shape: f32[2,8,128], index: 7, kind: output, shape index: {}]  }
   0x1 LB: > { %s1148_s25 = sadd.s32 4294967295, %s1355_s24   ;;  %p1152_p0 = scmp.ge.s32.totalorder %s1355_s24, 1  ;;  %s1355_s24 = sphi %s1403_s24, %s17_s24  }
   0x2   : > { %p268_p1 = scmp.lt.s32.totalorder %s1355_s24, 3 }
   0x4   : > { %p269_p2 = pnand %p1152_p0, %p268_p1 }
   0x5   : > { %p315_p3 = scmp.lt.s32.totalorder (!%p269_p2), %s1148_s25, 1  ;;  %v1357_v0 = vmov (!%p269_p2), 0.0   ;;  %vm1358_vm0 = vmmov (!%p269_p2), 0   ;;  %vm356_vm1 = vcmask (!%p269_p2), 261120   ;;  %v344_v4 = vld [vmem:[%s1569_s3] sm:$0xff] (!%p269_p2)  ;;  %vm403_vm3 = vcmask (!%p269_p2), 64512  }
   0x6   : > { %272 = sbr.rel (%p269_p2) target bundleno = 2069 (0x815), region = 48  ;;  %1214 = vmatprep.subr.bf16.mxu0 (!%p269_p2), %v1357_v0  ;;  %1216 = vmatprep.mubr.msk.bf16.mxu0 (!%p269_p2), %vm1358_vm0, %v1357_v0  ;;  %vm345_vm2 = vcmp.gt.f32.partialorder (!%p269_p2), %v344_v4, 0.0  ;;  %v1359_v5 = vmov (!%p269_p2), -1e+09   ;;  %s1360_s12 = smov (!%p269_p2), 96   ;;  %vm419_vm4 = vcmask (!%p269_p2), 1043456  }
   0x7   : > { %1226 = vmatprep.subr.bf16.mxu1 (!%p269_p2), %v1357_v0  ;;  %1230 = vmatprep.mubr.msk.bf16.mxu1 (!%p269_p2), %vm1358_vm0, %v1357_v0  ;;  %v1438_v6 = vsel (!%p269_p2), %vm345_vm2, 0.0, %v1359_v5  ;;  %s1361_s13 = smov (!%p269_p2), 64   ;;  %v1324_v22 = vld [vmem:[%s1570_s4] sm:$0xff] (!%p269_p2)   ;;  %v1325_v33 = vld [vmem:[%s1570_s4 + $0x8] sm:$0xff] (!%p269_p2)   ;;  %s1362_s21 = smov (!%p269_p2), 32  }
   0x8   : > { %1227 = vmatpush3.bf16.msra.mxu1 (!%p269_p2), %v1324_v22 }
   0x9   : > { %1228 = vmatprep.subr.bf16.mxu1 (!%p269_p2), %v1357_v0 }
   0xc   : > { %1229 = vmatpush3.bf16.msra.mxu1 (!%p269_p2), %v1325_v33 }
   0xd   : > { %s1575_s25 = smov (!%p315_p3, %s1148_s25), 1  ;;  %1240 = vmatprep.subr.bf16.mxu1 %v1357_v0 }
   0xe   : > { %s1420_s26 = smul.u32 12, %s1575_s25 }
  0x10   : > { %s1096_s29 = scalar_lea.vmem %s1567_s1, %s1420_s26  ;;  %s319_s9 = scalar_lea.vmem %s1566_s0, %s1420_s26 }
  0x11   : > { %v1158_v1 = vld [vmem:[%s1096_s29 + $0x4] sm:$0xf]  ;;  %v341_v3 = vld [vmem:[%s319_s9] sm:$0xf]  ;;  %s1100_s16 = scalar_lea.vmem %s1568_s2, %s1420_s26 }
  0x12   : > { %v361_v2 = vsel %vm356_vm1, %v1158_v1, 0  ;;  %v1442_v13 = vcombine.low %v1158_v1, %v1158_v1  ;;  %v1446_v14 = vcombine.low %v341_v3, %v341_v3  ;;  %v1159_v20 = vld [vmem:[%s1100_s16 + $0x8] sm:$0xf] }
  0x13   : > { %1215 = vmatpush3.bf16.xpose.msra.mxu0 %v361_v2  ;;  %v421_v21 = vsel %vm419_vm4, %v1159_v20, 0  ;;  %v1487_v49 = vcombine.low %v1159_v20, %v1159_v20 }
  0x14   : > { %1220 = vmatprep.subr.bf16.mxu0 %v1357_v0  ;;  %532 = vrot.lane.b32.xlu1 %v1442_v13, %s1360_s12 }
  0x18   : > { %527 = vrot.lane.b32.xlu1 %v1446_v14, %s1360_s12 }
  0x1a   : > { %1217 = vmatmul.mubr.msk.bf16.vlgmr.msra.gmra.mrb[0].mxu0 %vm356_vm1, %v341_v3 }
  0x1b   : > { %1222 = vmatprep.mubr.msk.bf16.mxu0 %vm1358_vm0, %v1357_v0  ;;  %1221 = vmatpush3.bf16.msra.mxu0 %v421_v21 }
  0x1c   : > { %704 = vrot.lane.b32.xlu1 %v1446_v14, %s1361_s13  ;;  %1234 = vmatprep.subr.bf16.mxu0 %v1357_v0 }
  0x86   : > { %v533_v25 = vpop.permute.xlu1 %532 }
  0x87   : > { %v538_v27 = vsel %vm356_vm1, %v533_v25, 0 }
  0x8a   : > { %v528_v30 = vpop.permute.xlu1 %527 }
  0x8e   : > { %v705_v32 = vpop.permute.xlu1 %704 }
  0xed   : > { %v397_v7 = vpop.f32.mrb[0].mxu0 }
  0xee   : > { %v398_v8 = vadd.f32 %v397_v7, %v1438_v6  ;;  %v1218_v9 = vpop.f32.mrb[1].mxu0 }
  0xef   : > { %v400_v10 = vpop.f32.mrb[2].mxu0 }
  0xf0   : > { %v1219_v11 = vpop.f32.mrb[3].mxu0  ;;  %v404_v12 = vsel %vm403_vm3, %v398_v8, -inf }
  0xf1   : > { %405 = vmax.xlane.f32.xlu0 %v404_v12 }
 0x17e   : > { %v406_v15 = vpop.xlane.xlu0 %405 }
 0x17f   : > { %v407_v16 = vsub.f32 %v398_v8, %v406_v15  ;;  %v1327_v15 = vld [vmem:[%s1570_s4 + $0x10] sm:$0xff]  }
 0x181   : > { %v408_v17 = vmul.f32 1.442695, %v407_v16  ;;  %v1328_v16 = vld [vmem:[%s1570_s4 + $0x18] sm:$0xff]  }
 0x183   : > { %1333 = vpow2.f32 %v408_v17 }
 0x18d   : > { %v1334_v18 = vpop.eup %1333 }
 0x18e   : > { %v410_v19 = vsel %vm403_vm3, %v1334_v18, 0.0 }
 0x18f   : > { %411 = vadd.xlane.f32.xlu0 %v410_v19 }
 0x1a5   : > { %706 = vrot.lane.b32.xlu0 %v1442_v13, %s1361_s13 }
 0x21c   : > { %v412_v23 = vpop.xlane.xlu0 %411 }
 0x21d   : > { %1335 = vrcp.f32 %v412_v23 }
 0x220   : > { %v707_v29 = vpop.permute.xlu0 %706 }
 0x221   : > { %v712_v31 = vsel %vm356_vm1, %v707_v29, 0 }
 0x227   : > { %v1336_v24 = vpop.eup %1335 }
 0x228   : > { %v414_v26 = vmul.f32 %v1336_v24, %v1334_v18 }
 0x22a   : > { %v415_v28 = vpack.c.bf16 %v414_v26, %v414_v26 }
 0x22c   : > { %1223 = vmatmul.mubr.msk.bf16.vlgmr.msra.gmra.mrb[4].mxu0 %vm403_vm3, %v415_v28  ;;  %v1329_v28 = vld [vmem:[%s1570_s4 + $0x20] sm:$0xff]  }
 0x22d   : > { %1235 = vmatpush3.bf16.xpose.msra.mxu0 %v538_v27  ;;  %1236 = vmatprep.mubr.msk.bf16.mxu0 %vm1358_vm0, %v1357_v0 }
 0x22e   : > { %1254 = vmatprep.subr.bf16.mxu0 %v1357_v0 }
 0x234   : > { %1237 = vmatmul.mubr.msk.bf16.vlgmr.msra.gmra.mrb[8].mxu0 %vm356_vm1, %v528_v30 }
 0x235   : > { %1255 = vmatpush3.bf16.xpose.msra.mxu0 %v712_v31  ;;  %1256 = vmatprep.mubr.msk.bf16.mxu0 %vm1358_vm0, %v1357_v0 }
 0x236   : > { %1260 = vmatprep.subr.bf16.mxu0 %v1357_v0 }
 0x23c   : > { %1257 = vmatmul.mubr.msk.bf16.vlgmr.msra.gmra.mrb[12].mxu0 %vm356_vm1, %v705_v32 }
 0x23d   : > { %1262 = vmatprep.mubr.msk.bf16.mxu0 %vm1358_vm0, %v1357_v0 }
 0x2ff   : > { %v457_v34 = vpop.f32.mrb[4].mxu0 }
 0x300   : > { %v463_v35 = vpack.c.bf16 %v457_v34, %v457_v34  ;;  %v1224_v36 = vpop.f32.mrb[5].mxu0 }
 0x301   : > { %v460_v37 = vpop.f32.mrb[6].mxu0 }
 0x302   : > { %v1225_v38 = vpop.f32.mrb[7].mxu0  ;;  %1231 = vmatmul.mubr.msk.bf16.vlgmr.msra.gmra.mrb[0].mxu1 %vm356_vm1, %v463_v35 }
 0x303   : > { %1242 = vmatprep.mubr.msk.bf16.mxu1 %vm1358_vm0, %v1357_v0 }
 0x307   : > { %v574_v39 = vpop.f32.mrb[8].mxu0 }
 0x308   : > { %v1238_v40 = vpop.f32.mrb[9].mxu0  ;;  %v575_v50 = vadd.f32 %v574_v39, %v1438_v6 }
 0x309   : > { %v577_v41 = vpop.f32.mrb[10].mxu0 }
 0x30a   : > { %v1239_v42 = vpop.f32.mrb[11].mxu0  ;;  %v580_v51 = vsel %vm403_vm3, %v575_v50, -inf }
 0x30f   : > { %v748_v43 = vpop.f32.mrb[12].mxu0 }
 0x310   : > { %v749_v44 = vadd.f32 %v748_v43, %v1438_v6  ;;  %v1258_v45 = vpop.f32.mrb[13].mxu0 }
 0x311   : > { %v751_v46 = vpop.f32.mrb[14].mxu0 }
 0x312   : > { %v1259_v47 = vpop.f32.mrb[15].mxu0  ;;  %v754_v48 = vsel %vm403_vm3, %v749_v44, -inf  ;;  %v1332_v46 = vld [vmem:[%s1570_s4 + $0x38] sm:$0xff]  }
 0x313   : > { %755 = vmax.xlane.f32.xlu1 %v754_v48 }
 0x324   : > { %766 = vrot.lane.b32.xlu1 %v1487_v49, %s1361_s13  ;;  %s1156_s13 = sshll.u32 %s1575_s25, 3 }
 0x325   : > { %s335_s16 = scalar_lea.vmem %s1572_s6, %s1156_s13 }
 0x328   : > { %875 = vrot.lane.b32.xlu1 %v1446_v14, %s1362_s21 }
 0x34c   : > { %581 = vmax.xlane.f32.xlu1 %v580_v51 }
 0x35d   : > { %595 = vrot.lane.b32.xlu1 %v1487_v49, %s1360_s12 }
 0x3a0   : > { %v756_v52 = vpop.xlane.xlu1 %755 }
 0x3a1   : > { %v757_v53 = vsub.f32 %v749_v44, %v756_v52  ;;  %v1331_v44 = vld [vmem:[%s1570_s4 + $0x30] sm:$0xff]   ;;  %v347_v52 = vld [vmem:[%s335_s16] sm:$0xff] }
 0x3a3   : > { %v758_v54 = vmul.f32 1.442695, %v757_v53  ;;  %v1160_v53 = vld [vmem:[%s1571_s5] ss:$0 sm:$0xff] }
 0x3a4   : > { %v767_v55 = vpop.permute.xlu1 %766 }
 0x3a5   : > { %1337 = vpow2.f32 %v758_v54  ;;  %v772_v56 = vsel %vm419_vm4, %v767_v55, 0  ;;  %v355_v54 = vadd.f32 %v1160_v53, %v347_v52 }
 0x3a6   : > { %1261 = vmatpush3.bf16.msra.mxu0 %v772_v56 }
 0x3a7   : > { %1274 = vmatprep.subr.bf16.mxu0 %v1357_v0 }
 0x3a8   : > { %v876_v59 = vpop.permute.xlu1 %875 }
 0x3af   : > { %v1338_v57 = vpop.eup %1337 }
 0x3b0   : > { %v760_v58 = vsel %vm403_vm3, %v1338_v57, 0.0 }
 0x3b1   : > { %761 = vadd.xlane.f32.xlu0 %v760_v58 }
 0x3c7   : > { %877 = vrot.lane.b32.xlu0 %v1442_v13, %s1362_s21 }
 0x3d9   : > { %v582_v60 = vpop.xlane.xlu1 %581 }
 0x3da   : > { %v583_v61 = vsub.f32 %v575_v50, %v582_v60 }
 0x3dc   : > { %v584_v62 = vmul.f32 1.442695, %v583_v61 }
 0x3dd   : > { %v596_v2 = vpop.permute.xlu1 %595 }
 0x3de   : > { %1339 = vpow2.f32 %v584_v62  ;;  %v601_v3 = vsel %vm419_vm4, %v596_v2, 0 }
 0x3df   : > { %1241 = vmatpush3.bf16.msra.mxu1 %v601_v3 }
 0x3e0   : > { %1246 = vmatprep.subr.bf16.mxu1 %v1357_v0 }
 0x3e8   : > { %v1340_v63 = vpop.eup %1339 }
 0x3e9   : > { %v586_v1 = vsel %vm403_vm3, %v1340_v63, 0.0 }
 0x3ea   : > { %587 = vadd.xlane.f32.xlu0 %v586_v1 }
 0x43e   : > { %v762_v4 = vpop.xlane.xlu0 %761 }
 0x43f   : > { %1341 = vrcp.f32 %v762_v4 }
 0x442   : > { %v878_v7 = vpop.permute.xlu0 %877 }
 0x443   : > { %v883_v9 = vsel %vm356_vm1, %v878_v7, 0 }
 0x449   : > { %v1342_v5 = vpop.eup %1341 }
 0x44a   : > { %v764_v8 = vmul.f32 %v1342_v5, %v1338_v57 }
 0x44c   : > { %v765_v10 = vpack.c.bf16 %v764_v8, %v764_v8 }
 0x44e   : > { %1263 = vmatmul.mubr.msk.bf16.vlgmr.msra.gmra.mrb[16].mxu0 %vm403_vm3, %v765_v10 }
 0x44f   : > { %1275 = vmatpush3.bf16.xpose.msra.mxu0 %v883_v9  ;;  %1276 = vmatprep.mubr.msk.bf16.mxu0 %vm1358_vm0, %v1357_v0 }
 0x456   : > { %1277 = vmatmul.mubr.msk.bf16.vlgmr.msra.gmra.mrb[20].mxu0 %vm356_vm1, %v876_v59 }
 0x477   : > { %v588_v11 = vpop.xlane.xlu0 %587 }
 0x478   : > { %1343 = vrcp.f32 %v588_v11 }
 0x482   : > { %v1344_v12 = vpop.eup %1343 }
 0x483   : > { %v590_v13 = vmul.f32 %v1344_v12, %v1340_v63 }
 0x485   : > { %v591_v14 = vpack.c.bf16 %v590_v13, %v590_v13 }
 0x487   : > { %1243 = vmatmul.mubr.msk.bf16.vlgmr.msra.gmra.mrb[4].mxu1 %vm403_vm3, %v591_v14 }
 0x488   : > { %1250 = vmatprep.mubr.msk.bf16.mxu1 %vm1358_vm0, %v1357_v0  ;;  %1247 = vmatpush3.bf16.msra.mxu1 %v1327_v15 }
 0x489   : > { %1248 = vmatprep.subr.bf16.mxu1 %v1357_v0 }
 0x48c   : > { %1249 = vmatpush3.bf16.msra.mxu1 %v1328_v16 }
 0x48d   : > { %1266 = vmatprep.subr.bf16.mxu1 %v1357_v0 }
 0x521   : > { %v808_v17 = vpop.f32.mrb[16].mxu0 }
 0x522   : > { %v1264_v18 = vpop.f32.mrb[17].mxu0  ;;  %v814_v33 = vpack.c.bf16 %v808_v17, %v808_v17 }
 0x523   : > { %v811_v19 = vpop.f32.mrb[18].mxu0 }
 0x524   : > { %v1265_v20 = vpop.f32.mrb[19].mxu0 }
 0x529   : > { %v919_v21 = vpop.f32.mrb[20].mxu0 }
 0x52a   : > { %v920_v22 = vadd.f32 %v919_v21, %v1438_v6  ;;  %v1278_v23 = vpop.f32.mrb[21].mxu0  ;;  %v1330_v6 = vld [vmem:[%s1570_s4 + $0x28] sm:$0xff]  }
 0x52b   : > { %v922_v24 = vpop.f32.mrb[22].mxu0 }
 0x52c   : > { %v1279_v25 = vpop.f32.mrb[23].mxu0  ;;  %v925_v26 = vsel %vm403_vm3, %v920_v22, -inf }
 0x52d   : > { %926 = vmax.xlane.f32.xlu0 %v925_v26 }
 0x55a   : > { %v637_v27 = vpop.f32.mrb[4].mxu1 }
 0x55b   : > { %v643_v29 = vpack.c.bf16 %v637_v27, %v637_v27  ;;  %v1244_v30 = vpop.f32.mrb[5].mxu1 }
 0x55c   : > { %v640_v31 = vpop.f32.mrb[6].mxu1 }
 0x55d   : > { %v1245_v32 = vpop.f32.mrb[7].mxu1  ;;  %1251 = vmatmul.mubr.msk.bf16.vlgmr.msra.gmra.mrb[0].mxu1 %vm356_vm1, %v643_v29 }
 0x55e   : > { %1267 = vmatpush3.bf16.msra.mxu1 %v1329_v28  ;;  %1270 = vmatprep.mubr.msk.bf16.mxu1 %vm1358_vm0, %v1357_v0 }
 0x55f   : > { %1268 = vmatprep.subr.bf16.mxu1 %v1357_v0 }
 0x562   : > { %1269 = vmatpush3.bf16.msra.mxu1 %v1330_v6 }
 0x563   : > { %1280 = vmatprep.subr.bf16.mxu1 %v1357_v0 }
 0x569   : > { %1271 = vmatmul.mubr.msk.bf16.vlgmr.msra.gmra.mrb[0].mxu1 %vm356_vm1, %v814_v33 }
 0x56a   : > { %1282 = vmatprep.mubr.msk.bf16.mxu1 %vm1358_vm0, %v1357_v0 }
 0x5ba   : > { %v927_v34 = vpop.xlane.xlu0 %926 }
 0x5bb   : > { %v928_v35 = vsub.f32 %v920_v22, %v927_v34 }
 0x5bd   : > { %v929_v36 = vmul.f32 1.442695, %v928_v35 }
 0x5bf   : > { %1345 = vpow2.f32 %v929_v36 }
 0x5c9   : > { %v1346_v37 = vpop.eup %1345 }
 0x5ca   : > { %v931_v38 = vsel %vm403_vm3, %v1346_v37, 0.0 }
 0x5cb   : > { %932 = vadd.xlane.f32.xlu0 %v931_v38 }
 0x5e1   : > { %937 = vrot.lane.b32.xlu0 %v1487_v49, %s1362_s21  ;;  %s339_s21 = scalar_lea.vmem %s1573_s7, %s1156_s13 }
 0x658   : > { %v933_v39 = vpop.xlane.xlu0 %932 }
 0x659   : > { %1347 = vrcp.f32 %v933_v39 }
 0x65c   : > { %v938_v40 = vpop.permute.xlu0 %937 }
 0x65d   : > { %v943_v41 = vsel %vm419_vm4, %v938_v40, 0 }
 0x65e   : > { %1281 = vmatpush3.bf16.msra.mxu1 %v943_v41 }
 0x65f   : > { %1286 = vmatprep.subr.bf16.mxu1 %v1357_v0 }
 0x663   : > { %v1348_v42 = vpop.eup %1347 }
 0x664   : > { %v935_v43 = vmul.f32 %v1348_v42, %v1346_v37 }
 0x666   : > { %v936_v45 = vpack.c.bf16 %v935_v43, %v935_v43 }
 0x668   : > { %1283 = vmatmul.mubr.msk.bf16.vlgmr.msra.gmra.mrb[8].mxu1 %vm403_vm3, %v936_v45 }
 0x669   : > { %1287 = vmatpush3.bf16.msra.mxu1 %v1331_v44  ;;  %1290 = vmatprep.mubr.msk.bf16.mxu1 %vm1358_vm0, %v1357_v0 }
 0x66a   : > { %1288 = vmatprep.subr.bf16.mxu1 %v1357_v0 }
 0x66d   : > { %1289 = vmatpush3.bf16.msra.mxu1 %v1332_v46 }
 0x73b   : > { %v979_v47 = vpop.f32.mrb[8].mxu1 }
 0x73c   : > { %v985_v48 = vpack.c.bf16 %v979_v47, %v979_v47  ;;  %v1284_v49 = vpop.f32.mrb[9].mxu1 }
 0x73d   : > { %v982_v50 = vpop.f32.mrb[10].mxu1 }
 0x73e   : > { %v1285_v51 = vpop.f32.mrb[11].mxu1  ;;  %1291 = vmatmul.mubr.msk.bf16.vlgmr.msra.gmra.mrb[0].mxu1 %vm356_vm1, %v985_v48 }
 0x811   : > { %v1039_v0 = vpop.f32.mrb[0].mxu1 }
 0x812   : > { %v1294_v55 = vadd.f32 %v1039_v0, %v355_v54  ;;  %v1292_v56 = vpop.f32.mrb[1].mxu1 }
 0x813   : > { %v1042_v57 = vpop.f32.mrb[2].mxu1 }
 0x814   : > { %1046 = vst [vmem:[%s339_s21] sm:$0xff] %v1294_v55  ;;  %v1293_v58 = vpop.f32.mrb[3].mxu1 }
 0x815 PF: > { %s17_s24 = sadd.s32 1, %s1355_s24  }
 0x816   : > { %p14_p4 = scmp.ge.s32.totalorder %s17_s24, 4  }
 0x818   :  { %16 = sbr.rel (!%p14_p4) target bundleno = 1 (0x1), region = 87 }

// kernel: decoder_forward.16
= control target key start
LH: loop header
LB: loop body
LE: loop exit
PB: predicated region body
PF: predicated region fallthrough
CT: control target
= control target key end

     0   :  { %v239_v1 = vmov 0   ;;  %v35_v18 = vlaneseq  ;;  %s320_s1 = inlined_call_operand.vmem [shape: bf16[128,256], index: 1, kind: input, shape index: {}]   ;;  %s321_s0 = inlined_call_operand.vmem [shape: bf16[16,128], index: 0, kind: input, shape index: {}]   ;;  %s322_s2 = inlined_call_operand.vmem [shape: f32[1,256], index: 2, kind: input, shape index: {}]   ;;  %s323_s3 = inlined_call_operand.vmem [shape: bf16[16,256], index: 3, kind: output, shape index: {}]  }
   0x1   :  { %v214_v0 = vld [vmem:[%s320_s1 + $0x4] ss:$8 sps:$4 sm:$0xff]   ;;  %163 = vmatprep.mubr.bf16.mxu0 %v239_v1  ;;  %v216_v2 = vld [vmem:[%s320_s1] ss:$8 sps:$4 sm:$0xff]   ;;  %v217_v3 = vld [vmem:[%s320_s1 + $0x14] ss:$8 sps:$4 sm:$0xff]  }
   0x2   :  { %131 = vmatprep.subr.bf16.mxu0 %v214_v0  ;;  %v219_v4 = vld [vmem:[%s320_s1 + $0x10] ss:$8 sps:$4 sm:$0xff]   ;;  %v220_v5 = vld [vmem:[%s320_s1 + $0x24] ss:$8 sps:$4 sm:$0xff]   ;;  %v222_v6 = vld [vmem:[%s320_s1 + $0x20] ss:$8 sps:$4 sm:$0xff]  }
   0x3   :  { %132 = vmatpush1.bf16.msra.mxu0 %v216_v2  ;;  %v223_v7 = vld [vmem:[%s320_s1 + $0x34] ss:$8 sps:$4 sm:$0xff]   ;;  %v225_v8 = vld [vmem:[%s320_s1 + $0x30] ss:$8 sps:$4 sm:$0xff]   ;;  %v226_v9 = vld [vmem:[%s320_s1 + $0x44] ss:$8 sps:$4 sm:$0xff]  }
   0x4   :  { %133 = vmatprep.subr.bf16.mxu0 %v217_v3  ;;  %v228_v10 = vld [vmem:[%s320_s1 + $0x40] ss:$8 sps:$4 sm:$0xff]   ;;  %v229_v11 = vld [vmem:[%s320_s1 + $0x54] ss:$8 sps:$4 sm:$0xff]   ;;  %v231_v12 = vld [vmem:[%s320_s1 + $0x50] ss:$8 sps:$4 sm:$0xff]  }
   0x5   :  { %v232_v13 = vld [vmem:[%s320_s1 + $0x64] ss:$8 sps:$4 sm:$0xff]   ;;  %v234_v14 = vld [vmem:[%s320_s1 + $0x60] ss:$8 sps:$4 sm:$0xff]   ;;  %v235_v15 = vld [vmem:[%s320_s1 + $0x74] ss:$8 sps:$4 sm:$0xff]  }
   0x6   :  { %v237_v16 = vld [vmem:[%s320_s1 + $0x70] ss:$8 sps:$4 sm:$0xff]   ;;  %v238_v17 = vld [vmem:[%s321_s0] sm:$0xff]   ;;  %v36_v19 = vshrl.u32 %v35_v18, 7 }
   0x7   :  { %134 = vmatpush1.bf16.msra.mxu0 %v219_v4  ;;  %v33_v21 = vld [vmem:[%s322_s2] sm:$0x3] }
   0x8   :  { %135 = vmatprep.subr.bf16.mxu0 %v220_v5  ;;  %v37_v20 = vsub.s32 0, %v36_v19  ;;  %v41_v22 = vsub.s32 1, %v36_v19 }
   0xa   :  { %v38_v23 = vrot.slane %v33_v21, %v37_v20  ;;  %v42_v24 = vrot.slane %v33_v21, %v41_v22 }
   0xb   :  { %136 = vmatpush1.bf16.msra.mxu0 %v222_v6 }
   0xc   :  { %137 = vmatprep.subr.bf16.mxu0 %v223_v7 }
   0xf   :  { %138 = vmatpush1.bf16.msra.mxu0 %v225_v8 }
  0x10   :  { %139 = vmatprep.subr.bf16.mxu0 %v226_v9 }
  0x13   :  { %140 = vmatpush1.bf16.msra.mxu0 %v228_v10 }
  0x14   :  { %141 = vmatprep.subr.bf16.mxu0 %v229_v11 }
  0x17   :  { %142 = vmatpush1.bf16.msra.mxu0 %v231_v12 }
  0x18   :  { %143 = vmatprep.subr.bf16.mxu0 %v232_v13 }
  0x1b   :  { %144 = vmatpush1.bf16.msra.mxu0 %v234_v14 }
  0x1c   :  { %145 = vmatprep.subr.bf16.mxu0 %v235_v15 }
  0x1f   :  { %146 = vmatpush1.bf16.msra.mxu0 %v237_v16 }
  0x22   :  { %164 = vmatmul.mubr.bf16.vlgmr.msra.gmra.mrb[0].mxu0 %v238_v17 }
  0xf5   :  { %v165_v25 = vpop.f32.mrb[0].mxu0 }
  0xf6   :  { %v166_v26 = vadd.f32 %v165_v25, %v38_v23  ;;  %v167_v27 = vpop.f32.mrb[1].mxu0 }
  0xf7   :  { %v168_v28 = vadd.f32 %v167_v27, %v42_v24  ;;  %v169_v29 = vpop.f32.mrb[2].mxu0 }
  0xf8   :  { %v170_v30 = vadd.f32 %v169_v29, %v38_v23  ;;  %v171_v31 = vpop.f32.mrb[3].mxu0 }
  0xf9   :  { %v211_v32 = vpack.c.bf16 %v168_v28, %v166_v26  ;;  %v172_v33 = vadd.f32 %v171_v31, %v42_v24 }
  0xfb   :  { %186 = vst [vmem:[%s323_s3] sm:$0xff] %v211_v32  ;;  %v212_v34 = vpack.c.bf16 %v172_v33, %v170_v30 }
  0xfd   :  { %187 = vst [vmem:[%s323_s3 + $0x8] sm:$0xff] %v212_v34 }

// kernel: decoder_forward.25
= control target key start
LH: loop header
LB: loop body
LE: loop exit
PB: predicated region body
PF: predicated region fallthrough
CT: control target
= control target key end

     0   :  { %s175_s0 = inlined_call_operand.vmem [shape: f32[16,128], index: 0, kind: input, shape index: {}]   ;;  %s176_s1 = inlined_call_operand.vmem [shape: f32[1,128], index: 1, kind: input, shape index: {}]   ;;  %s177_s2 = inlined_call_operand.vmem [shape: f32[1,128], index: 2, kind: input, shape index: {}]   ;;  %s178_s3 = inlined_call_operand.hbm [shape: f32[16,128], index: 3, kind: output, shape index: {}]  }
   0x1   :  { %v15_v0 = vld [vmem:[%s175_s0] sm:$0xff] }
   0x2   :  { %8 = vsyncpa [#allocation3], 0  ;;  %19 = vadd.xlane.f32.xlu0 %v15_v0  ;;  %v16_v1 = vld [vmem:[%s175_s0 + $0x8] sm:$0xff]  ;;  %v91_v26 = vld [vmem:[%s176_s1] ss:$0 sm:$0xff]  ;;  %s128_s19 = smov [#allocation2]  }
   0x3   :  { %v92_v29 = vld [vmem:[%s177_s2] ss:$0 sm:$0xff]  ;;  %s80_s20 = sshll.u32 %s128_s19, 4  ;;  %s81_s20 = int_to_ptr.vmem [resolvable:$true] %s80_s20 }
   0x4   :  { %s104_s21 = scalar_lea.vmem %s81_s20, 256  ;;  %p109_p1 = scmp.lt.s32.totalorder %s81_s20, %s81_s20 }
   0x5   :  { %p105_p0 = scmp.ne.s32.totalorder %s81_s20, %s104_s21  ;;  %p110_p2 = scmp.lt.s32.totalorder %s104_s21, %s104_s21 }
   0x6   :  { %21 = vadd.xlane.f32.xlu0 %v16_v1 }
   0x7   :  { %p111_p3 = por %p110_p2, %p109_p1 }
   0x9   :  { %p112_p4 = pnand %p111_p3, %p105_p0 }
  0x8f   :  { %v20_v2 = vpop.xlane.xlu0 %19 }
  0x90   :  { %v24_v3 = vmul.f32 0.0078125, %v20_v2 }
  0x92   :  { %v26_v4 = vsub.f32 %v15_v0, %v24_v3 }
  0x93   :  { %v22_v5 = vpop.xlane.xlu0 %21 }
  0x94   :  { %v25_v6 = vmul.f32 0.0078125, %v22_v5  ;;  %v28_v7 = vmul.f32 %v26_v4, %v26_v4  ;;  %v57_v27 = vmul.f32 %v91_v26, %v26_v4 }
  0x96   :  { %v27_v8 = vsub.f32 %v16_v1, %v25_v6  ;;  %30 = vadd.xlane.f32.xlu1 %v28_v7 }
  0x98   :  { %v29_v9 = vmul.f32 %v27_v8, %v27_v8  ;;  %v58_v31 = vmul.f32 %v91_v26, %v27_v8 }
  0x9a   :  { %32 = vadd.xlane.f32.xlu1 %v29_v9 }
 0x123   :  { %v31_v10 = vpop.xlane.xlu1 %30 }
 0x124   :  { %v35_v11 = vmul.f32 0.007874016, %v31_v10 }
 0x126   :  { %96 = vrsqrt.f32 %v35_v11  ;;  %vm39_vm0 = vcmp.eq.f32.partialorder %v35_v11, inf  ;;  %v42_v16 = vand.u32 2147483648, %v35_v11  ;;  %vm41_vm1 = vcmp.eq.f32.partialorder %v35_v11, 0.0 }
 0x127   :  { %v33_v12 = vpop.xlane.xlu1 %32 }
 0x128   :  { %v36_v13 = vmul.f32 0.007874016, %v33_v12 }
 0x12a   :  { %98 = vrsqrt.f32 %v36_v13  ;;  %vm46_vm2 = vcmp.eq.f32.partialorder %v36_v13, inf  ;;  %v49_v22 = vand.u32 2147483648, %v36_v13  ;;  %vm48_vm3 = vcmp.eq.f32.partialorder %v36_v13, 0.0 }
 0x130   :  { %v97_v14 = vpop.eup %96 }
 0x131   :  { %v38_v15 = vmul.f32 %v97_v14, %v35_v11 }
 0x133   :  { %v40_v17 = vsel %vm39_vm0, %v35_v11, %v38_v15 }
 0x134   :  { %v99_v18 = vpop.eup %98  ;;  %v43_v19 = vsel %vm41_vm1, %v42_v16, %v40_v17 }
 0x135   :  { %v59_v20 = vadd.f32 1e-06, %v43_v19  ;;  %v45_v21 = vmul.f32 %v99_v18, %v36_v13 }
 0x137   :  { %100 = vrcp.f32 %v59_v20  ;;  %v47_v23 = vsel %vm46_vm2, %v36_v13, %v45_v21 }
 0x138   :  { %v50_v24 = vsel %vm48_vm3, %v49_v22, %v47_v23 }
 0x139   :  { %v60_v25 = vadd.f32 1e-06, %v50_v24 }
 0x13b   :  { %102 = vrcp.f32 %v60_v25 }
 0x141   :  { %v101_v28 = vpop.eup %100 }
 0x142   :  { %v62_v30 = vmul.f32 %v101_v28, %v57_v27 }
 0x144   :  { %v71_v32 = vadd.f32 %v92_v29, %v62_v30 }
 0x145   :  { %v103_v33 = vpop.eup %102 }
 0x146   :  { %v64_v34 = vmul.f32 %v103_v33, %v58_v31  ;;  %73 = vst [vmem:[#allocation2] sm:$0xff] %v71_v32 }
 0x148   :  { %v72_v35 = vadd.f32 %v92_v29, %v64_v34 }
 0x14a   :  { %74 = vst [vmem:[#allocation2 + $0x8] sm:$0xff] %v72_v35 }
 0x14b   :  { %115 = shalt.err (!%p112_p4)
}
 0x14c   :  { %s116_s22 = scalar_lea.hbm %s178_s3, 256 }
 0x14d   :  { %p117_p5 = scmp.ne.s32.totalorder %s178_s3, %s116_s22  ;;  %p120_p6 = scmp.lt.u32.totalorder %s116_s22, %s178_s3 }
 0x14f   :  { %p122_p7 = pnand %p120_p6, %p117_p5 }
 0x151   :  { %125 = shalt.err (!%p122_p7)
}
 0x152   :  { %s129_s27 = smov 128   ;;  %s130_s28 = smov 8  }
 0x153   :  { %86 = dma.vmem_to_hbm [thread:$0]  %s81_s20, 256, %s178_s3, [#allocation3], %s129_s27, %s129_s27, %s130_s28  }
 0x154   :  { %126 = dma.done.wait [#allocation3], 256  }
 0x155   :  { %127 = vsyncadd [#allocation3], 4294967040 }
 0x156   :  { %90 = vsyncpa [#allocation3], 1 }

// kernel: decoder_forward.19
= control target key start
LH: loop header
LB: loop body
LE: loop exit
PB: predicated region body
PF: predicated region fallthrough
CT: control target
= control target key end

     0   :  { %s899_s18 = smov 0   ;;  %s901_s19 = smov 0   ;;  %s1030_s0 = inlined_call_operand.vmem [shape: f32[16,128], index: 0, kind: input, shape index: {}]   ;;  %s1031_s1 = inlined_call_operand.vmem [shape: f32[1,128], index: 1, kind: input, shape index: {}]   ;;  %s1032_s2 = inlined_call_operand.vmem [shape: f32[1,128], index: 2, kind: input, shape index: {}]   ;;  %s1033_s3 = inlined_call_operand.vmem [shape: bf16[128,384], index: 3, kind: input, shape index: {}]   ;;  %s1034_s4 = inlined_call_operand.vmem [shape: f32[1,384], index: 4, kind: input, shape index: {}]   ;;  %s1035_s5 = inlined_call_operand.vmem [shape: bf16[16,384], index: 5, kind: output, shape index: {}]  }
   0x1   :  { %s903_s20 = smov 0   ;;  %s905_s21 = smov 0  }
   0x2   :  { %s907_s22 = smov 0  }
   0x3 LB: > { %s24_s23 = sadd.s32 1, %s861_s21  ;;  %s705_s24 = sadd.s32 4294967295, %s865_s22   ;;  %s865_s22 = sphi %s907_s22, %s15_s22   ;;  %s861_s21 = sphi %s905_s21, %s1040_s21   ;;  %s857_s20 = sphi %s903_s20, %s1039_s20   ;;  %s853_s19 = sphi %s901_s19, %s1038_s19   ;;  %s849_s18 = sphi %s899_s18, %s1037_s18  }
   0x4   : > { %p25_p0 = scmp.ge.s32.totalorder %s24_s23, 3  ;;  %p109_p1 = scmp.ne.s32.totalorder %s853_s19, %s849_s18 }
   0x5   : > { %p110_p2 = scmp.eq.s32.totalorder %s865_s22, 0  ;;  %p167_p4 = scmp.eq.s32.totalorder %s705_s24, 2 }
   0x6   : > { %s1042_s23 = smov (%p25_p0, %s24_s23), 0  ;;  %s102_s26 = sadd.s32 1, %s853_s19 }
   0x7   : > { %p111_p3 = por %p110_p2, %p109_p1  ;;  %s99_s25 = ssub.s32 %s861_s21, %s1042_s23 }
   0x8   : > { %p100_p5 = scmp.eq.s32.totalorder %s99_s25, 0  ;;  %p934_p6 = por %p167_p4, %p109_p1 }
   0x9   : > { %p709_p7 = scmp.ge.s32.totalorder %s865_s22, 3 }
   0xa   : > { %s939_s28 = scalar_select %p100_p5, %s853_s19, %s102_s26  }
   0xb   : > { %204 = sbr.rel (%p709_p7) target bundleno = 32 (0x20), region = 28 }
  0x12   : > { %207 = sbr.rel (!%p111_p3) target bundleno = 32 (0x20), region = 32  ;;  %s209_s29 = sand.u32 (%p111_p3), 1, %s853_s19  }
  0x13   : > { %s711_s30 = sshll.u32 (%p111_p3), %s861_s21, 2  ;;  %s710_s6 = sshll.u32 (%p111_p3), %s209_s29, 6 }
  0x14   : > { %s947_s9 = scalar_lea.vmem (%p111_p3), %s1033_s3, %s711_s30  ;;  %s211_s10 = scalar_lea.vmem (%p111_p3), [#allocation3], %s710_s6 }
  0x15   : > { %v229_v0 = vld [vmem:[%s947_s9] sm:$0xf] (%p111_p3)  ;;  %v231_v1 = vld [vmem:[%s947_s9 + $0xc] sm:$0xf] (%p111_p3)  ;;  %v233_v2 = vld [vmem:[%s947_s9 + $0x18] sm:$0xf] (%p111_p3) }
  0x16   : > { %230 = vst [vmem:[%s211_s10] sm:$0xf] (%p111_p3), %v229_v0  ;;  %232 = vst [vmem:[%s211_s10 + $0x4] sm:$0xf] (%p111_p3), %v231_v1  ;;  %v235_v3 = vld [vmem:[%s947_s9 + $0x24] sm:$0xf] (%p111_p3) }
  0x17   : > { %v237_v4 = vld [vmem:[%s947_s9 + $0x30] sm:$0xf] (%p111_p3)  ;;  %234 = vst [vmem:[%s211_s10 + $0x8] sm:$0xf] (%p111_p3), %v233_v2  ;;  %236 = vst [vmem:[%s211_s10 + $0xc] sm:$0xf] (%p111_p3), %v235_v3 }
  0x18   : > { %238 = vst [vmem:[%s211_s10 + $0x10] sm:$0xf] (%p111_p3), %v237_v4  ;;  %v239_v5 = vld [vmem:[%s947_s9 + $0x3c] sm:$0xf] (%p111_p3)  ;;  %v241_v6 = vld [vmem:[%s947_s9 + $0x48] sm:$0xf] (%p111_p3) }
  0x19   : > { %v243_v7 = vld [vmem:[%s947_s9 + $0x54] sm:$0xf]  ;;  %240 = vst [vmem:[%s211_s10 + $0x14] sm:$0xf] %v239_v5  ;;  %242 = vst [vmem:[%s211_s10 + $0x18] sm:$0xf] %v241_v6 }
  0x1a   : > { %244 = vst [vmem:[%s211_s10 + $0x1c] sm:$0xf] %v243_v7  ;;  %v245_v8 = vld [vmem:[%s947_s9 + $0x60] sm:$0xf]  ;;  %v247_v9 = vld [vmem:[%s947_s9 + $0x6c] sm:$0xf] }
  0x1b   : > { %v249_v10 = vld [vmem:[%s947_s9 + $0x78] sm:$0xf]  ;;  %246 = vst [vmem:[%s211_s10 + $0x20] sm:$0xf] %v245_v8  ;;  %248 = vst [vmem:[%s211_s10 + $0x24] sm:$0xf] %v247_v9 }
  0x1c   : > { %250 = vst [vmem:[%s211_s10 + $0x28] sm:$0xf] %v249_v10  ;;  %v251_v11 = vld [vmem:[%s947_s9 + $0x84] sm:$0xf]  ;;  %v253_v12 = vld [vmem:[%s947_s9 + $0x90] sm:$0xf] }
  0x1d   : > { %v255_v13 = vld [vmem:[%s947_s9 + $0x9c] sm:$0xf]  ;;  %252 = vst [vmem:[%s211_s10 + $0x2c] sm:$0xf] %v251_v11  ;;  %254 = vst [vmem:[%s211_s10 + $0x30] sm:$0xf] %v253_v12 }
  0x1e   : > { %256 = vst [vmem:[%s211_s10 + $0x34] sm:$0xf] %v255_v13  ;;  %v257_v14 = vld [vmem:[%s947_s9 + $0xa8] sm:$0xf]  ;;  %v259_v15 = vld [vmem:[%s947_s9 + $0xb4] sm:$0xf] }
  0x1f   : > { %258 = vst [vmem:[%s211_s10 + $0x38] sm:$0xf] %v257_v14  ;;  %260 = vst [vmem:[%s211_s10 + $0x3c] sm:$0xf] %v259_v15 }
  0x20 PF: > { %p712_p8 = scmp.ge.s32.totalorder %s865_s22, 1  ;;  %p320_p9 = scmp.lt.s32.totalorder %s865_s22, 4 }
  0x22   : > { %p321_p10 = pnand %p712_p8, %p320_p9 }
  0x23   : > { %s327_s11 = sand.u32 (!%p321_p10), 1, %s849_s18   ;;  %p367_p11 = scmp.lt.s32.totalorder (!%p321_p10), %s857_s20, 2 }
  0x24   : > { %324 = sbr.rel (%p321_p10) target bundleno = 636 (0x27c), region = 77  ;;  %s713_s12 = sshll.u32 (!%p321_p10), %s327_s11, 6 }
  0x25   : > { %s714_s13 = sshll.u32 (!%p321_p10), %s327_s11, 3  ;;  %s976_s24 = scalar_lea.vmem (!%p321_p10), [#allocation3], %s713_s12 }
  0x26   : > { %s978_s25 = scalar_lea.vmem (!%p321_p10), [#allocation4], %s714_s13  ;;  %p715_p12 = scmp.ne.s32.totalorder (!%p321_p10), %s857_s20, 0 }
  0x2b   : > { %s970_s14 = scalar_select %p367_p11, %s857_s20, 2 }
  0x2c   : > { %375 = sbr.rel (%p715_p12) target bundleno = 376 (0x178), region = 85  ;;  %v376_v16 = vld [vmem:[%s1030_s0] sm:$0xff] (!%p715_p12)  ;;  %v377_v17 = vld [vmem:[%s1030_s0 + $0x8] sm:$0xff] (!%p715_p12) }
  0x2d   : > { %s369_s17 = scalar_lea.vmem %s1034_s4, %s970_s14  ;;  %380 = vadd.xlane.f32.xlu0 (!%p715_p12), %v376_v16  ;;  %v716_v42 = vld [vmem:[%s1031_s1] ss:$0 sm:$0xff] (!%p715_p12) }
  0x2e   : > { %v717_v48 = vld [vmem:[%s1032_s2] ss:$0 sm:$0xff] (!%p715_p12) }
  0x31   : > { %382 = vadd.xlane.f32.xlu0 (!%p715_p12), %v377_v17 }
  0xba   : > { %v381_v18 = vpop.xlane.xlu0 %380 }
  0xbb   : > { %v385_v19 = vmul.f32 0.0078125, %v381_v18 }
  0xbd   : > { %v387_v20 = vsub.f32 %v376_v16, %v385_v19 }
  0xbe   : > { %v383_v21 = vpop.xlane.xlu0 %382 }
  0xbf   : > { %v386_v22 = vmul.f32 0.0078125, %v383_v21  ;;  %v389_v23 = vmul.f32 %v387_v20, %v387_v20  ;;  %v418_v44 = vmul.f32 %v716_v42, %v387_v20 }
  0xc1   : > { %v388_v24 = vsub.f32 %v377_v17, %v386_v22  ;;  %391 = vadd.xlane.f32.xlu1 %v389_v23 }
  0xc3   : > { %v390_v25 = vmul.f32 %v388_v24, %v388_v24  ;;  %v419_v45 = vmul.f32 %v716_v42, %v388_v24 }
  0xc5   : > { %393 = vadd.xlane.f32.xlu1 %v390_v25 }
 0x14e   : > { %v392_v26 = vpop.xlane.xlu1 %391 }
 0x14f   : > { %v396_v27 = vmul.f32 0.007874016, %v392_v26 }
 0x151   : > { %811 = vrsqrt.f32 %v396_v27  ;;  %vm400_vm0 = vcmp.eq.f32.partialorder %v396_v27, inf  ;;  %v403_v32 = vand.u32 2147483648, %v396_v27  ;;  %vm402_vm1 = vcmp.eq.f32.partialorder %v396_v27, 0.0 }
 0x152   : > { %v394_v28 = vpop.xlane.xlu1 %393 }
 0x153   : > { %v397_v29 = vmul.f32 0.007874016, %v394_v28 }
 0x155   : > { %813 = vrsqrt.f32 %v397_v29  ;;  %vm407_vm2 = vcmp.eq.f32.partialorder %v397_v29, inf  ;;  %v410_v38 = vand.u32 2147483648, %v397_v29  ;;  %vm409_vm3 = vcmp.eq.f32.partialorder %v397_v29, 0.0 }
 0x15b   : > { %v812_v30 = vpop.eup %811 }
 0x15c   : > { %v399_v31 = vmul.f32 %v812_v30, %v396_v27 }
 0x15e   : > { %v401_v33 = vsel %vm400_vm0, %v396_v27, %v399_v31 }
 0x15f   : > { %v814_v34 = vpop.eup %813  ;;  %v404_v35 = vsel %vm402_vm1, %v403_v32, %v401_v33 }
 0x160   : > { %v420_v36 = vadd.f32 1e-06, %v404_v35  ;;  %v406_v37 = vmul.f32 %v814_v34, %v397_v29 }
 0x162   : > { %815 = vrcp.f32 %v420_v36  ;;  %v408_v39 = vsel %vm407_vm2, %v397_v29, %v406_v37 }
 0x163   : > { %v411_v40 = vsel %vm409_vm3, %v410_v38, %v408_v39 }
 0x164   : > { %v421_v41 = vadd.f32 1e-06, %v411_v40 }
 0x166   : > { %817 = vrcp.f32 %v421_v41 }
 0x16c   : > { %v816_v43 = vpop.eup %815 }
 0x16d   : > { %v423_v46 = vmul.f32 %v816_v43, %v418_v44 }
 0x16f   : > { %v432_v50 = vadd.f32 %v717_v48, %v423_v46 }
 0x170   : > { %v818_v47 = vpop.eup %817 }
 0x171   : > { %v425_v49 = vmul.f32 %v818_v47, %v419_v45 }
 0x173   : > { %v433_v51 = vadd.f32 %v717_v48, %v425_v49 }
 0x175   : > { %v434_v52 = vpack.c.bf16 %v433_v51, %v432_v50 }
 0x177   : > { %435 = vst [vmem:[#allocation2] sm:$0xff] %v434_v52 }
 0x178 PF: > { %v819_v53 = vld [vmem:[%s976_s24] sm:$0xff]   ;;  %v867_v54 = vmov 0.0   ;;  %v820_v55 = vld [vmem:[%s976_s24 + $0x8] sm:$0xff]   ;;  %vm868_vm4 = vmmov 0   ;;  %v821_v56 = vld [vmem:[%s976_s24 + $0x10] sm:$0xff]   ;;  %s730_s12 = sshll.u32 (%p934_p6), %s857_s20, 2 }
 0x179   : > { %749 = vmatprep.subr.bf16.mxu0 %v867_v54  ;;  %765 = vmatprep.mubr.msk.bf16.mxu0 %vm868_vm4, %v867_v54  ;;  %v822_v57 = vld [vmem:[%s976_s24 + $0x18] sm:$0xff]   ;;  %v823_v58 = vld [vmem:[%s976_s24 + $0x20] sm:$0xff]   ;;  %v824_v59 = vld [vmem:[%s976_s24 + $0x28] sm:$0xff]   ;;  %s570_s15 = scalar_lea.vmem (%p934_p6), %s1035_s5, %s730_s12 }
 0x17a   : > { %750 = vmatpush3.bf16.msra.mxu0 %v819_v53  ;;  %v825_v60 = vld [vmem:[%s976_s24 + $0x30] sm:$0xff]   ;;  %v826_v61 = vld [vmem:[%s976_s24 + $0x38] sm:$0xff]  }
 0x17b   : > { %751 = vmatprep.subr.bf16.mxu0 %v867_v54  ;;  %v718_v63 = vld [vmem:[%s369_s17] ss:$0 sm:$0xff] }
 0x17e   : > { %752 = vmatpush3.bf16.msra.mxu0 %v820_v55  ;;  %v436_v62 = vld [vmem:[#allocation2] sm:$0xff] }
 0x17f   : > { %753 = vmatprep.subr.bf16.mxu0 %v867_v54 }
 0x182   : > { %754 = vmatpush3.bf16.msra.mxu0 %v821_v56 }
 0x183   : > { %755 = vmatprep.subr.bf16.mxu0 %v867_v54 }
 0x186   : > { %756 = vmatpush3.bf16.msra.mxu0 %v822_v57 }
 0x187   : > { %757 = vmatprep.subr.bf16.mxu0 %v867_v54 }
 0x18a   : > { %758 = vmatpush3.bf16.msra.mxu0 %v823_v58 }
 0x18b   : > { %759 = vmatprep.subr.bf16.mxu0 %v867_v54 }
 0x18e   : > { %760 = vmatpush3.bf16.msra.mxu0 %v824_v59 }
 0x18f   : > { %761 = vmatprep.subr.bf16.mxu0 %v867_v54 }
 0x192   : > { %762 = vmatpush3.bf16.msra.mxu0 %v825_v60 }
 0x193   : > { %763 = vmatprep.subr.bf16.mxu0 %v867_v54 }
 0x196   : > { %764 = vmatpush3.bf16.msra.mxu0 %v826_v61 }
 0x199   : > { %766 = vmatmul.mubr.bf16.vlgmr.msra.gmra.mrb[0].mxu0 %v436_v62 }
 0x26c   : > { %v542_v0 = vpop.f32.mrb[0].mxu0 }
 0x26d   : > { %v767_v1 = vpop.f32.mrb[1].mxu0  ;;  %v543_v3 = vadd.f32 %v718_v63, %v542_v0  ;;  %565 = sbr.rel (!%p934_p6) target bundleno = 636 (0x27c), region = 89 }
 0x26e   : > { %v545_v2 = vpop.f32.mrb[2].mxu0 }
 0x26f   : > { %v546_v4 = vadd.f32 %v718_v63, %v545_v2  ;;  %v768_v5 = vpop.f32.mrb[3].mxu0 }
 0x271   : > { %v738_v6 = vpack.c.bf16 %v546_v4, %v543_v3 }
 0x273   : > { %739 = vst [vmem:[%s978_s25] sm:$0xff] %v738_v6  }
 0x27a   : > { %v586_v7 = vld [vmem:[%s978_s25] sm:$0xf]  ;;  %v588_v8 = vld [vmem:[%s978_s25 + $0x4] sm:$0xf] }
 0x27b   : > { %587 = vst [vmem:[%s570_s15] sm:$0xf] %v586_v7  ;;  %589 = vst [vmem:[%s570_s15 + $0xc] sm:$0xf] %v588_v8 }
 0x27c PF: > { %s15_s22 = sadd.s32 1, %s865_s22   ;;  %s1037_s18 = smov %s853_s19 }
 0x27d   : > { %p12_p13 = scmp.ge.s32.totalorder %s15_s22, 5   ;;  %s1038_s19 = smov %s939_s28 }
 0x27e   : > { %s1039_s20 = smov %s861_s21  ;;  %s1040_s21 = smov %s1042_s23 }
 0x27f   :  { %14 = sbr.rel (!%p12_p13) target bundleno = 3 (0x3), region = 167 }

// kernel: decoder_forward.18
= control target key start
LH: loop header
LB: loop body
LE: loop exit
PB: predicated region body
PF: predicated region fallthrough
CT: control target
= control target key end

     0   :  { %v556_v21 = vmov 0   ;;  %s737_s0 = inlined_call_operand.vmem [shape: f32[16,128], index: 0, kind: input, shape index: {}]   ;;  %s738_s3 = inlined_call_operand.vmem [shape: bf16[128,256], index: 3, kind: input, shape index: {}]   ;;  %s739_s5 = inlined_call_operand.vmem [shape: bf16[256,128], index: 5, kind: input, shape index: {}]   ;;  %s740_s1 = inlined_call_operand.vmem [shape: f32[1,128], index: 1, kind: input, shape index: {}]   ;;  %s741_s2 = inlined_call_operand.vmem [shape: f32[1,128], index: 2, kind: input, shape index: {}]   ;;  %s742_s4 = inlined_call_operand.vmem [shape: f32[1,256], index: 4, kind: input, shape index: {}]   ;;  %s743_s6 = inlined_call_operand.vmem [shape: f32[1,128], index: 6, kind: input, shape index: {}]   ;;  %s744_s7 = inlined_call_operand.vmem [shape: f32[16,128], index: 7, kind: output, shape index: {}]  }
   0x1   :  { %v600_v0 = vld [vmem:[%s737_s0] sm:$0xff]  ;;  %v606_v1 = vld [vmem:[%s737_s0 + $0x8] sm:$0xff]  ;;  %v511_v12 = vld [vmem:[%s738_s3 + $0x14] ss:$8 sps:$4 sm:$0xff]   ;;  %234 = vmatprep.mubr.bf16.mxu0 %v556_v21 }
   0x2   :  { %35 = vadd.xlane.f32.xlu0 %v600_v0  ;;  %v508_v10 = vld [vmem:[%s738_s3 + $0x4] ss:$8 sps:$4 sm:$0xff]   ;;  %v510_v11 = vld [vmem:[%s738_s3] ss:$8 sps:$4 sm:$0xff]   ;;  %v513_v13 = vld [vmem:[%s738_s3 + $0x10] ss:$8 sps:$4 sm:$0xff]  }
   0x3   :  { %202 = vmatprep.subr.bf16.mxu0 %v508_v10  ;;  %v514_v14 = vld [vmem:[%s738_s3 + $0x24] ss:$8 sps:$4 sm:$0xff]   ;;  %v516_v15 = vld [vmem:[%s738_s3 + $0x20] ss:$8 sps:$4 sm:$0xff]   ;;  %v517_v16 = vld [vmem:[%s738_s3 + $0x34] ss:$8 sps:$4 sm:$0xff]  }
   0x4   :  { %203 = vmatpush1.bf16.msra.mxu0 %v510_v11  ;;  %v519_v17 = vld [vmem:[%s738_s3 + $0x30] ss:$8 sps:$4 sm:$0xff]   ;;  %v520_v18 = vld [vmem:[%s738_s3 + $0x44] ss:$8 sps:$4 sm:$0xff]   ;;  %v522_v19 = vld [vmem:[%s738_s3 + $0x40] ss:$8 sps:$4 sm:$0xff]  }
   0x5   :  { %204 = vmatprep.subr.bf16.mxu0 %v511_v12  ;;  %v523_v20 = vld [vmem:[%s738_s3 + $0x54] ss:$8 sps:$4 sm:$0xff]   ;;  %v525_v22 = vld [vmem:[%s738_s3 + $0x50] ss:$8 sps:$4 sm:$0xff]   ;;  %v526_v23 = vld [vmem:[%s738_s3 + $0x64] ss:$8 sps:$4 sm:$0xff]  }
   0x6   :  { %37 = vadd.xlane.f32.xlu0 %v606_v1  ;;  %v528_v24 = vld [vmem:[%s738_s3 + $0x60] ss:$8 sps:$4 sm:$0xff]   ;;  %v529_v25 = vld [vmem:[%s738_s3 + $0x74] ss:$8 sps:$4 sm:$0xff]   ;;  %v531_v26 = vld [vmem:[%s738_s3 + $0x70] ss:$8 sps:$4 sm:$0xff]  }
   0x7   :  { %v532_v27 = vld [vmem:[%s739_s5 + $0x40] sm:$0xff]   ;;  %v534_v29 = vld [vmem:[%s739_s5 + $0x48] sm:$0xff]   ;;  %v536_v31 = vld [vmem:[%s739_s5 + $0x50] sm:$0xff]  }
   0x8   :  { %205 = vmatpush1.bf16.msra.mxu0 %v513_v13  ;;  %v533_v28 = vld [vmem:[%s739_s5] sm:$0xff]   ;;  %485 = vmatprep.subr.bf16.mxu1 %v532_v27  ;;  %v535_v30 = vld [vmem:[%s739_s5 + $0x8] sm:$0xff]   ;;  %v537_v32 = vld [vmem:[%s739_s5 + $0x10] sm:$0xff]  }
   0x9   :  { %206 = vmatprep.subr.bf16.mxu0 %v514_v14  ;;  %486 = vmatpush3.bf16.msra.mxu1 %v533_v28  ;;  %v538_v33 = vld [vmem:[%s739_s5 + $0x58] sm:$0xff]   ;;  %v540_v35 = vld [vmem:[%s739_s5 + $0x60] sm:$0xff]   ;;  %v542_v37 = vld [vmem:[%s739_s5 + $0x68] sm:$0xff]  }
   0xa   :  { %487 = vmatprep.subr.bf16.mxu1 %v534_v29  ;;  %v539_v34 = vld [vmem:[%s739_s5 + $0x18] sm:$0xff]   ;;  %v541_v36 = vld [vmem:[%s739_s5 + $0x20] sm:$0xff]  }
   0xb   :  { %v450_v54 = vld [vmem:[%s740_s1] ss:$0 sm:$0xff] }
   0xc   :  { %207 = vmatpush1.bf16.msra.mxu0 %v516_v15  ;;  %v451_v60 = vld [vmem:[%s741_s2] ss:$0 sm:$0xff] }
   0xd   :  { %208 = vmatprep.subr.bf16.mxu0 %v517_v16  ;;  %488 = vmatpush3.bf16.msra.mxu1 %v535_v30  ;;  %v110_v11 = vld [vmem:[%s742_s4] sm:$0x3] }
   0xe   :  { %489 = vmatprep.subr.bf16.mxu1 %v536_v31 }
  0x10   :  { %209 = vmatpush1.bf16.msra.mxu0 %v519_v17 }
  0x11   :  { %210 = vmatprep.subr.bf16.mxu0 %v520_v18  ;;  %490 = vmatpush3.bf16.msra.mxu1 %v537_v32 }
  0x12   :  { %491 = vmatprep.subr.bf16.mxu1 %v538_v33  ;;  %v484_v33 = vld [vmem:[%s743_s6] ss:$0 sm:$0xff] }
  0x14   :  { %211 = vmatpush1.bf16.msra.mxu0 %v522_v19 }
  0x15   :  { %212 = vmatprep.subr.bf16.mxu0 %v523_v20  ;;  %492 = vmatpush3.bf16.msra.mxu1 %v539_v34 }
  0x16   :  { %493 = vmatprep.subr.bf16.mxu1 %v540_v35 }
  0x18   :  { %213 = vmatpush1.bf16.msra.mxu0 %v525_v22 }
  0x19   :  { %214 = vmatprep.subr.bf16.mxu0 %v526_v23  ;;  %494 = vmatpush3.bf16.msra.mxu1 %v541_v36 }
  0x1a   :  { %495 = vmatprep.subr.bf16.mxu1 %v542_v37 }
  0x1c   :  { %215 = vmatpush1.bf16.msra.mxu0 %v528_v24 }
  0x1d   :  { %216 = vmatprep.subr.bf16.mxu0 %v529_v25 }
  0x20   :  { %217 = vmatpush1.bf16.msra.mxu0 %v531_v26 }
  0x8f   :  { %v36_v2 = vpop.xlane.xlu0 %35 }
  0x90   :  { %v40_v3 = vmul.f32 0.0078125, %v36_v2 }
  0x92   :  { %v610_v4 = vsub.f32 %v600_v0, %v40_v3  ;;  %v543_v3 = vld [vmem:[%s739_s5 + $0x28] sm:$0xff]  }
  0x93   :  { %v38_v5 = vpop.xlane.xlu0 %37  ;;  %496 = vmatpush3.bf16.msra.mxu1 %v543_v3 }
  0x94   :  { %v41_v6 = vmul.f32 0.0078125, %v38_v5  ;;  %v44_v7 = vmul.f32 %v610_v4, %v610_v4  ;;  %v73_v56 = vmul.f32 %v450_v54, %v610_v4  ;;  %v544_v4 = vld [vmem:[%s739_s5 + $0x70] sm:$0xff]  }
  0x95   :  { %v545_v5 = vld [vmem:[%s739_s5 + $0x30] sm:$0xff]   ;;  %497 = vmatprep.subr.bf16.mxu1 %v544_v4 }
  0x96   :  { %v615_v8 = vsub.f32 %v606_v1, %v41_v6  ;;  %46 = vadd.xlane.f32.xlu1 %v44_v7  ;;  %v546_v6 = vld [vmem:[%s739_s5 + $0x78] sm:$0xff]  }
  0x97   :  { %498 = vmatpush3.bf16.msra.mxu1 %v545_v5  ;;  %v547_v7 = vld [vmem:[%s739_s5 + $0x38] sm:$0xff]  }
  0x98   :  { %v45_v9 = vmul.f32 %v615_v8, %v615_v8  ;;  %v74_v57 = vmul.f32 %v450_v54, %v615_v8  ;;  %499 = vmatprep.subr.bf16.mxu1 %v546_v6  ;;  %v112_v8 = vlaneseq }
  0x9a   :  { %48 = vadd.xlane.f32.xlu1 %v45_v9  ;;  %v113_v9 = vshrl.u32 %v112_v8, 7 }
  0x9b   :  { %500 = vmatpush3.bf16.msra.mxu1 %v547_v7 }
  0x9c   :  { %v114_v10 = vsub.s32 0, %v113_v9  ;;  %v118_v12 = vsub.s32 1, %v113_v9 }
  0x9e   :  { %v115_v13 = vrot.slane %v110_v11, %v114_v10  ;;  %v119_v14 = vrot.slane %v110_v11, %v118_v12 }
 0x123   :  { %v47_v38 = vpop.xlane.xlu1 %46 }
 0x124   :  { %v51_v39 = vmul.f32 0.007874016, %v47_v38 }
 0x126   :  { %548 = vrsqrt.f32 %v51_v39  ;;  %vm55_vm0 = vcmp.eq.f32.partialorder %v51_v39, inf  ;;  %v58_v44 = vand.u32 2147483648, %v51_v39  ;;  %vm57_vm1 = vcmp.eq.f32.partialorder %v51_v39, 0.0 }
 0x127   :  { %v49_v40 = vpop.xlane.xlu1 %48 }
 0x128   :  { %v52_v41 = vmul.f32 0.007874016, %v49_v40 }
 0x12a   :  { %550 = vrsqrt.f32 %v52_v41  ;;  %vm62_vm2 = vcmp.eq.f32.partialorder %v52_v41, inf  ;;  %v65_v50 = vand.u32 2147483648, %v52_v41  ;;  %vm64_vm3 = vcmp.eq.f32.partialorder %v52_v41, 0.0 }
 0x130   :  { %v549_v42 = vpop.eup %548 }
 0x131   :  { %v54_v43 = vmul.f32 %v549_v42, %v51_v39 }
 0x133   :  { %v56_v45 = vsel %vm55_vm0, %v51_v39, %v54_v43 }
 0x134   :  { %v551_v46 = vpop.eup %550  ;;  %v59_v47 = vsel %vm57_vm1, %v58_v44, %v56_v45 }
 0x135   :  { %v61_v48 = vmul.f32 %v551_v46, %v52_v41  ;;  %v75_v49 = vadd.f32 1e-06, %v59_v47 }
 0x137   :  { %v63_v51 = vsel %vm62_vm2, %v52_v41, %v61_v48  ;;  %552 = vrcp.f32 %v75_v49 }
 0x138   :  { %v66_v52 = vsel %vm64_vm3, %v65_v50, %v63_v51 }
 0x139   :  { %v76_v53 = vadd.f32 1e-06, %v66_v52 }
 0x13b   :  { %554 = vrcp.f32 %v76_v53 }
 0x141   :  { %v553_v55 = vpop.eup %552 }
 0x142   :  { %v78_v58 = vmul.f32 %v553_v55, %v73_v56 }
 0x144   :  { %v87_v62 = vadd.f32 %v451_v60, %v78_v58 }
 0x145   :  { %v555_v59 = vpop.eup %554 }
 0x146   :  { %v80_v61 = vmul.f32 %v555_v59, %v74_v57 }
 0x148   :  { %v88_v63 = vadd.f32 %v451_v60, %v80_v61 }
 0x14a   :  { %v89_v2 = vpack.c.bf16 %v88_v63, %v87_v62 }
 0x14c   :  { %235 = vmatmul.mubr.bf16.vlgmr.msra.gmra.mrb[0].mxu0 %v89_v2 }
 0x21f   :  { %v236_v15 = vpop.f32.mrb[0].mxu0 }
 0x220   :  { %v237_v16 = vadd.f32 %v236_v15, %v115_v13  ;;  %v238_v17 = vpop.f32.mrb[1].mxu0 }
 0x221   :  { %v239_v18 = vadd.f32 %v238_v17, %v119_v14  ;;  %v240_v19 = vpop.f32.mrb[2].mxu0 }
 0x222   :  { %v241_v20 = vadd.f32 %v240_v19, %v115_v13  ;;  %v242_v21 = vpop.f32.mrb[3].mxu0  ;;  %v245_v23 = vmax.f32 %v237_v16, 0.0 }
 0x223   :  { %v243_v22 = vadd.f32 %v242_v21, %v119_v14  ;;  %v246_v25 = vmax.f32 %v239_v18, 0.0 }
 0x224   :  { %v247_v24 = vmax.f32 %v241_v20, 0.0 }
 0x225   :  { %v248_v26 = vmax.f32 %v243_v22, 0.0 }
 0x226   :  { %v251_v27 = vpack.c.bf16 %v247_v24, %v245_v23 }
 0x227   :  { %v252_v28 = vpack.c.bf16 %v248_v26, %v246_v25 }
 0x229   :  { %413 = vmatprep.mubr.bf16.mxu1 %v252_v28 }
 0x22a   :  { %414 = vmatmul.mubr.bf16.vlgmr.msra.gmra.mrb[0].mxu1 %v251_v27 }
 0x2fd   :  { %v501_v29 = vpop.f32.mrb[0].mxu1 }
 0x2fe   :  { %v502_v30 = vpop.f32.mrb[1].mxu1 }
 0x2ff   :  { %v503_v31 = vadd.f32 %v502_v30, %v501_v29  ;;  %v504_v32 = vpop.f32.mrb[2].mxu1 }
 0x300   :  { %v505_v34 = vpop.f32.mrb[3].mxu1 }
 0x301   :  { %v433_v35 = vadd.f32 %v503_v31, %v600_v0  ;;  %v506_v36 = vadd.f32 %v505_v34, %v504_v32 }
 0x303   :  { %v442_v37 = vadd.f32 %v484_v33, %v433_v35  ;;  %v434_v38 = vadd.f32 %v506_v36, %v606_v1 }
 0x305   :  { %444 = vst [vmem:[%s744_s7] sm:$0xff] %v442_v37  ;;  %v443_v39 = vadd.f32 %v484_v33, %v434_v38 }
 0x307   :  { %445 = vst [vmem:[%s744_s7 + $0x8] sm:$0xff] %v443_v39 }

// kernel: decoder_forward.17
= control target key start
LH: loop header
LB: loop body
LE: loop exit
PB: predicated region body
PF: predicated region fallthrough
CT: control target
= control target key end

     0   :  { %s1422_s24 = smov 0   ;;  %s1582_s0 = inlined_call_operand.vmem [shape: bf16[2,8,128], index: 0, kind: input, shape index: {}]   ;;  %s1583_s1 = inlined_call_operand.vmem [shape: bf16[2,8,256], index: 1, kind: input, shape index: {}, may-alias: {1,2}]   ;;  %s1584_s2 = inlined_call_operand.vmem [shape: bf16[2,8,256], index: 2, kind: input, shape index: {}, may-alias: {1,2}]   ;;  %s1585_s3 = inlined_call_operand.vmem [shape: f32[2,1,8], index: 3, kind: input, shape index: {}]   ;;  %s1586_s4 = inlined_call_operand.vmem [shape: bf16[128,128], index: 4, kind: input, shape index: {}]   ;;  %s1587_s5 = inlined_call_operand.vmem [shape: f32[1,128], index: 5, kind: input, shape index: {}]   ;;  %s1588_s6 = inlined_call_operand.vmem [shape: f32[2,8,128], index: 6, kind: input, shape index: {}]   ;;  %s1589_s7 = inlined_call_operand.vmem [shape: f32[2,8,128], index: 7, kind: output, shape index: {}]  }
   0x1 LB: > { %s1165_s25 = sadd.s32 4294967295, %s1374_s24   ;;  %p1169_p0 = scmp.ge.s32.totalorder %s1374_s24, 1  ;;  %s1374_s24 = sphi %s1422_s24, %s17_s24  }
   0x2   : > { %p274_p1 = scmp.lt.s32.totalorder %s1374_s24, 3 }
   0x4   : > { %p275_p2 = pnand %p1169_p0, %p274_p1 }
   0x5   : > { %p322_p3 = scmp.lt.s32.totalorder (!%p275_p2), %s1165_s25, 1  ;;  %v1376_v0 = vmov (!%p275_p2), 0.0   ;;  %vm1377_vm0 = vmmov (!%p275_p2), 0   ;;  %vm370_vm1 = vcmask (!%p275_p2), 261120   ;;  %v365_v4 = vlaneseq (!%p275_p2)  ;;  %s1379_s14 = smov (!%p275_p2), 96   ;;  %v1343_v26 = vld [vmem:[%s1586_s4] sm:$0xff] (!%p275_p2)  }
   0x6   : > { %278 = sbr.rel (%p275_p2) target bundleno = 2068 (0x814), region = 48  ;;  %1234 = vmatprep.subr.bf16.mxu0 (!%p275_p2), %v1376_v0  ;;  %1236 = vmatprep.mubr.msk.bf16.mxu0 (!%p275_p2), %vm1377_vm0, %v1376_v0  ;;  %v1378_v8 = vmov (!%p275_p2), -1e+09   ;;  %vm417_vm3 = vcmask (!%p275_p2), 64512   ;;  %s1380_s15 = smov (!%p275_p2), 64   ;;  %vm433_vm4 = vcmask (!%p275_p2), 1043456  }
   0x7   : > { %1246 = vmatprep.subr.bf16.mxu1 (!%p275_p2), %v1376_v0  ;;  %1250 = vmatprep.mubr.msk.bf16.mxu1 (!%p275_p2), %vm1377_vm0, %v1376_v0  ;;  %v366_v6 = vshrl.u32 (!%p275_p2), %v365_v4, 7  ;;  %v1344_v37 = vld [vmem:[%s1586_s4 + $0x8] sm:$0xff] (!%p275_p2)   ;;  %s1381_s23 = smov (!%p275_p2), 32  }
   0x8   : > { %1247 = vmatpush3.bf16.msra.mxu1 (!%p275_p2), %v1343_v26 }
   0x9   : > { %v367_v7 = vsub.s32 (!%p275_p2), 0, %v366_v6  ;;  %1248 = vmatprep.subr.bf16.mxu1 (!%p275_p2), %v1376_v0 }
   0xc   : > { %1249 = vmatpush3.bf16.msra.mxu1 (!%p275_p2), %v1344_v37 }
   0xd   : > { %s1591_s25 = smov (!%p322_p3, %s1165_s25), 1  ;;  %1260 = vmatprep.subr.bf16.mxu1 %v1376_v0 }
   0xe   : > { %s1436_s26 = sshll.u32 %s1591_s25, 3  ;;  %s1170_s30 = sshll.u32 %s1591_s25, 2 }
   0xf   : > { %s330_s29 = scalar_lea.vmem %s1583_s1, %s1436_s26  ;;  %s325_s10 = scalar_lea.vmem %s1582_s0, %s1170_s30 }
  0x10   : > { %v350_v1 = vld [vmem:[%s330_s29] sm:$0xf]  ;;  %s339_s13 = scalar_lea.vmem %s1585_s3, %s1591_s25  ;;  %s1110_s18 = scalar_lea.vmem %s1584_s2, %s1436_s26 }
  0x11   : > { %v375_v2 = vsel %vm370_vm1, %v350_v1, 0  ;;  %v349_v3 = vld [vmem:[%s325_s10] sm:$0xf]  ;;  %v1457_v17 = vcombine.low %v350_v1, %v350_v1  ;;  %v1177_v24 = vld [vmem:[%s1110_s18 + $0x4] sm:$0xf]  ;;  %s343_s17 = scalar_lea.vmem %s1588_s6, %s1436_s26  ;;  %s347_s22 = scalar_lea.vmem %s1589_s7, %s1436_s26 }
  0x12   : > { %1235 = vmatpush3.bf16.xpose.msra.mxu0 %v375_v2  ;;  %v352_v5 = vld [vmem:[%s339_s13] sm:$0x1]  ;;  %v1461_v18 = vcombine.low %v349_v3, %v349_v3  ;;  %v435_v25 = vsel %vm433_vm4, %v1177_v24, 0  ;;  %v1502_v53 = vcombine.low %v1177_v24, %v1177_v24 }
  0x13   : > { %1240 = vmatprep.subr.bf16.mxu0 %v1376_v0  ;;  %vm353_vm2 = vcmp.gt.f32.partialorder %v352_v5, 0.0  ;;  %546 = vrot.lane.b32.xlu1 %v1457_v17, %s1379_s14 }
  0x14   : > { %v354_v9 = vsel %vm353_vm2, 0.0, %v1378_v8 }
  0x15   : > { %v1453_v10 = vrot.slane %v354_v9, %v367_v7 }
  0x17   : > { %541 = vrot.lane.b32.xlu1 %v1461_v18, %s1379_s14 }
  0x19   : > { %1237 = vmatmul.mubr.msk.bf16.vlgmr.msra.gmra.mrb[0].mxu0 %vm370_vm1, %v349_v3 }
  0x1a   : > { %1242 = vmatprep.mubr.msk.bf16.mxu0 %vm1377_vm0, %v1376_v0  ;;  %1241 = vmatpush3.bf16.msra.mxu0 %v435_v25 }
  0x1b   : > { %718 = vrot.lane.b32.xlu1 %v1461_v18, %s1380_s15  ;;  %1254 = vmatprep.subr.bf16.mxu0 %v1376_v0 }
  0x85   : > { %v547_v29 = vpop.permute.xlu1 %546 }
  0x86   : > { %v552_v31 = vsel %vm370_vm1, %v547_v29, 0 }
  0x89   : > { %v542_v34 = vpop.permute.xlu1 %541 }
  0x8d   : > { %v719_v36 = vpop.permute.xlu1 %718 }
  0xec   : > { %v411_v11 = vpop.f32.mrb[0].mxu0 }
  0xed   : > { %v412_v12 = vadd.f32 %v411_v11, %v1453_v10  ;;  %v1238_v13 = vpop.f32.mrb[1].mxu0 }
  0xee   : > { %v414_v14 = vpop.f32.mrb[2].mxu0 }
  0xef   : > { %v1239_v15 = vpop.f32.mrb[3].mxu0  ;;  %v418_v16 = vsel %vm417_vm3, %v412_v12, -inf }
  0xf0   : > { %419 = vmax.xlane.f32.xlu0 %v418_v16 }
 0x17d   : > { %v420_v19 = vpop.xlane.xlu0 %419 }
 0x17e   : > { %v421_v20 = vsub.f32 %v412_v12, %v420_v19  ;;  %v1346_v19 = vld [vmem:[%s1586_s4 + $0x10] sm:$0xff]  }
 0x180   : > { %v422_v21 = vmul.f32 1.442695, %v421_v20  ;;  %v1347_v20 = vld [vmem:[%s1586_s4 + $0x18] sm:$0xff]  }
 0x182   : > { %1352 = vpow2.f32 %v422_v21 }
 0x18c   : > { %v1353_v22 = vpop.eup %1352 }
 0x18d   : > { %v424_v23 = vsel %vm417_vm3, %v1353_v22, 0.0 }
 0x18e   : > { %425 = vadd.xlane.f32.xlu0 %v424_v23 }
 0x1a4   : > { %720 = vrot.lane.b32.xlu0 %v1457_v17, %s1380_s15 }
 0x21b   : > { %v426_v27 = vpop.xlane.xlu0 %425 }
 0x21c   : > { %1354 = vrcp.f32 %v426_v27 }
 0x21f   : > { %v721_v33 = vpop.permute.xlu0 %720 }
 0x220   : > { %v726_v35 = vsel %vm370_vm1, %v721_v33, 0 }
 0x226   : > { %v1355_v28 = vpop.eup %1354 }
 0x227   : > { %v428_v30 = vmul.f32 %v1355_v28, %v1353_v22 }
 0x229   : > { %v429_v32 = vpack.c.bf16 %v428_v30, %v428_v30 }
 0x22b   : > { %1243 = vmatmul.mubr.msk.bf16.vlgmr.msra.gmra.mrb[4].mxu0 %vm417_vm3, %v429_v32  ;;  %v1348_v32 = vld [vmem:[%s1586_s4 + $0x20] sm:$0xff]  }
 0x22c   : > { %1255 = vmatpush3.bf16.xpose.msra.mxu0 %v552_v31  ;;  %1256 = vmatprep.mubr.msk.bf16.mxu0 %vm1377_vm0, %v1376_v0 }
 0x22d   : > { %1274 = vmatprep.subr.bf16.mxu0 %v1376_v0 }
 0x233   : > { %1257 = vmatmul.mubr.msk.bf16.vlgmr.msra.gmra.mrb[8].mxu0 %vm370_vm1, %v542_v34 }
 0x234   : > { %1275 = vmatpush3.bf16.xpose.msra.mxu0 %v726_v35  ;;  %1276 = vmatprep.mubr.msk.bf16.mxu0 %vm1377_vm0, %v1376_v0 }
 0x235   : > { %1280 = vmatprep.subr.bf16.mxu0 %v1376_v0 }
 0x23b   : > { %1277 = vmatmul.mubr.msk.bf16.vlgmr.msra.gmra.mrb[12].mxu0 %vm370_vm1, %v719_v36 }
 0x23c   : > { %1282 = vmatprep.mubr.msk.bf16.mxu0 %vm1377_vm0, %v1376_v0 }
 0x2fe   : > { %v471_v38 = vpop.f32.mrb[4].mxu0 }
 0x2ff   : > { %v477_v39 = vpack.c.bf16 %v471_v38, %v471_v38  ;;  %v1244_v40 = vpop.f32.mrb[5].mxu0 }
 0x300   : > { %v474_v41 = vpop.f32.mrb[6].mxu0 }
 0x301   : > { %v1245_v42 = vpop.f32.mrb[7].mxu0  ;;  %1251 = vmatmul.mubr.msk.bf16.vlgmr.msra.gmra.mrb[0].mxu1 %vm370_vm1, %v477_v39 }
 0x302   : > { %1262 = vmatprep.mubr.msk.bf16.mxu1 %vm1377_vm0, %v1376_v0 }
 0x306   : > { %v588_v43 = vpop.f32.mrb[8].mxu0 }
 0x307   : > { %v1258_v44 = vpop.f32.mrb[9].mxu0  ;;  %v589_v54 = vadd.f32 %v588_v43, %v1453_v10 }
 0x308   : > { %v591_v45 = vpop.f32.mrb[10].mxu0 }
 0x309   : > { %v1259_v46 = vpop.f32.mrb[11].mxu0  ;;  %v594_v55 = vsel %vm417_vm3, %v589_v54, -inf }
 0x30e   : > { %v762_v47 = vpop.f32.mrb[12].mxu0 }
 0x30f   : > { %v763_v48 = vadd.f32 %v762_v47, %v1453_v10  ;;  %v1278_v49 = vpop.f32.mrb[13].mxu0 }
 0x310   : > { %v765_v50 = vpop.f32.mrb[14].mxu0 }
 0x311   : > { %v1279_v51 = vpop.f32.mrb[15].mxu0  ;;  %v768_v52 = vsel %vm417_vm3, %v763_v48, -inf  ;;  %v1351_v50 = vld [vmem:[%s1586_s4 + $0x38] sm:$0xff]  }
 0x312   : > { %769 = vmax.xlane.f32.xlu1 %v768_v52 }
 0x323   : > { %780 = vrot.lane.b32.xlu1 %v1502_v53, %s1380_s15 }
 0x327   : > { %889 = vrot.lane.b32.xlu1 %v1461_v18, %s1381_s23 }
 0x34b   : > { %595 = vmax.xlane.f32.xlu1 %v594_v55 }
 0x35c   : > { %609 = vrot.lane.b32.xlu1 %v1502_v53, %s1379_s14 }
 0x39f   : > { %v770_v56 = vpop.xlane.xlu1 %769 }
 0x3a0   : > { %v771_v57 = vsub.f32 %v763_v48, %v770_v56  ;;  %v1350_v48 = vld [vmem:[%s1586_s4 + $0x30] sm:$0xff]   ;;  %v355_v56 = vld [vmem:[%s343_s17] sm:$0xff] }
 0x3a2   : > { %v772_v58 = vmul.f32 1.442695, %v771_v57  ;;  %v1178_v57 = vld [vmem:[%s1587_s5] ss:$0 sm:$0xff] }
 0x3a3   : > { %v781_v59 = vpop.permute.xlu1 %780 }
 0x3a4   : > { %1356 = vpow2.f32 %v772_v58  ;;  %v786_v60 = vsel %vm433_vm4, %v781_v59, 0  ;;  %v363_v58 = vadd.f32 %v1178_v57, %v355_v56 }
 0x3a5   : > { %1281 = vmatpush3.bf16.msra.mxu0 %v786_v60 }
 0x3a6   : > { %1294 = vmatprep.subr.bf16.mxu0 %v1376_v0 }
 0x3a7   : > { %v890_v63 = vpop.permute.xlu1 %889 }
 0x3ae   : > { %v1357_v61 = vpop.eup %1356 }
 0x3af   : > { %v774_v62 = vsel %vm417_vm3, %v1357_v61, 0.0 }
 0x3b0   : > { %775 = vadd.xlane.f32.xlu0 %v774_v62 }
 0x3c6   : > { %891 = vrot.lane.b32.xlu0 %v1457_v17, %s1381_s23 }
 0x3d8   : > { %v596_v1 = vpop.xlane.xlu1 %595 }
 0x3d9   : > { %v597_v2 = vsub.f32 %v589_v54, %v596_v1 }
 0x3db   : > { %v598_v3 = vmul.f32 1.442695, %v597_v2 }
 0x3dc   : > { %v610_v6 = vpop.permute.xlu1 %609 }
 0x3dd   : > { %1358 = vpow2.f32 %v598_v3  ;;  %v615_v7 = vsel %vm433_vm4, %v610_v6, 0 }
 0x3de   : > { %1261 = vmatpush3.bf16.msra.mxu1 %v615_v7 }
 0x3df   : > { %1266 = vmatprep.subr.bf16.mxu1 %v1376_v0 }
 0x3e7   : > { %v1359_v4 = vpop.eup %1358 }
 0x3e8   : > { %v600_v5 = vsel %vm417_vm3, %v1359_v4, 0.0 }
 0x3e9   : > { %601 = vadd.xlane.f32.xlu0 %v600_v5 }
 0x43d   : > { %v776_v8 = vpop.xlane.xlu0 %775 }
 0x43e   : > { %1360 = vrcp.f32 %v776_v8 }
 0x441   : > { %v892_v11 = vpop.permute.xlu0 %891 }
 0x442   : > { %v897_v13 = vsel %vm370_vm1, %v892_v11, 0 }
 0x448   : > { %v1361_v9 = vpop.eup %1360 }
 0x449   : > { %v778_v12 = vmul.f32 %v1361_v9, %v1357_v61 }
 0x44b   : > { %v779_v14 = vpack.c.bf16 %v778_v12, %v778_v12 }
 0x44d   : > { %1283 = vmatmul.mubr.msk.bf16.vlgmr.msra.gmra.mrb[16].mxu0 %vm417_vm3, %v779_v14 }
 0x44e   : > { %1295 = vmatpush3.bf16.xpose.msra.mxu0 %v897_v13  ;;  %1296 = vmatprep.mubr.msk.bf16.mxu0 %vm1377_vm0, %v1376_v0 }
 0x455   : > { %1297 = vmatmul.mubr.msk.bf16.vlgmr.msra.gmra.mrb[20].mxu0 %vm370_vm1, %v890_v63 }
 0x476   : > { %v602_v15 = vpop.xlane.xlu0 %601 }
 0x477   : > { %1362 = vrcp.f32 %v602_v15 }
 0x481   : > { %v1363_v16 = vpop.eup %1362 }
 0x482   : > { %v604_v17 = vmul.f32 %v1363_v16, %v1359_v4 }
 0x484   : > { %v605_v18 = vpack.c.bf16 %v604_v17, %v604_v17 }
 0x486   : > { %1263 = vmatmul.mubr.msk.bf16.vlgmr.msra.gmra.mrb[4].mxu1 %vm417_vm3, %v605_v18 }
 0x487   : > { %1270 = vmatprep.mubr.msk.bf16.mxu1 %vm1377_vm0, %v1376_v0  ;;  %1267 = vmatpush3.bf16.msra.mxu1 %v1346_v19 }
 0x488   : > { %1268 = vmatprep.subr.bf16.mxu1 %v1376_v0 }
 0x48b   : > { %1269 = vmatpush3.bf16.msra.mxu1 %v1347_v20 }
 0x48c   : > { %1286 = vmatprep.subr.bf16.mxu1 %v1376_v0 }
 0x520   : > { %v822_v21 = vpop.f32.mrb[16].mxu0 }
 0x521   : > { %v1284_v22 = vpop.f32.mrb[17].mxu0  ;;  %v828_v37 = vpack.c.bf16 %v822_v21, %v822_v21 }
 0x522   : > { %v825_v23 = vpop.f32.mrb[18].mxu0 }
 0x523   : > { %v1285_v24 = vpop.f32.mrb[19].mxu0 }
 0x528   : > { %v933_v25 = vpop.f32.mrb[20].mxu0 }
 0x529   : > { %v934_v26 = vadd.f32 %v933_v25, %v1453_v10  ;;  %v1298_v27 = vpop.f32.mrb[21].mxu0  ;;  %v1349_v10 = vld [vmem:[%s1586_s4 + $0x28] sm:$0xff]  }
 0x52a   : > { %v936_v28 = vpop.f32.mrb[22].mxu0 }
 0x52b   : > { %v1299_v29 = vpop.f32.mrb[23].mxu0  ;;  %v939_v30 = vsel %vm417_vm3, %v934_v26, -inf }
 0x52c   : > { %940 = vmax.xlane.f32.xlu0 %v939_v30 }
 0x559   : > { %v651_v31 = vpop.f32.mrb[4].mxu1 }
 0x55a   : > { %v657_v33 = vpack.c.bf16 %v651_v31, %v651_v31  ;;  %v1264_v34 = vpop.f32.mrb[5].mxu1 }
 0x55b   : > { %v654_v35 = vpop.f32.mrb[6].mxu1 }
 0x55c   : > { %v1265_v36 = vpop.f32.mrb[7].mxu1  ;;  %1271 = vmatmul.mubr.msk.bf16.vlgmr.msra.gmra.mrb[0].mxu1 %vm370_vm1, %v657_v33 }
 0x55d   : > { %1287 = vmatpush3.bf16.msra.mxu1 %v1348_v32  ;;  %1290 = vmatprep.mubr.msk.bf16.mxu1 %vm1377_vm0, %v1376_v0 }
 0x55e   : > { %1288 = vmatprep.subr.bf16.mxu1 %v1376_v0 }
 0x561   : > { %1289 = vmatpush3.bf16.msra.mxu1 %v1349_v10 }
 0x562   : > { %1300 = vmatprep.subr.bf16.mxu1 %v1376_v0 }
 0x568   : > { %1291 = vmatmul.mubr.msk.bf16.vlgmr.msra.gmra.mrb[0].mxu1 %vm370_vm1, %v828_v37 }
 0x569   : > { %1302 = vmatprep.mubr.msk.bf16.mxu1 %vm1377_vm0, %v1376_v0 }
 0x5b9   : > { %v941_v38 = vpop.xlane.xlu0 %940 }
 0x5ba   : > { %v942_v39 = vsub.f32 %v934_v26, %v941_v38 }
 0x5bc   : > { %v943_v40 = vmul.f32 1.442695, %v942_v39 }
 0x5be   : > { %1364 = vpow2.f32 %v943_v40 }
 0x5c8   : > { %v1365_v41 = vpop.eup %1364 }
 0x5c9   : > { %v945_v42 = vsel %vm417_vm3, %v1365_v41, 0.0 }
 0x5ca   : > { %946 = vadd.xlane.f32.xlu0 %v945_v42 }
 0x5e0   : > { %951 = vrot.lane.b32.xlu0 %v1502_v53, %s1381_s23 }
 0x657   : > { %v947_v43 = vpop.xlane.xlu0 %946 }
 0x658   : > { %1366 = vrcp.f32 %v947_v43 }
 0x65b   : > { %v952_v44 = vpop.permute.xlu0 %951 }
 0x65c   : > { %v957_v45 = vsel %vm433_vm4, %v952_v44, 0 }
 0x65d   : > { %1301 = vmatpush3.bf16.msra.mxu1 %v957_v45 }
 0x65e   : > { %1306 = vmatprep.subr.bf16.mxu1 %v1376_v0 }
 0x662   : > { %v1367_v46 = vpop.eup %1366 }
 0x663   : > { %v949_v47 = vmul.f32 %v1367_v46, %v1365_v41 }
 0x665   : > { %v950_v49 = vpack.c.bf16 %v949_v47, %v949_v47 }
 0x667   : > { %1303 = vmatmul.mubr.msk.bf16.vlgmr.msra.gmra.mrb[8].mxu1 %vm417_vm3, %v950_v49 }
 0x668   : > { %1307 = vmatpush3.bf16.msra.mxu1 %v1350_v48  ;;  %1310 = vmatprep.mubr.msk.bf16.mxu1 %vm1377_vm0, %v1376_v0 }
 0x669   : > { %1308 = vmatprep.subr.bf16.mxu1 %v1376_v0 }
 0x66c   : > { %1309 = vmatpush3.bf16.msra.mxu1 %v1351_v50 }
 0x73a   : > { %v993_v51 = vpop.f32.mrb[8].mxu1 }
 0x73b   : > { %v999_v52 = vpack.c.bf16 %v993_v51, %v993_v51  ;;  %v1304_v53 = vpop.f32.mrb[9].mxu1 }
 0x73c   : > { %v996_v54 = vpop.f32.mrb[10].mxu1 }
 0x73d   : > { %v1305_v55 = vpop.f32.mrb[11].mxu1  ;;  %1311 = vmatmul.mubr.msk.bf16.vlgmr.msra.gmra.mrb[0].mxu1 %vm370_vm1, %v999_v52 }
 0x810   : > { %v1053_v0 = vpop.f32.mrb[0].mxu1 }
 0x811   : > { %v1314_v59 = vadd.f32 %v1053_v0, %v363_v58  ;;  %v1312_v60 = vpop.f32.mrb[1].mxu1 }
 0x812   : > { %v1056_v61 = vpop.f32.mrb[2].mxu1 }
 0x813   : > { %1060 = vst [vmem:[%s347_s22] sm:$0xff] %v1314_v59  ;;  %v1313_v62 = vpop.f32.mrb[3].mxu1 }
 0x814 PF: > { %s17_s24 = sadd.s32 1, %s1374_s24  }
 0x815   : > { %p14_p4 = scmp.ge.s32.totalorder %s17_s24, 4  }
 0x817   :  { %16 = sbr.rel (!%p14_p4) target bundleno = 1 (0x1), region = 90 }

</bundles_post_ra>
